<compile_context>
chip_gen: v6e
topology: v6e:2x2x1
jax: 0.10.0
libtpu: 0.0.40
codegen_flags: <defaults>
</compile_context>

<pallas_src>
import functools
from typing import Dict, List

import jax
import jax.numpy as jnp
from jax.experimental import pallas as pl
from jax.experimental.pallas import tpu as pltpu

MATMUL_DTYPE = jnp.bfloat16     # MXU input dtype; accumulation is always f32
LN_EPS = 1e-5


def _round_up(x: int, m: int) -> int:
    return (x + m - 1) // m * m


# ---------------------------------------------------------------------------
# Fused kernel: the entire IDCNN stack for one batch tile.
# ---------------------------------------------------------------------------
def _idcnn_fused_kernel(x_ref, *rest, cfgs, T, H, HP, halo, mx_dtype):
    """rest = [10 weight refs per block ...] + [o_ref] + [pad_scratch]."""
    n_w = 10 * len(cfgs)
    w_refs = rest[:n_w]
    o_ref = rest[n_w]
    pad_ref = rest[n_w + 1]

    bt = o_ref.shape[0]
    rows = bt * T

    # Zero the halo-padded activation scratch once; only the middle T rows are
    # written afterwards, so the halo rows stay zero for every conv of every
    # block (this implements Conv1d's zero padding for every dilation).
    pad_ref[...] = jnp.zeros_like(pad_ref)

    h = x_ref[...].reshape(rows, x_ref.shape[-1]).astype(jnp.float32)

    for i, (ksz, dil) in enumerate(cfgs):
        lw, lb, w0, b0, w1, b1, w2, b2, gamma, beta = w_refs[10 * i:10 * i + 10]

        # Linear: (rows, Din_p/HP) @ (Din_p/HP, HP), f32 accumulation.
        h = jnp.dot(h.astype(mx_dtype), lw[...],
                    preferred_element_type=jnp.float32) + lb[...]

        center = (ksz - 1) // 2
        for w_stk, bias, d in ((w0, b0, 1), (w1, b1, 1), (w2, b2, dil)):
            # conv input -> middle of the padded scratch (halo rows stay zero)
            pad_ref[:, halo:halo + T, :] = h.reshape(bt, T, HP)
            # im2col via static windows: tap k reads rows [halo+(k-c)*d, +T)
            taps = [
                pad_ref[:, halo + (k - center) * d: halo + (k - center) * d + T, :]
                for k in range(ksz)
            ]
            x_stk = jnp.concatenate(taps, axis=-1).reshape(rows, ksz * HP)
            # single stacked-tap matmul per conv
            h = jnp.dot(x_stk.astype(mx_dtype), w_stk[...],
                        preferred_element_type=jnp.float32) + bias[...]

        # ReLU
        h = jnp.maximum(h, 0.0)

        # LayerNorm over the REAL H channels.  Pad channels (>= H) are exactly
        # zero, so sums over the lane-padded width HP equal sums over H.
        mean = jnp.sum(h, axis=-1, keepdims=True) * (1.0 / H)
        ex2 = jnp.sum(h * h, axis=-1, keepdims=True) * (1.0 / H)
        var = ex2 - mean * mean
        h = (h - mean) * jax.lax.rsqrt(var + LN_EPS)
        h = h * gamma[...] + beta[...]   # gamma/beta are zero in pad channels

    o_ref[...] = h.reshape(bt, T, HP).astype(o_ref.dtype)


# ---------------------------------------------------------------------------
# Wrapper: one pallas_call for the whole stack.
# ---------------------------------------------------------------------------
def idcnn_forward(x, packed_blocks, *, hidden_size, rows_target=512):
    """x: (B, T, inputs_dim) f32 -> (B, T, hidden_size) f32."""
    B, T, Din = x.shape
    cfgs = tuple((int(p["kernel_size"]), int(p["dilation"])) for p in packed_blocks)
    DP = packed_blocks[0]["lin_w"].shape[0]     # padded input channel width
    HP = packed_blocks[0]["lin_w"].shape[1]     # lane-dense hidden width

    # Zero-pad input channels to the packed linear weight's input width.
    if DP != Din:
        x = jnp.pad(x, ((0, 0), (0, 0), (0, DP - Din)))

    # Batch tiling: target ~rows_target MXU rows (B_tile * T) per grid step.
    b_tile = max(1, min(B, rows_target // max(T, 1)))
    nb = -(-B // b_tile)
    if nb * b_tile != B:
        x = jnp.pad(x, ((0, nb * b_tile - B), (0, 0), (0, 0)))

    # Sequence halo large enough for every conv of every block.
    halo = max(((k - 1) // 2) * max(1, d) for k, d in cfgs)
    t_pad = T + 2 * halo

    flat_w = []
    for p in packed_blocks:
        flat_w += [p["lin_w"], p["lin_b"], p["w0"], p["b0"], p["w1"], p["b1"],
                   p["w2"], p["b2"], p["gamma"], p["beta"]]

    kern = functools.partial(
        _idcnn_fused_kernel, cfgs=cfgs, T=T, H=hidden_size, HP=HP, halo=halo,
        mx_dtype=MATMUL_DTYPE)

    in_specs = [pl.BlockSpec((b_tile, T, DP), lambda b: (b, 0, 0))]
    in_specs += [pl.BlockSpec(w.shape, lambda b: (0, 0)) for w in flat_w]

    grid_spec = pltpu.PrefetchScalarGridSpec(
        num_scalar_prefetch=0,
        grid=(nb,),
        in_specs=in_specs,
        out_specs=pl.BlockSpec((b_tile, T, HP), lambda b: (b, 0, 0)),
        scratch_shapes=[pltpu.VMEM((b_tile, t_pad, HP), jnp.float32)],
    )

    out = pl.pallas_call(
        kern,
        out_shape=jax.ShapeDtypeStruct((nb * b_tile, T, HP), jnp.float32),
        grid_spec=grid_spec,
        compiler_params=pltpu.CompilerParams(
            dimension_semantics=("parallel",)),
    )(x, *flat_w)

    # Strip batch / lane padding.
    return out[:B, :, :hidden_size]


# ---------------------------------------------------------------------------
# Parameter construction (natural layout) + packing (padded / stacked layout).
# ---------------------------------------------------------------------------
def init_idcnn_params(key, inputs_dim, hidden_size, n_blocks_params: List[Dict]):
    """Deterministic synthetic params; shapes match the PyTorch module."""
    blocks = []
    for idx, bp in enumerate(n_blocks_params):
        din = inputs_dim if idx == 0 else hidden_size
        ksz = bp["kernel_size"]
        keys = jax.random.split(jax.random.fold_in(key, idx), 8)

        def u(k, shape, fan_in):
            bound = 1.0 / jnp.sqrt(float(fan_in))
            return jax.random.uniform(k, shape, jnp.float32, -bound, bound)

        fan_c = hidden_size * ksz
        blocks.append({
            # nn.Linear(din, H): stored as (din, H)
            "lin_w": u(keys[0], (din, hidden_size), din),
            "lin_b": u(keys[1], (1, hidden_size), din),
            # nn.Conv1d(H, H, K): weight (Cout, Cin, K) stored as taps (K, Cin, Cout)
            "w0": u(keys[2], (ksz, hidden_size, hidden_size), fan_c),
            "b0": u(keys[3], (1, hidden_size), fan_c),
            "w1": u(keys[4], (ksz, hidden_size, hidden_size), fan_c),
            "b1": u(keys[5], (1, hidden_size), fan_c),
            "w2": u(keys[6], (ksz, hidden_size, hidden_size), fan_c),
            "b2": u(keys[7], (1, hidden_size), fan_c),
            "gamma": jnp.ones((1, hidden_size), jnp.float32),
            "beta": jnp.zeros((1, hidden_size), jnp.float32),
            "kernel_size": ksz,
            "dilation": bp["dilation"],
        })
    return blocks


def pack_idcnn_params(blocks, inputs_dim, hidden_size, matmul_dtype=MATMUL_DTYPE):
    """Pad channels to a lane-dense multiple of 128 and stack conv taps."""
    H = hidden_size
    HP = _round_up(H, 128)
    DP = _round_up(inputs_dim, 16)          # bf16 sublane-friendly input width
    packed = []
    for idx, p in enumerate(blocks):
        din = inputs_dim if idx == 0 else H
        dinp = DP if idx == 0 else HP

        lw = jnp.zeros((dinp, HP), jnp.float32).at[:din, :H].set(p["lin_w"])

        def stack(w):                       # (K, Cin, Cout) -> (K*HP, HP)
            k = w.shape[0]
            wp = jnp.zeros((k, HP, HP), jnp.float32).at[:, :H, :H].set(w)
            return wp.reshape(k * HP, HP).astype(matmul_dtype)

        def padb(b):                        # (1, H) -> (1, HP), zero pad lanes
            return jnp.zeros((1, HP), jnp.float32).at[:, :H].set(b)

        packed.append({
            "lin_w": lw.astype(matmul_dtype),
            "lin_b": padb(p["lin_b"]),
            "w0": stack(p["w0"]), "b0": padb(p["b0"]),
            "w1": stack(p["w1"]), "b1": padb(p["b1"]),
            "w2": stack(p["w2"]), "b2": padb(p["b2"]),
            "gamma": padb(p["gamma"]),      # pad lanes get gamma=0, beta=0
            "beta": padb(p["beta"]),
            "kernel_size": p["kernel_size"],
            "dilation": p["dilation"],
        })
    return packed


# ---------------------------------------------------------------------------
# Pure-JAX reference (same bf16 matmul-input quantization) for verification.
# ---------------------------------------------------------------------------
def idcnn_reference(x, blocks, matmul_dtype=MATMUL_DTYPE):
    def dotq(a, b):
        return jnp.dot(a.astype(matmul_dtype), b.astype(matmul_dtype),
                       preferred_element_type=jnp.float32)

    h = x.astype(jnp.float32)
    for p in blocks:
        B, T, _ = h.shape
        ksz = p["kernel_size"]
        dil = p["dilation"]
        c = (ksz - 1) // 2
        H = p["lin_w"].shape[1]
        h = dotq(h.reshape(B * T, -1), p["lin_w"]).reshape(B, T, H) + p["lin_b"]
        for (w, b, d) in ((p["w0"], p["b0"], 1), (p["w1"], p["b1"], 1),
                          (p["w2"], p["b2"], dil)):
            pad = c * d
            hp = jnp.pad(h, ((0, 0), (pad, pad), (0, 0)))
            out = jnp.broadcast_to(b, (B, T, H)).astype(jnp.float32)
            for k in range(ksz):
                xs = hp[:, k * d:k * d + T, :]
                out = out + dotq(xs.reshape(B * T, H), w[k]).reshape(B, T, H)
            h = out
        h = jnp.maximum(h, 0.0)
        mean = jnp.mean(h, axis=-1, keepdims=True)
        var = jnp.mean((h - mean) ** 2, axis=-1, keepdims=True)
        h = (h - mean) * jax.lax.rsqrt(var + LN_EPS)
        h = h * p["gamma"] + p["beta"]
    return h


# ---------------------------------------------------------------------------
# Main
# ---------------------------------------------------------------------------
if __name__ == "__main__":
    key = jax.random.PRNGKey(0)
    B, T = 2, 16
    inputs_dim, hidden_size = 8, 32
    n_blocks_params = [{"kernel_size": 3, "dilation": 2} for _ in range(4)]

    kx, kp = jax.random.split(key)
    x = jax.random.normal(kx, (B, T, inputs_dim), dtype=jnp.float32)

    params = init_idcnn_params(kp, inputs_dim, hidden_size, n_blocks_params)
    packed = pack_idcnn_params(params, inputs_dim, hidden_size)

    out = idcnn_forward(x, packed, hidden_size=hidden_size)
    out = jax.block_until_ready(out)

    assert out.shape == (B, T, hidden_size), out.shape
    assert out.dtype == jnp.float32
    assert bool(jnp.all(jnp.isfinite(out)))

    # Structural correctness check vs. a pure-JAX reference that uses the same
    # bf16 matmul-input quantization (verifies padding, shifts, stacking, LN).
    ref = jax.block_until_ready(idcnn_reference(x, params))
    assert bool(jnp.allclose(out, ref, rtol=1e-2, atol=1e-2)), \
        float(jnp.max(jnp.abs(out - ref)))

    print("KERNEL_OK")
</pallas_src>

<mosaic_0001>
module attributes {stable_mosaic.version = 11 : i64} {
  func.func @_idcnn_fused_kernel(%arg0: i32, %arg1: memref<2x16x16xf32, #tpu.memory_space<vmem>>, %arg2: memref<16x128xbf16, #tpu.memory_space<vmem>>, %arg3: memref<1x128xf32, #tpu.memory_space<vmem>>, %arg4: memref<384x128xbf16, #tpu.memory_space<vmem>>, %arg5: memref<1x128xf32, #tpu.memory_space<vmem>>, %arg6: memref<384x128xbf16, #tpu.memory_space<vmem>>, %arg7: memref<1x128xf32, #tpu.memory_space<vmem>>, %arg8: memref<384x128xbf16, #tpu.memory_space<vmem>>, %arg9: memref<1x128xf32, #tpu.memory_space<vmem>>, %arg10: memref<1x128xf32, #tpu.memory_space<vmem>>, %arg11: memref<1x128xf32, #tpu.memory_space<vmem>>, %arg12: memref<128x128xbf16, #tpu.memory_space<vmem>>, %arg13: memref<1x128xf32, #tpu.memory_space<vmem>>, %arg14: memref<384x128xbf16, #tpu.memory_space<vmem>>, %arg15: memref<1x128xf32, #tpu.memory_space<vmem>>, %arg16: memref<384x128xbf16, #tpu.memory_space<vmem>>, %arg17: memref<1x128xf32, #tpu.memory_space<vmem>>, %arg18: memref<384x128xbf16, #tpu.memory_space<vmem>>, %arg19: memref<1x128xf32, #tpu.memory_space<vmem>>, %arg20: memref<1x128xf32, #tpu.memory_space<vmem>>, %arg21: memref<1x128xf32, #tpu.memory_space<vmem>>, %arg22: memref<128x128xbf16, #tpu.memory_space<vmem>>, %arg23: memref<1x128xf32, #tpu.memory_space<vmem>>, %arg24: memref<384x128xbf16, #tpu.memory_space<vmem>>, %arg25: memref<1x128xf32, #tpu.memory_space<vmem>>, %arg26: memref<384x128xbf16, #tpu.memory_space<vmem>>, %arg27: memref<1x128xf32, #tpu.memory_space<vmem>>, %arg28: memref<384x128xbf16, #tpu.memory_space<vmem>>, %arg29: memref<1x128xf32, #tpu.memory_space<vmem>>, %arg30: memref<1x128xf32, #tpu.memory_space<vmem>>, %arg31: memref<1x128xf32, #tpu.memory_space<vmem>>, %arg32: memref<128x128xbf16, #tpu.memory_space<vmem>>, %arg33: memref<1x128xf32, #tpu.memory_space<vmem>>, %arg34: memref<384x128xbf16, #tpu.memory_space<vmem>>, %arg35: memref<1x128xf32, #tpu.memory_space<vmem>>, %arg36: memref<384x128xbf16, #tpu.memory_space<vmem>>, %arg37: memref<1x128xf32, #tpu.memory_space<vmem>>, %arg38: memref<384x128xbf16, #tpu.memory_space<vmem>>, %arg39: memref<1x128xf32, #tpu.memory_space<vmem>>, %arg40: memref<1x128xf32, #tpu.memory_space<vmem>>, %arg41: memref<1x128xf32, #tpu.memory_space<vmem>>, %arg42: memref<2x16x128xf32, #tpu.memory_space<vmem>>, %arg43: memref<2x20x128xf32, #tpu.memory_space<vmem>>) attributes {dimension_semantics = [#tpu.dimension_semantics<parallel>], iteration_bounds = array<i64: 1>, scalar_prefetch = 0 : i64, scratch_operands = 1 : i64, tpu.core_type = #tpu.core_type<tc>, window_params = [{transform_indices = @transform_0, window_bounds = array<i64: 2, 16, 16>}, {pipeline_mode = #tpu.pipeline_mode<synchronous>, transform_indices = @transform_1, window_bounds = array<i64: 16, 128>}, {pipeline_mode = #tpu.pipeline_mode<synchronous>, transform_indices = @transform_2, window_bounds = array<i64: 1, 128>}, {pipeline_mode = #tpu.pipeline_mode<synchronous>, transform_indices = @transform_3, window_bounds = array<i64: 384, 128>}, {pipeline_mode = #tpu.pipeline_mode<synchronous>, transform_indices = @transform_4, window_bounds = array<i64: 1, 128>}, {pipeline_mode = #tpu.pipeline_mode<synchronous>, transform_indices = @transform_5, window_bounds = array<i64: 384, 128>}, {pipeline_mode = #tpu.pipeline_mode<synchronous>, transform_indices = @transform_6, window_bounds = array<i64: 1, 128>}, {pipeline_mode = #tpu.pipeline_mode<synchronous>, transform_indices = @transform_7, window_bounds = array<i64: 384, 128>}, {pipeline_mode = #tpu.pipeline_mode<synchronous>, transform_indices = @transform_8, window_bounds = array<i64: 1, 128>}, {pipeline_mode = #tpu.pipeline_mode<synchronous>, transform_indices = @transform_9, window_bounds = array<i64: 1, 128>}, {pipeline_mode = #tpu.pipeline_mode<synchronous>, transform_indices = @transform_10, window_bounds = array<i64: 1, 128>}, {pipeline_mode = #tpu.pipeline_mode<synchronous>, transform_indices = @transform_11, window_bounds = array<i64: 128, 128>}, {pipeline_mode = #tpu.pipeline_mode<synchronous>, transform_indices = @transform_12, window_bounds = array<i64: 1, 128>}, {pipeline_mode = #tpu.pipeline_mode<synchronous>, transform_indices = @transform_13, window_bounds = array<i64: 384, 128>}, {pipeline_mode = #tpu.pipeline_mode<synchronous>, transform_indices = @transform_14, window_bounds = array<i64: 1, 128>}, {pipeline_mode = #tpu.pipeline_mode<synchronous>, transform_indices = @transform_15, window_bounds = array<i64: 384, 128>}, {pipeline_mode = #tpu.pipeline_mode<synchronous>, transform_indices = @transform_16, window_bounds = array<i64: 1, 128>}, {pipeline_mode = #tpu.pipeline_mode<synchronous>, transform_indices = @transform_17, window_bounds = array<i64: 384, 128>}, {pipeline_mode = #tpu.pipeline_mode<synchronous>, transform_indices = @transform_18, window_bounds = array<i64: 1, 128>}, {pipeline_mode = #tpu.pipeline_mode<synchronous>, transform_indices = @transform_19, window_bounds = array<i64: 1, 128>}, {pipeline_mode = #tpu.pipeline_mode<synchronous>, transform_indices = @transform_20, window_bounds = array<i64: 1, 128>}, {pipeline_mode = #tpu.pipeline_mode<synchronous>, transform_indices = @transform_21, window_bounds = array<i64: 128, 128>}, {pipeline_mode = #tpu.pipeline_mode<synchronous>, transform_indices = @transform_22, window_bounds = array<i64: 1, 128>}, {pipeline_mode = #tpu.pipeline_mode<synchronous>, transform_indices = @transform_23, window_bounds = array<i64: 384, 128>}, {pipeline_mode = #tpu.pipeline_mode<synchronous>, transform_indices = @transform_24, window_bounds = array<i64: 1, 128>}, {pipeline_mode = #tpu.pipeline_mode<synchronous>, transform_indices = @transform_25, window_bounds = array<i64: 384, 128>}, {pipeline_mode = #tpu.pipeline_mode<synchronous>, transform_indices = @transform_26, window_bounds = array<i64: 1, 128>}, {pipeline_mode = #tpu.pipeline_mode<synchronous>, transform_indices = @transform_27, window_bounds = array<i64: 384, 128>}, {pipeline_mode = #tpu.pipeline_mode<synchronous>, transform_indices = @transform_28, window_bounds = array<i64: 1, 128>}, {pipeline_mode = #tpu.pipeline_mode<synchronous>, transform_indices = @transform_29, window_bounds = array<i64: 1, 128>}, {pipeline_mode = #tpu.pipeline_mode<synchronous>, transform_indices = @transform_30, window_bounds = array<i64: 1, 128>}, {pipeline_mode = #tpu.pipeline_mode<synchronous>, transform_indices = @transform_31, window_bounds = array<i64: 128, 128>}, {pipeline_mode = #tpu.pipeline_mode<synchronous>, transform_indices = @transform_32, window_bounds = array<i64: 1, 128>}, {pipeline_mode = #tpu.pipeline_mode<synchronous>, transform_indices = @transform_33, window_bounds = array<i64: 384, 128>}, {pipeline_mode = #tpu.pipeline_mode<synchronous>, transform_indices = @transform_34, window_bounds = array<i64: 1, 128>}, {pipeline_mode = #tpu.pipeline_mode<synchronous>, transform_indices = @transform_35, window_bounds = array<i64: 384, 128>}, {pipeline_mode = #tpu.pipeline_mode<synchronous>, transform_indices = @transform_36, window_bounds = array<i64: 1, 128>}, {pipeline_mode = #tpu.pipeline_mode<synchronous>, transform_indices = @transform_37, window_bounds = array<i64: 384, 128>}, {pipeline_mode = #tpu.pipeline_mode<synchronous>, transform_indices = @transform_38, window_bounds = array<i64: 1, 128>}, {pipeline_mode = #tpu.pipeline_mode<synchronous>, transform_indices = @transform_39, window_bounds = array<i64: 1, 128>}, {pipeline_mode = #tpu.pipeline_mode<synchronous>, transform_indices = @transform_40, window_bounds = array<i64: 1, 128>}, {transform_indices = @transform_41, window_bounds = array<i64: 2, 16, 128>}]} {
    %cst = arith.constant 0.000000e+00 : f32
    %0 = vector.broadcast %cst : f32 to vector<2x20x128xf32>
    %c0 = arith.constant 0 : index
    %c0_0 = arith.constant 0 : index
    %c0_1 = arith.constant 0 : index
    %1 = vector.load %arg43[%c0, %c0_0, %c0_1] : memref<2x20x128xf32, #tpu.memory_space<vmem>>, vector<2x20x128xf32>
    tpu.vector_store %arg43[%c0, %c0_0, %c0_1], %0 {strides = array<i32>} : memref<2x20x128xf32, #tpu.memory_space<vmem>>, vector<2x20x128xf32>,
    %c0_2 = arith.constant 0 : index
    %c0_3 = arith.constant 0 : index
    %c0_4 = arith.constant 0 : index
    %2 = vector.load %arg1[%c0_2, %c0_3, %c0_4] : memref<2x16x16xf32, #tpu.memory_space<vmem>>, vector<2x16x16xf32>
    %3 = vector.shape_cast %2 : vector<2x16x16xf32> to vector<32x16xf32>
    %4 = arith.truncf %3 : vector<32x16xf32> to vector<32x16xbf16>
    %c0_5 = arith.constant 0 : index
    %c0_6 = arith.constant 0 : index
    %5 = vector.load %arg2[%c0_5, %c0_6] : memref<16x128xbf16, #tpu.memory_space<vmem>>, vector<16x128xbf16>
    %cst_7 = arith.constant dense<0.000000e+00> : vector<32x128xf32>
    %6 = tpu.matmul %4, %5, %cst_7 {dimension_numbers = #tpu.dot_dimension_numbers<[1], [0], [0], [1], [0, 0, 1, 1], [], []>} : vector<32x16xbf16>, vector<16x128xbf16>, vector<32x128xf32> -> vector<32x128xf32>
    %c0_8 = arith.constant 0 : index
    %c0_9 = arith.constant 0 : index
    %7 = vector.load %arg3[%c0_8, %c0_9] : memref<1x128xf32, #tpu.memory_space<vmem>>, vector<1x128xf32>
    %8 = vector.broadcast %7 : vector<1x128xf32> to vector<32x128xf32>
    %9 = arith.addf %6, %8 : vector<32x128xf32>
    %10 = vector.shape_cast %9 : vector<32x128xf32> to vector<2x16x128xf32>
    %c0_10 = arith.constant 0 : index
    %c2 = arith.constant 2 : index
    %c0_11 = arith.constant 0 : index
    %11 = vector.load %arg43[%c0_10, %c2, %c0_11] : memref<2x20x128xf32, #tpu.memory_space<vmem>>, vector<2x16x128xf32>
    tpu.vector_store %arg43[%c0_10, %c2, %c0_11], %10 {strides = array<i32>} : memref<2x20x128xf32, #tpu.memory_space<vmem>>, vector<2x16x128xf32>,
    %c0_12 = arith.constant 0 : index
    %c1 = arith.constant 1 : index
    %c0_13 = arith.constant 0 : index
    %12 = vector.load %arg43[%c0_12, %c1, %c0_13] : memref<2x20x128xf32, #tpu.memory_space<vmem>>, vector<2x16x128xf32>
    %c0_14 = arith.constant 0 : index
    %c2_15 = arith.constant 2 : index
    %c0_16 = arith.constant 0 : index
    %13 = vector.load %arg43[%c0_14, %c2_15, %c0_16] : memref<2x20x128xf32, #tpu.memory_space<vmem>>, vector<2x16x128xf32>
    %c0_17 = arith.constant 0 : index
    %c3 = arith.constant 3 : index
    %c0_18 = arith.constant 0 : index
    %14 = vector.load %arg43[%c0_17, %c3, %c0_18] : memref<2x20x128xf32, #tpu.memory_space<vmem>>, vector<2x16x128xf32>
    %15 = tpu.concatenate %12, %13, %14 in 2 : vector<2x16x128xf32>, vector<2x16x128xf32>, vector<2x16x128xf32> -> vector<2x16x384xf32>
    %16 = vector.shape_cast %15 : vector<2x16x384xf32> to vector<32x384xf32>
    %17 = arith.truncf %16 : vector<32x384xf32> to vector<32x384xbf16>
    %c0_19 = arith.constant 0 : index
    %c0_20 = arith.constant 0 : index
    %18 = vector.load %arg4[%c0_19, %c0_20] : memref<384x128xbf16, #tpu.memory_space<vmem>>, vector<384x128xbf16>
    %cst_21 = arith.constant dense<0.000000e+00> : vector<32x128xf32>
    %19 = tpu.matmul %17, %18, %cst_21 {dimension_numbers = #tpu.dot_dimension_numbers<[1], [0], [0], [1], [0, 0, 1, 1], [], []>} : vector<32x384xbf16>, vector<384x128xbf16>, vector<32x128xf32> -> vector<32x128xf32>
    %c0_22 = arith.constant 0 : index
    %c0_23 = arith.constant 0 : index
    %20 = vector.load %arg5[%c0_22, %c0_23] : memref<1x128xf32, #tpu.memory_space<vmem>>, vector<1x128xf32>
    %21 = vector.broadcast %20 : vector<1x128xf32> to vector<32x128xf32>
    %22 = arith.addf %19, %21 : vector<32x128xf32>
    %23 = vector.shape_cast %22 : vector<32x128xf32> to vector<2x16x128xf32>
    %c0_24 = arith.constant 0 : index
    %c2_25 = arith.constant 2 : index
    %c0_26 = arith.constant 0 : index
    %24 = vector.load %arg43[%c0_24, %c2_25, %c0_26] : memref<2x20x128xf32, #tpu.memory_space<vmem>>, vector<2x16x128xf32>
    tpu.vector_store %arg43[%c0_24, %c2_25, %c0_26], %23 {strides = array<i32>} : memref<2x20x128xf32, #tpu.memory_space<vmem>>, vector<2x16x128xf32>,
    %c0_27 = arith.constant 0 : index
    %c1_28 = arith.constant 1 : index
    %c0_29 = arith.constant 0 : index
    %25 = vector.load %arg43[%c0_27, %c1_28, %c0_29] : memref<2x20x128xf32, #tpu.memory_space<vmem>>, vector<2x16x128xf32>
    %c0_30 = arith.constant 0 : index
    %c2_31 = arith.constant 2 : index
    %c0_32 = arith.constant 0 : index
    %26 = vector.load %arg43[%c0_30, %c2_31, %c0_32] : memref<2x20x128xf32, #tpu.memory_space<vmem>>, vector<2x16x128xf32>
    %c0_33 = arith.constant 0 : index
    %c3_34 = arith.constant 3 : index
    %c0_35 = arith.constant 0 : index
    %27 = vector.load %arg43[%c0_33, %c3_34, %c0_35] : memref<2x20x128xf32, #tpu.memory_space<vmem>>, vector<2x16x128xf32>
    %28 = tpu.concatenate %25, %26, %27 in 2 : vector<2x16x128xf32>, vector<2x16x128xf32>, vector<2x16x128xf32> -> vector<2x16x384xf32>
    %29 = vector.shape_cast %28 : vector<2x16x384xf32> to vector<32x384xf32>
    %30 = arith.truncf %29 : vector<32x384xf32> to vector<32x384xbf16>
    %c0_36 = arith.constant 0 : index
    %c0_37 = arith.constant 0 : index
    %31 = vector.load %arg6[%c0_36, %c0_37] : memref<384x128xbf16, #tpu.memory_space<vmem>>, vector<384x128xbf16>
    %cst_38 = arith.constant dense<0.000000e+00> : vector<32x128xf32>
    %32 = tpu.matmul %30, %31, %cst_38 {dimension_numbers = #tpu.dot_dimension_numbers<[1], [0], [0], [1], [0, 0, 1, 1], [], []>} : vector<32x384xbf16>, vector<384x128xbf16>, vector<32x128xf32> -> vector<32x128xf32>
    %c0_39 = arith.constant 0 : index
    %c0_40 = arith.constant 0 : index
    %33 = vector.load %arg7[%c0_39, %c0_40] : memref<1x128xf32, #tpu.memory_space<vmem>>, vector<1x128xf32>
    %34 = vector.broadcast %33 : vector<1x128xf32> to vector<32x128xf32>
    %35 = arith.addf %32, %34 : vector<32x128xf32>
    %36 = vector.shape_cast %35 : vector<32x128xf32> to vector<2x16x128xf32>
    %c0_41 = arith.constant 0 : index
    %c2_42 = arith.constant 2 : index
    %c0_43 = arith.constant 0 : index
    %37 = vector.load %arg43[%c0_41, %c2_42, %c0_43] : memref<2x20x128xf32, #tpu.memory_space<vmem>>, vector<2x16x128xf32>
    tpu.vector_store %arg43[%c0_41, %c2_42, %c0_43], %36 {strides = array<i32>} : memref<2x20x128xf32, #tpu.memory_space<vmem>>, vector<2x16x128xf32>,
    %c0_44 = arith.constant 0 : index
    %c0_45 = arith.constant 0 : index
    %c0_46 = arith.constant 0 : index
    %38 = vector.load %arg43[%c0_44, %c0_45, %c0_46] : memref<2x20x128xf32, #tpu.memory_space<vmem>>, vector<2x16x128xf32>
    %c0_47 = arith.constant 0 : index
    %c2_48 = arith.constant 2 : index
    %c0_49 = arith.constant 0 : index
    %39 = vector.load %arg43[%c0_47, %c2_48, %c0_49] : memref<2x20x128xf32, #tpu.memory_space<vmem>>, vector<2x16x128xf32>
    %c0_50 = arith.constant 0 : index
    %c4 = arith.constant 4 : index
    %c0_51 = arith.constant 0 : index
    %40 = vector.load %arg43[%c0_50, %c4, %c0_51] : memref<2x20x128xf32, #tpu.memory_space<vmem>>, vector<2x16x128xf32>
    %41 = tpu.concatenate %38, %39, %40 in 2 : vector<2x16x128xf32>, vector<2x16x128xf32>, vector<2x16x128xf32> -> vector<2x16x384xf32>
    %42 = vector.shape_cast %41 : vector<2x16x384xf32> to vector<32x384xf32>
    %43 = arith.truncf %42 : vector<32x384xf32> to vector<32x384xbf16>
    %c0_52 = arith.constant 0 : index
    %c0_53 = arith.constant 0 : index
    %44 = vector.load %arg8[%c0_52, %c0_53] : memref<384x128xbf16, #tpu.memory_space<vmem>>, vector<384x128xbf16>
    %cst_54 = arith.constant dense<0.000000e+00> : vector<32x128xf32>
    %45 = tpu.matmul %43, %44, %cst_54 {dimension_numbers = #tpu.dot_dimension_numbers<[1], [0], [0], [1], [0, 0, 1, 1], [], []>} : vector<32x384xbf16>, vector<384x128xbf16>, vector<32x128xf32> -> vector<32x128xf32>
    %c0_55 = arith.constant 0 : index
    %c0_56 = arith.constant 0 : index
    %46 = vector.load %arg9[%c0_55, %c0_56] : memref<1x128xf32, #tpu.memory_space<vmem>>, vector<1x128xf32>
    %47 = vector.broadcast %46 : vector<1x128xf32> to vector<32x128xf32>
    %48 = arith.addf %45, %47 : vector<32x128xf32>
    %cst_57 = arith.constant 0.000000e+00 : f32
    %49 = vector.broadcast %cst_57 : f32 to vector<32x128xf32>
    %50 = arith.maximumf %48, %49 : vector<32x128xf32>
    %cst_58 = arith.constant dense<0.000000e+00> : vector<32xf32>
    %51 = vector.multi_reduction <add>, %50, %cst_58 [1] : vector<32x128xf32> to vector<32xf32>
    %52 = vector.shape_cast %51 : vector<32xf32> to vector<32x1xf32>
    %cst_59 = arith.constant 3.125000e-02 : f32
    %53 = vector.broadcast %cst_59 : f32 to vector<32x1xf32>
    %54 = arith.mulf %52, %53 : vector<32x1xf32>
    %55 = arith.mulf %50, %50 : vector<32x128xf32>
    %cst_60 = arith.constant dense<0.000000e+00> : vector<32xf32>
    %56 = vector.multi_reduction <add>, %55, %cst_60 [1] : vector<32x128xf32> to vector<32xf32>
    %57 = vector.shape_cast %56 : vector<32xf32> to vector<32x1xf32>
    %cst_61 = arith.constant 3.125000e-02 : f32
    %58 = vector.broadcast %cst_61 : f32 to vector<32x1xf32>
    %59 = arith.mulf %57, %58 : vector<32x1xf32>
    %60 = arith.mulf %54, %54 : vector<32x1xf32>
    %61 = arith.subf %59, %60 : vector<32x1xf32>
    %62 = vector.broadcast %54 : vector<32x1xf32> to vector<32x128xf32>
    %63 = arith.subf %50, %62 : vector<32x128xf32>
    %cst_62 = arith.constant 9.99999974E-6 : f32
    %64 = vector.broadcast %cst_62 : f32 to vector<32x1xf32>
    %65 = arith.addf %61, %64 : vector<32x1xf32>
    %66 = math.rsqrt %65 : vector<32x1xf32>
    %67 = vector.broadcast %66 : vector<32x1xf32> to vector<32x128xf32>
    %68 = arith.mulf %63, %67 : vector<32x128xf32>
    %c0_63 = arith.constant 0 : index
    %c0_64 = arith.constant 0 : index
    %69 = vector.load %arg10[%c0_63, %c0_64] : memref<1x128xf32, #tpu.memory_space<vmem>>, vector<1x128xf32>
    %70 = vector.broadcast %69 : vector<1x128xf32> to vector<32x128xf32>
    %71 = arith.mulf %68, %70 : vector<32x128xf32>
    %c0_65 = arith.constant 0 : index
    %c0_66 = arith.constant 0 : index
    %72 = vector.load %arg11[%c0_65, %c0_66] : memref<1x128xf32, #tpu.memory_space<vmem>>, vector<1x128xf32>
    %73 = vector.broadcast %72 : vector<1x128xf32> to vector<32x128xf32>
    %74 = arith.addf %71, %73 : vector<32x128xf32>
    %75 = arith.truncf %74 : vector<32x128xf32> to vector<32x128xbf16>
    %c0_67 = arith.constant 0 : index
    %c0_68 = arith.constant 0 : index
    %76 = vector.load %arg12[%c0_67, %c0_68] : memref<128x128xbf16, #tpu.memory_space<vmem>>, vector<128x128xbf16>
    %cst_69 = arith.constant dense<0.000000e+00> : vector<32x128xf32>
    %77 = tpu.matmul %75, %76, %cst_69 {dimension_numbers = #tpu.dot_dimension_numbers<[1], [0], [0], [1], [0, 0, 1, 1], [], []>} : vector<32x128xbf16>, vector<128x128xbf16>, vector<32x128xf32> -> vector<32x128xf32>
    %c0_70 = arith.constant 0 : index
    %c0_71 = arith.constant 0 : index
    %78 = vector.load %arg13[%c0_70, %c0_71] : memref<1x128xf32, #tpu.memory_space<vmem>>, vector<1x128xf32>
    %79 = vector.broadcast %78 : vector<1x128xf32> to vector<32x128xf32>
    %80 = arith.addf %77, %79 : vector<32x128xf32>
    %81 = vector.shape_cast %80 : vector<32x128xf32> to vector<2x16x128xf32>
    %c0_72 = arith.constant 0 : index
    %c2_73 = arith.constant 2 : index
    %c0_74 = arith.constant 0 : index
    %82 = vector.load %arg43[%c0_72, %c2_73, %c0_74] : memref<2x20x128xf32, #tpu.memory_space<vmem>>, vector<2x16x128xf32>
    tpu.vector_store %arg43[%c0_72, %c2_73, %c0_74], %81 {strides = array<i32>} : memref<2x20x128xf32, #tpu.memory_space<vmem>>, vector<2x16x128xf32>,
    %c0_75 = arith.constant 0 : index
    %c1_76 = arith.constant 1 : index
    %c0_77 = arith.constant 0 : index
    %83 = vector.load %arg43[%c0_75, %c1_76, %c0_77] : memref<2x20x128xf32, #tpu.memory_space<vmem>>, vector<2x16x128xf32>
    %c0_78 = arith.constant 0 : index
    %c2_79 = arith.constant 2 : index
    %c0_80 = arith.constant 0 : index
    %84 = vector.load %arg43[%c0_78, %c2_79, %c0_80] : memref<2x20x128xf32, #tpu.memory_space<vmem>>, vector<2x16x128xf32>
    %c0_81 = arith.constant 0 : index
    %c3_82 = arith.constant 3 : index
    %c0_83 = arith.constant 0 : index
    %85 = vector.load %arg43[%c0_81, %c3_82, %c0_83] : memref<2x20x128xf32, #tpu.memory_space<vmem>>, vector<2x16x128xf32>
    %86 = tpu.concatenate %83, %84, %85 in 2 : vector<2x16x128xf32>, vector<2x16x128xf32>, vector<2x16x128xf32> -> vector<2x16x384xf32>
    %87 = vector.shape_cast %86 : vector<2x16x384xf32> to vector<32x384xf32>
    %88 = arith.truncf %87 : vector<32x384xf32> to vector<32x384xbf16>
    %c0_84 = arith.constant 0 : index
    %c0_85 = arith.constant 0 : index
    %89 = vector.load %arg14[%c0_84, %c0_85] : memref<384x128xbf16, #tpu.memory_space<vmem>>, vector<384x128xbf16>
    %cst_86 = arith.constant dense<0.000000e+00> : vector<32x128xf32>
    %90 = tpu.matmul %88, %89, %cst_86 {dimension_numbers = #tpu.dot_dimension_numbers<[1], [0], [0], [1], [0, 0, 1, 1], [], []>} : vector<32x384xbf16>, vector<384x128xbf16>, vector<32x128xf32> -> vector<32x128xf32>
    %c0_87 = arith.constant 0 : index
    %c0_88 = arith.constant 0 : index
    %91 = vector.load %arg15[%c0_87, %c0_88] : memref<1x128xf32, #tpu.memory_space<vmem>>, vector<1x128xf32>
    %92 = vector.broadcast %91 : vector<1x128xf32> to vector<32x128xf32>
    %93 = arith.addf %90, %92 : vector<32x128xf32>
    %94 = vector.shape_cast %93 : vector<32x128xf32> to vector<2x16x128xf32>
    %c0_89 = arith.constant 0 : index
    %c2_90 = arith.constant 2 : index
    %c0_91 = arith.constant 0 : index
    %95 = vector.load %arg43[%c0_89, %c2_90, %c0_91] : memref<2x20x128xf32, #tpu.memory_space<vmem>>, vector<2x16x128xf32>
    tpu.vector_store %arg43[%c0_89, %c2_90, %c0_91], %94 {strides = array<i32>} : memref<2x20x128xf32, #tpu.memory_space<vmem>>, vector<2x16x128xf32>,
    %c0_92 = arith.constant 0 : index
    %c1_93 = arith.constant 1 : index
    %c0_94 = arith.constant 0 : index
    %96 = vector.load %arg43[%c0_92, %c1_93, %c0_94] : memref<2x20x128xf32, #tpu.memory_space<vmem>>, vector<2x16x128xf32>
    %c0_95 = arith.constant 0 : index
    %c2_96 = arith.constant 2 : index
    %c0_97 = arith.constant 0 : index
    %97 = vector.load %arg43[%c0_95, %c2_96, %c0_97] : memref<2x20x128xf32, #tpu.memory_space<vmem>>, vector<2x16x128xf32>
    %c0_98 = arith.constant 0 : index
    %c3_99 = arith.constant 3 : index
    %c0_100 = arith.constant 0 : index
    %98 = vector.load %arg43[%c0_98, %c3_99, %c0_100] : memref<2x20x128xf32, #tpu.memory_space<vmem>>, vector<2x16x128xf32>
    %99 = tpu.concatenate %96, %97, %98 in 2 : vector<2x16x128xf32>, vector<2x16x128xf32>, vector<2x16x128xf32> -> vector<2x16x384xf32>
    %100 = vector.shape_cast %99 : vector<2x16x384xf32> to vector<32x384xf32>
    %101 = arith.truncf %100 : vector<32x384xf32> to vector<32x384xbf16>
    %c0_101 = arith.constant 0 : index
    %c0_102 = arith.constant 0 : index
    %102 = vector.load %arg16[%c0_101, %c0_102] : memref<384x128xbf16, #tpu.memory_space<vmem>>, vector<384x128xbf16>
    %cst_103 = arith.constant dense<0.000000e+00> : vector<32x128xf32>
    %103 = tpu.matmul %101, %102, %cst_103 {dimension_numbers = #tpu.dot_dimension_numbers<[1], [0], [0], [1], [0, 0, 1, 1], [], []>} : vector<32x384xbf16>, vector<384x128xbf16>, vector<32x128xf32> -> vector<32x128xf32>
    %c0_104 = arith.constant 0 : index
    %c0_105 = arith.constant 0 : index
    %104 = vector.load %arg17[%c0_104, %c0_105] : memref<1x128xf32, #tpu.memory_space<vmem>>, vector<1x128xf32>
    %105 = vector.broadcast %104 : vector<1x128xf32> to vector<32x128xf32>
    %106 = arith.addf %103, %105 : vector<32x128xf32>
    %107 = vector.shape_cast %106 : vector<32x128xf32> to vector<2x16x128xf32>
    %c0_106 = arith.constant 0 : index
    %c2_107 = arith.constant 2 : index
    %c0_108 = arith.constant 0 : index
    %108 = vector.load %arg43[%c0_106, %c2_107, %c0_108] : memref<2x20x128xf32, #tpu.memory_space<vmem>>, vector<2x16x128xf32>
    tpu.vector_store %arg43[%c0_106, %c2_107, %c0_108], %107 {strides = array<i32>} : memref<2x20x128xf32, #tpu.memory_space<vmem>>, vector<2x16x128xf32>,
    %c0_109 = arith.constant 0 : index
    %c0_110 = arith.constant 0 : index
    %c0_111 = arith.constant 0 : index
    %109 = vector.load %arg43[%c0_109, %c0_110, %c0_111] : memref<2x20x128xf32, #tpu.memory_space<vmem>>, vector<2x16x128xf32>
    %c0_112 = arith.constant 0 : index
    %c2_113 = arith.constant 2 : index
    %c0_114 = arith.constant 0 : index
    %110 = vector.load %arg43[%c0_112, %c2_113, %c0_114] : memref<2x20x128xf32, #tpu.memory_space<vmem>>, vector<2x16x128xf32>
    %c0_115 = arith.constant 0 : index
    %c4_116 = arith.constant 4 : index
    %c0_117 = arith.constant 0 : index
    %111 = vector.load %arg43[%c0_115, %c4_116, %c0_117] : memref<2x20x128xf32, #tpu.memory_space<vmem>>, vector<2x16x128xf32>
    %112 = tpu.concatenate %109, %110, %111 in 2 : vector<2x16x128xf32>, vector<2x16x128xf32>, vector<2x16x128xf32> -> vector<2x16x384xf32>
    %113 = vector.shape_cast %112 : vector<2x16x384xf32> to vector<32x384xf32>
    %114 = arith.truncf %113 : vector<32x384xf32> to vector<32x384xbf16>
    %c0_118 = arith.constant 0 : index
    %c0_119 = arith.constant 0 : index
    %115 = vector.load %arg18[%c0_118, %c0_119] : memref<384x128xbf16, #tpu.memory_space<vmem>>, vector<384x128xbf16>
    %cst_120 = arith.constant dense<0.000000e+00> : vector<32x128xf32>
    %116 = tpu.matmul %114, %115, %cst_120 {dimension_numbers = #tpu.dot_dimension_numbers<[1], [0], [0], [1], [0, 0, 1, 1], [], []>} : vector<32x384xbf16>, vector<384x128xbf16>, vector<32x128xf32> -> vector<32x128xf32>
    %c0_121 = arith.constant 0 : index
    %c0_122 = arith.constant 0 : index
    %117 = vector.load %arg19[%c0_121, %c0_122] : memref<1x128xf32, #tpu.memory_space<vmem>>, vector<1x128xf32>
    %118 = vector.broadcast %117 : vector<1x128xf32> to vector<32x128xf32>
    %119 = arith.addf %116, %118 : vector<32x128xf32>
    %cst_123 = arith.constant 0.000000e+00 : f32
    %120 = vector.broadcast %cst_123 : f32 to vector<32x128xf32>
    %121 = arith.maximumf %119, %120 : vector<32x128xf32>
    %cst_124 = arith.constant dense<0.000000e+00> : vector<32xf32>
    %122 = vector.multi_reduction <add>, %121, %cst_124 [1] : vector<32x128xf32> to vector<32xf32>
    %123 = vector.shape_cast %122 : vector<32xf32> to vector<32x1xf32>
    %cst_125 = arith.constant 3.125000e-02 : f32
    %124 = vector.broadcast %cst_125 : f32 to vector<32x1xf32>
    %125 = arith.mulf %123, %124 : vector<32x1xf32>
    %126 = arith.mulf %121, %121 : vector<32x128xf32>
    %cst_126 = arith.constant dense<0.000000e+00> : vector<32xf32>
    %127 = vector.multi_reduction <add>, %126, %cst_126 [1] : vector<32x128xf32> to vector<32xf32>
    %128 = vector.shape_cast %127 : vector<32xf32> to vector<32x1xf32>
    %cst_127 = arith.constant 3.125000e-02 : f32
    %129 = vector.broadcast %cst_127 : f32 to vector<32x1xf32>
    %130 = arith.mulf %128, %129 : vector<32x1xf32>
    %131 = arith.mulf %125, %125 : vector<32x1xf32>
    %132 = arith.subf %130, %131 : vector<32x1xf32>
    %133 = vector.broadcast %125 : vector<32x1xf32> to vector<32x128xf32>
    %134 = arith.subf %121, %133 : vector<32x128xf32>
    %cst_128 = arith.constant 9.99999974E-6 : f32
    %135 = vector.broadcast %cst_128 : f32 to vector<32x1xf32>
    %136 = arith.addf %132, %135 : vector<32x1xf32>
    %137 = math.rsqrt %136 : vector<32x1xf32>
    %138 = vector.broadcast %137 : vector<32x1xf32> to vector<32x128xf32>
    %139 = arith.mulf %134, %138 : vector<32x128xf32>
    %c0_129 = arith.constant 0 : index
    %c0_130 = arith.constant 0 : index
    %140 = vector.load %arg20[%c0_129, %c0_130] : memref<1x128xf32, #tpu.memory_space<vmem>>, vector<1x128xf32>
    %141 = vector.broadcast %140 : vector<1x128xf32> to vector<32x128xf32>
    %142 = arith.mulf %139, %141 : vector<32x128xf32>
    %c0_131 = arith.constant 0 : index
    %c0_132 = arith.constant 0 : index
    %143 = vector.load %arg21[%c0_131, %c0_132] : memref<1x128xf32, #tpu.memory_space<vmem>>, vector<1x128xf32>
    %144 = vector.broadcast %143 : vector<1x128xf32> to vector<32x128xf32>
    %145 = arith.addf %142, %144 : vector<32x128xf32>
    %146 = arith.truncf %145 : vector<32x128xf32> to vector<32x128xbf16>
    %c0_133 = arith.constant 0 : index
    %c0_134 = arith.constant 0 : index
    %147 = vector.load %arg22[%c0_133, %c0_134] : memref<128x128xbf16, #tpu.memory_space<vmem>>, vector<128x128xbf16>
    %cst_135 = arith.constant dense<0.000000e+00> : vector<32x128xf32>
    %148 = tpu.matmul %146, %147, %cst_135 {dimension_numbers = #tpu.dot_dimension_numbers<[1], [0], [0], [1], [0, 0, 1, 1], [], []>} : vector<32x128xbf16>, vector<128x128xbf16>, vector<32x128xf32> -> vector<32x128xf32>
    %c0_136 = arith.constant 0 : index
    %c0_137 = arith.constant 0 : index
    %149 = vector.load %arg23[%c0_136, %c0_137] : memref<1x128xf32, #tpu.memory_space<vmem>>, vector<1x128xf32>
    %150 = vector.broadcast %149 : vector<1x128xf32> to vector<32x128xf32>
    %151 = arith.addf %148, %150 : vector<32x128xf32>
    %152 = vector.shape_cast %151 : vector<32x128xf32> to vector<2x16x128xf32>
    %c0_138 = arith.constant 0 : index
    %c2_139 = arith.constant 2 : index
    %c0_140 = arith.constant 0 : index
    %153 = vector.load %arg43[%c0_138, %c2_139, %c0_140] : memref<2x20x128xf32, #tpu.memory_space<vmem>>, vector<2x16x128xf32>
    tpu.vector_store %arg43[%c0_138, %c2_139, %c0_140], %152 {strides = array<i32>} : memref<2x20x128xf32, #tpu.memory_space<vmem>>, vector<2x16x128xf32>,
    %c0_141 = arith.constant 0 : index
    %c1_142 = arith.constant 1 : index
    %c0_143 = arith.constant 0 : index
    %154 = vector.load %arg43[%c0_141, %c1_142, %c0_143] : memref<2x20x128xf32, #tpu.memory_space<vmem>>, vector<2x16x128xf32>
    %c0_144 = arith.constant 0 : index
    %c2_145 = arith.constant 2 : index
    %c0_146 = arith.constant 0 : index
    %155 = vector.load %arg43[%c0_144, %c2_145, %c0_146] : memref<2x20x128xf32, #tpu.memory_space<vmem>>, vector<2x16x128xf32>
    %c0_147 = arith.constant 0 : index
    %c3_148 = arith.constant 3 : index
    %c0_149 = arith.constant 0 : index
    %156 = vector.load %arg43[%c0_147, %c3_148, %c0_149] : memref<2x20x128xf32, #tpu.memory_space<vmem>>, vector<2x16x128xf32>
    %157 = tpu.concatenate %154, %155, %156 in 2 : vector<2x16x128xf32>, vector<2x16x128xf32>, vector<2x16x128xf32> -> vector<2x16x384xf32>
    %158 = vector.shape_cast %157 : vector<2x16x384xf32> to vector<32x384xf32>
    %159 = arith.truncf %158 : vector<32x384xf32> to vector<32x384xbf16>
    %c0_150 = arith.constant 0 : index
    %c0_151 = arith.constant 0 : index
    %160 = vector.load %arg24[%c0_150, %c0_151] : memref<384x128xbf16, #tpu.memory_space<vmem>>, vector<384x128xbf16>
    %cst_152 = arith.constant dense<0.000000e+00> : vector<32x128xf32>
    %161 = tpu.matmul %159, %160, %cst_152 {dimension_numbers = #tpu.dot_dimension_numbers<[1], [0], [0], [1], [0, 0, 1, 1], [], []>} : vector<32x384xbf16>, vector<384x128xbf16>, vector<32x128xf32> -> vector<32x128xf32>
    %c0_153 = arith.constant 0 : index
    %c0_154 = arith.constant 0 : index
    %162 = vector.load %arg25[%c0_153, %c0_154] : memref<1x128xf32, #tpu.memory_space<vmem>>, vector<1x128xf32>
    %163 = vector.broadcast %162 : vector<1x128xf32> to vector<32x128xf32>
    %164 = arith.addf %161, %163 : vector<32x128xf32>
    %165 = vector.shape_cast %164 : vector<32x128xf32> to vector<2x16x128xf32>
    %c0_155 = arith.constant 0 : index
    %c2_156 = arith.constant 2 : index
    %c0_157 = arith.constant 0 : index
    %166 = vector.load %arg43[%c0_155, %c2_156, %c0_157] : memref<2x20x128xf32, #tpu.memory_space<vmem>>, vector<2x16x128xf32>
    tpu.vector_store %arg43[%c0_155, %c2_156, %c0_157], %165 {strides = array<i32>} : memref<2x20x128xf32, #tpu.memory_space<vmem>>, vector<2x16x128xf32>,
    %c0_158 = arith.constant 0 : index
    %c1_159 = arith.constant 1 : index
    %c0_160 = arith.constant 0 : index
    %167 = vector.load %arg43[%c0_158, %c1_159, %c0_160] : memref<2x20x128xf32, #tpu.memory_space<vmem>>, vector<2x16x128xf32>
    %c0_161 = arith.constant 0 : index
    %c2_162 = arith.constant 2 : index
    %c0_163 = arith.constant 0 : index
    %168 = vector.load %arg43[%c0_161, %c2_162, %c0_163] : memref<2x20x128xf32, #tpu.memory_space<vmem>>, vector<2x16x128xf32>
    %c0_164 = arith.constant 0 : index
    %c3_165 = arith.constant 3 : index
    %c0_166 = arith.constant 0 : index
    %169 = vector.load %arg43[%c0_164, %c3_165, %c0_166] : memref<2x20x128xf32, #tpu.memory_space<vmem>>, vector<2x16x128xf32>
    %170 = tpu.concatenate %167, %168, %169 in 2 : vector<2x16x128xf32>, vector<2x16x128xf32>, vector<2x16x128xf32> -> vector<2x16x384xf32>
    %171 = vector.shape_cast %170 : vector<2x16x384xf32> to vector<32x384xf32>
    %172 = arith.truncf %171 : vector<32x384xf32> to vector<32x384xbf16>
    %c0_167 = arith.constant 0 : index
    %c0_168 = arith.constant 0 : index
    %173 = vector.load %arg26[%c0_167, %c0_168] : memref<384x128xbf16, #tpu.memory_space<vmem>>, vector<384x128xbf16>
    %cst_169 = arith.constant dense<0.000000e+00> : vector<32x128xf32>
    %174 = tpu.matmul %172, %173, %cst_169 {dimension_numbers = #tpu.dot_dimension_numbers<[1], [0], [0], [1], [0, 0, 1, 1], [], []>} : vector<32x384xbf16>, vector<384x128xbf16>, vector<32x128xf32> -> vector<32x128xf32>
    %c0_170 = arith.constant 0 : index
    %c0_171 = arith.constant 0 : index
    %175 = vector.load %arg27[%c0_170, %c0_171] : memref<1x128xf32, #tpu.memory_space<vmem>>, vector<1x128xf32>
    %176 = vector.broadcast %175 : vector<1x128xf32> to vector<32x128xf32>
    %177 = arith.addf %174, %176 : vector<32x128xf32>
    %178 = vector.shape_cast %177 : vector<32x128xf32> to vector<2x16x128xf32>
    %c0_172 = arith.constant 0 : index
    %c2_173 = arith.constant 2 : index
    %c0_174 = arith.constant 0 : index
    %179 = vector.load %arg43[%c0_172, %c2_173, %c0_174] : memref<2x20x128xf32, #tpu.memory_space<vmem>>, vector<2x16x128xf32>
    tpu.vector_store %arg43[%c0_172, %c2_173, %c0_174], %178 {strides = array<i32>} : memref<2x20x128xf32, #tpu.memory_space<vmem>>, vector<2x16x128xf32>,
    %c0_175 = arith.constant 0 : index
    %c0_176 = arith.constant 0 : index
    %c0_177 = arith.constant 0 : index
    %180 = vector.load %arg43[%c0_175, %c0_176, %c0_177] : memref<2x20x128xf32, #tpu.memory_space<vmem>>, vector<2x16x128xf32>
    %c0_178 = arith.constant 0 : index
    %c2_179 = arith.constant 2 : index
    %c0_180 = arith.constant 0 : index
    %181 = vector.load %arg43[%c0_178, %c2_179, %c0_180] : memref<2x20x128xf32, #tpu.memory_space<vmem>>, vector<2x16x128xf32>
    %c0_181 = arith.constant 0 : index
    %c4_182 = arith.constant 4 : index
    %c0_183 = arith.constant 0 : index
    %182 = vector.load %arg43[%c0_181, %c4_182, %c0_183] : memref<2x20x128xf32, #tpu.memory_space<vmem>>, vector<2x16x128xf32>
    %183 = tpu.concatenate %180, %181, %182 in 2 : vector<2x16x128xf32>, vector<2x16x128xf32>, vector<2x16x128xf32> -> vector<2x16x384xf32>
    %184 = vector.shape_cast %183 : vector<2x16x384xf32> to vector<32x384xf32>
    %185 = arith.truncf %184 : vector<32x384xf32> to vector<32x384xbf16>
    %c0_184 = arith.constant 0 : index
    %c0_185 = arith.constant 0 : index
    %186 = vector.load %arg28[%c0_184, %c0_185] : memref<384x128xbf16, #tpu.memory_space<vmem>>, vector<384x128xbf16>
    %cst_186 = arith.constant dense<0.000000e+00> : vector<32x128xf32>
    %187 = tpu.matmul %185, %186, %cst_186 {dimension_numbers = #tpu.dot_dimension_numbers<[1], [0], [0], [1], [0, 0, 1, 1], [], []>} : vector<32x384xbf16>, vector<384x128xbf16>, vector<32x128xf32> -> vector<32x128xf32>
    %c0_187 = arith.constant 0 : index
    %c0_188 = arith.constant 0 : index
    %188 = vector.load %arg29[%c0_187, %c0_188] : memref<1x128xf32, #tpu.memory_space<vmem>>, vector<1x128xf32>
    %189 = vector.broadcast %188 : vector<1x128xf32> to vector<32x128xf32>
    %190 = arith.addf %187, %189 : vector<32x128xf32>
    %cst_189 = arith.constant 0.000000e+00 : f32
    %191 = vector.broadcast %cst_189 : f32 to vector<32x128xf32>
    %192 = arith.maximumf %190, %191 : vector<32x128xf32>
    %cst_190 = arith.constant dense<0.000000e+00> : vector<32xf32>
    %193 = vector.multi_reduction <add>, %192, %cst_190 [1] : vector<32x128xf32> to vector<32xf32>
    %194 = vector.shape_cast %193 : vector<32xf32> to vector<32x1xf32>
    %cst_191 = arith.constant 3.125000e-02 : f32
    %195 = vector.broadcast %cst_191 : f32 to vector<32x1xf32>
    %196 = arith.mulf %194, %195 : vector<32x1xf32>
    %197 = arith.mulf %192, %192 : vector<32x128xf32>
    %cst_192 = arith.constant dense<0.000000e+00> : vector<32xf32>
    %198 = vector.multi_reduction <add>, %197, %cst_192 [1] : vector<32x128xf32> to vector<32xf32>
    %199 = vector.shape_cast %198 : vector<32xf32> to vector<32x1xf32>
    %cst_193 = arith.constant 3.125000e-02 : f32
    %200 = vector.broadcast %cst_193 : f32 to vector<32x1xf32>
    %201 = arith.mulf %199, %200 : vector<32x1xf32>
    %202 = arith.mulf %196, %196 : vector<32x1xf32>
    %203 = arith.subf %201, %202 : vector<32x1xf32>
    %204 = vector.broadcast %196 : vector<32x1xf32> to vector<32x128xf32>
    %205 = arith.subf %192, %204 : vector<32x128xf32>
    %cst_194 = arith.constant 9.99999974E-6 : f32
    %206 = vector.broadcast %cst_194 : f32 to vector<32x1xf32>
    %207 = arith.addf %203, %206 : vector<32x1xf32>
    %208 = math.rsqrt %207 : vector<32x1xf32>
    %209 = vector.broadcast %208 : vector<32x1xf32> to vector<32x128xf32>
    %210 = arith.mulf %205, %209 : vector<32x128xf32>
    %c0_195 = arith.constant 0 : index
    %c0_196 = arith.constant 0 : index
    %211 = vector.load %arg30[%c0_195, %c0_196] : memref<1x128xf32, #tpu.memory_space<vmem>>, vector<1x128xf32>
    %212 = vector.broadcast %211 : vector<1x128xf32> to vector<32x128xf32>
    %213 = arith.mulf %210, %212 : vector<32x128xf32>
    %c0_197 = arith.constant 0 : index
    %c0_198 = arith.constant 0 : index
    %214 = vector.load %arg31[%c0_197, %c0_198] : memref<1x128xf32, #tpu.memory_space<vmem>>, vector<1x128xf32>
    %215 = vector.broadcast %214 : vector<1x128xf32> to vector<32x128xf32>
    %216 = arith.addf %213, %215 : vector<32x128xf32>
    %217 = arith.truncf %216 : vector<32x128xf32> to vector<32x128xbf16>
    %c0_199 = arith.constant 0 : index
    %c0_200 = arith.constant 0 : index
    %218 = vector.load %arg32[%c0_199, %c0_200] : memref<128x128xbf16, #tpu.memory_space<vmem>>, vector<128x128xbf16>
    %cst_201 = arith.constant dense<0.000000e+00> : vector<32x128xf32>
    %219 = tpu.matmul %217, %218, %cst_201 {dimension_numbers = #tpu.dot_dimension_numbers<[1], [0], [0], [1], [0, 0, 1, 1], [], []>} : vector<32x128xbf16>, vector<128x128xbf16>, vector<32x128xf32> -> vector<32x128xf32>
    %c0_202 = arith.constant 0 : index
    %c0_203 = arith.constant 0 : index
    %220 = vector.load %arg33[%c0_202, %c0_203] : memref<1x128xf32, #tpu.memory_space<vmem>>, vector<1x128xf32>
    %221 = vector.broadcast %220 : vector<1x128xf32> to vector<32x128xf32>
    %222 = arith.addf %219, %221 : vector<32x128xf32>
    %223 = vector.shape_cast %222 : vector<32x128xf32> to vector<2x16x128xf32>
    %c0_204 = arith.constant 0 : index
    %c2_205 = arith.constant 2 : index
    %c0_206 = arith.constant 0 : index
    %224 = vector.load %arg43[%c0_204, %c2_205, %c0_206] : memref<2x20x128xf32, #tpu.memory_space<vmem>>, vector<2x16x128xf32>
    tpu.vector_store %arg43[%c0_204, %c2_205, %c0_206], %223 {strides = array<i32>} : memref<2x20x128xf32, #tpu.memory_space<vmem>>, vector<2x16x128xf32>,
    %c0_207 = arith.constant 0 : index
    %c1_208 = arith.constant 1 : index
    %c0_209 = arith.constant 0 : index
    %225 = vector.load %arg43[%c0_207, %c1_208, %c0_209] : memref<2x20x128xf32, #tpu.memory_space<vmem>>, vector<2x16x128xf32>
    %c0_210 = arith.constant 0 : index
    %c2_211 = arith.constant 2 : index
    %c0_212 = arith.constant 0 : index
    %226 = vector.load %arg43[%c0_210, %c2_211, %c0_212] : memref<2x20x128xf32, #tpu.memory_space<vmem>>, vector<2x16x128xf32>
    %c0_213 = arith.constant 0 : index
    %c3_214 = arith.constant 3 : index
    %c0_215 = arith.constant 0 : index
    %227 = vector.load %arg43[%c0_213, %c3_214, %c0_215] : memref<2x20x128xf32, #tpu.memory_space<vmem>>, vector<2x16x128xf32>
    %228 = tpu.concatenate %225, %226, %227 in 2 : vector<2x16x128xf32>, vector<2x16x128xf32>, vector<2x16x128xf32> -> vector<2x16x384xf32>
    %229 = vector.shape_cast %228 : vector<2x16x384xf32> to vector<32x384xf32>
    %230 = arith.truncf %229 : vector<32x384xf32> to vector<32x384xbf16>
    %c0_216 = arith.constant 0 : index
    %c0_217 = arith.constant 0 : index
    %231 = vector.load %arg34[%c0_216, %c0_217] : memref<384x128xbf16, #tpu.memory_space<vmem>>, vector<384x128xbf16>
    %cst_218 = arith.constant dense<0.000000e+00> : vector<32x128xf32>
    %232 = tpu.matmul %230, %231, %cst_218 {dimension_numbers = #tpu.dot_dimension_numbers<[1], [0], [0], [1], [0, 0, 1, 1], [], []>} : vector<32x384xbf16>, vector<384x128xbf16>, vector<32x128xf32> -> vector<32x128xf32>
    %c0_219 = arith.constant 0 : index
    %c0_220 = arith.constant 0 : index
    %233 = vector.load %arg35[%c0_219, %c0_220] : memref<1x128xf32, #tpu.memory_space<vmem>>, vector<1x128xf32>
    %234 = vector.broadcast %233 : vector<1x128xf32> to vector<32x128xf32>
    %235 = arith.addf %232, %234 : vector<32x128xf32>
    %236 = vector.shape_cast %235 : vector<32x128xf32> to vector<2x16x128xf32>
    %c0_221 = arith.constant 0 : index
    %c2_222 = arith.constant 2 : index
    %c0_223 = arith.constant 0 : index
    %237 = vector.load %arg43[%c0_221, %c2_222, %c0_223] : memref<2x20x128xf32, #tpu.memory_space<vmem>>, vector<2x16x128xf32>
    tpu.vector_store %arg43[%c0_221, %c2_222, %c0_223], %236 {strides = array<i32>} : memref<2x20x128xf32, #tpu.memory_space<vmem>>, vector<2x16x128xf32>,
    %c0_224 = arith.constant 0 : index
    %c1_225 = arith.constant 1 : index
    %c0_226 = arith.constant 0 : index
    %238 = vector.load %arg43[%c0_224, %c1_225, %c0_226] : memref<2x20x128xf32, #tpu.memory_space<vmem>>, vector<2x16x128xf32>
    %c0_227 = arith.constant 0 : index
    %c2_228 = arith.constant 2 : index
    %c0_229 = arith.constant 0 : index
    %239 = vector.load %arg43[%c0_227, %c2_228, %c0_229] : memref<2x20x128xf32, #tpu.memory_space<vmem>>, vector<2x16x128xf32>
    %c0_230 = arith.constant 0 : index
    %c3_231 = arith.constant 3 : index
    %c0_232 = arith.constant 0 : index
    %240 = vector.load %arg43[%c0_230, %c3_231, %c0_232] : memref<2x20x128xf32, #tpu.memory_space<vmem>>, vector<2x16x128xf32>
    %241 = tpu.concatenate %238, %239, %240 in 2 : vector<2x16x128xf32>, vector<2x16x128xf32>, vector<2x16x128xf32> -> vector<2x16x384xf32>
    %242 = vector.shape_cast %241 : vector<2x16x384xf32> to vector<32x384xf32>
    %243 = arith.truncf %242 : vector<32x384xf32> to vector<32x384xbf16>
    %c0_233 = arith.constant 0 : index
    %c0_234 = arith.constant 0 : index
    %244 = vector.load %arg36[%c0_233, %c0_234] : memref<384x128xbf16, #tpu.memory_space<vmem>>, vector<384x128xbf16>
    %cst_235 = arith.constant dense<0.000000e+00> : vector<32x128xf32>
    %245 = tpu.matmul %243, %244, %cst_235 {dimension_numbers = #tpu.dot_dimension_numbers<[1], [0], [0], [1], [0, 0, 1, 1], [], []>} : vector<32x384xbf16>, vector<384x128xbf16>, vector<32x128xf32> -> vector<32x128xf32>
    %c0_236 = arith.constant 0 : index
    %c0_237 = arith.constant 0 : index
    %246 = vector.load %arg37[%c0_236, %c0_237] : memref<1x128xf32, #tpu.memory_space<vmem>>, vector<1x128xf32>
    %247 = vector.broadcast %246 : vector<1x128xf32> to vector<32x128xf32>
    %248 = arith.addf %245, %247 : vector<32x128xf32>
    %249 = vector.shape_cast %248 : vector<32x128xf32> to vector<2x16x128xf32>
    %c0_238 = arith.constant 0 : index
    %c2_239 = arith.constant 2 : index
    %c0_240 = arith.constant 0 : index
    %250 = vector.load %arg43[%c0_238, %c2_239, %c0_240] : memref<2x20x128xf32, #tpu.memory_space<vmem>>, vector<2x16x128xf32>
    tpu.vector_store %arg43[%c0_238, %c2_239, %c0_240], %249 {strides = array<i32>} : memref<2x20x128xf32, #tpu.memory_space<vmem>>, vector<2x16x128xf32>,
    %c0_241 = arith.constant 0 : index
    %c0_242 = arith.constant 0 : index
    %c0_243 = arith.constant 0 : index
    %251 = vector.load %arg43[%c0_241, %c0_242, %c0_243] : memref<2x20x128xf32, #tpu.memory_space<vmem>>, vector<2x16x128xf32>
    %c0_244 = arith.constant 0 : index
    %c2_245 = arith.constant 2 : index
    %c0_246 = arith.constant 0 : index
    %252 = vector.load %arg43[%c0_244, %c2_245, %c0_246] : memref<2x20x128xf32, #tpu.memory_space<vmem>>, vector<2x16x128xf32>
    %c0_247 = arith.constant 0 : index
    %c4_248 = arith.constant 4 : index
    %c0_249 = arith.constant 0 : index
    %253 = vector.load %arg43[%c0_247, %c4_248, %c0_249] : memref<2x20x128xf32, #tpu.memory_space<vmem>>, vector<2x16x128xf32>
    %254 = tpu.concatenate %251, %252, %253 in 2 : vector<2x16x128xf32>, vector<2x16x128xf32>, vector<2x16x128xf32> -> vector<2x16x384xf32>
    %255 = vector.shape_cast %254 : vector<2x16x384xf32> to vector<32x384xf32>
    %256 = arith.truncf %255 : vector<32x384xf32> to vector<32x384xbf16>
    %c0_250 = arith.constant 0 : index
    %c0_251 = arith.constant 0 : index
    %257 = vector.load %arg38[%c0_250, %c0_251] : memref<384x128xbf16, #tpu.memory_space<vmem>>, vector<384x128xbf16>
    %cst_252 = arith.constant dense<0.000000e+00> : vector<32x128xf32>
    %258 = tpu.matmul %256, %257, %cst_252 {dimension_numbers = #tpu.dot_dimension_numbers<[1], [0], [0], [1], [0, 0, 1, 1], [], []>} : vector<32x384xbf16>, vector<384x128xbf16>, vector<32x128xf32> -> vector<32x128xf32>
    %c0_253 = arith.constant 0 : index
    %c0_254 = arith.constant 0 : index
    %259 = vector.load %arg39[%c0_253, %c0_254] : memref<1x128xf32, #tpu.memory_space<vmem>>, vector<1x128xf32>
    %260 = vector.broadcast %259 : vector<1x128xf32> to vector<32x128xf32>
    %261 = arith.addf %258, %260 : vector<32x128xf32>
    %cst_255 = arith.constant 0.000000e+00 : f32
    %262 = vector.broadcast %cst_255 : f32 to vector<32x128xf32>
    %263 = arith.maximumf %261, %262 : vector<32x128xf32>
    %cst_256 = arith.constant dense<0.000000e+00> : vector<32xf32>
    %264 = vector.multi_reduction <add>, %263, %cst_256 [1] : vector<32x128xf32> to vector<32xf32>
    %265 = vector.shape_cast %264 : vector<32xf32> to vector<32x1xf32>
    %cst_257 = arith.constant 3.125000e-02 : f32
    %266 = vector.broadcast %cst_257 : f32 to vector<32x1xf32>
    %267 = arith.mulf %265, %266 : vector<32x1xf32>
    %268 = arith.mulf %263, %263 : vector<32x128xf32>
    %cst_258 = arith.constant dense<0.000000e+00> : vector<32xf32>
    %269 = vector.multi_reduction <add>, %268, %cst_258 [1] : vector<32x128xf32> to vector<32xf32>
    %270 = vector.shape_cast %269 : vector<32xf32> to vector<32x1xf32>
    %cst_259 = arith.constant 3.125000e-02 : f32
    %271 = vector.broadcast %cst_259 : f32 to vector<32x1xf32>
    %272 = arith.mulf %270, %271 : vector<32x1xf32>
    %273 = arith.mulf %267, %267 : vector<32x1xf32>
    %274 = arith.subf %272, %273 : vector<32x1xf32>
    %275 = vector.broadcast %267 : vector<32x1xf32> to vector<32x128xf32>
    %276 = arith.subf %263, %275 : vector<32x128xf32>
    %cst_260 = arith.constant 9.99999974E-6 : f32
    %277 = vector.broadcast %cst_260 : f32 to vector<32x1xf32>
    %278 = arith.addf %274, %277 : vector<32x1xf32>
    %279 = math.rsqrt %278 : vector<32x1xf32>
    %280 = vector.broadcast %279 : vector<32x1xf32> to vector<32x128xf32>
    %281 = arith.mulf %276, %280 : vector<32x128xf32>
    %c0_261 = arith.constant 0 : index
    %c0_262 = arith.constant 0 : index
    %282 = vector.load %arg40[%c0_261, %c0_262] : memref<1x128xf32, #tpu.memory_space<vmem>>, vector<1x128xf32>
    %283 = vector.broadcast %282 : vector<1x128xf32> to vector<32x128xf32>
    %284 = arith.mulf %281, %283 : vector<32x128xf32>
    %c0_263 = arith.constant 0 : index
    %c0_264 = arith.constant 0 : index
    %285 = vector.load %arg41[%c0_263, %c0_264] : memref<1x128xf32, #tpu.memory_space<vmem>>, vector<1x128xf32>
    %286 = vector.broadcast %285 : vector<1x128xf32> to vector<32x128xf32>
    %287 = arith.addf %284, %286 : vector<32x128xf32>
    %288 = vector.shape_cast %287 : vector<32x128xf32> to vector<2x16x128xf32>
    %c0_265 = arith.constant 0 : index
    %c0_266 = arith.constant 0 : index
    %c0_267 = arith.constant 0 : index
    %289 = vector.load %arg42[%c0_265, %c0_266, %c0_267] : memref<2x16x128xf32, #tpu.memory_space<vmem>>, vector<2x16x128xf32>
    tpu.vector_store %arg42[%c0_265, %c0_266, %c0_267], %288 {strides = array<i32>} : memref<2x16x128xf32, #tpu.memory_space<vmem>>, vector<2x16x128xf32>,
    return
  }
  func.func @transform_0(%arg0: i32) -> (i32, i32, i32) {
    %c0_i32 = arith.constant 0 : i32
    %c0_i32_0 = arith.constant 0 : i32
    %c0_i32_1 = arith.constant 0 : i32
    return %arg0, %c0_i32, %c0_i32_0 : i32, i32, i32
  }
  func.func @transform_1(%arg0: i32) -> (i32, i32) {
    %c0_i32 = arith.constant 0 : i32
    %c0_i32_0 = arith.constant 0 : i32
    %c0_i32_1 = arith.constant 0 : i32
    return %c0_i32, %c0_i32_0 : i32, i32
  }
  func.func @transform_2(%arg0: i32) -> (i32, i32) {
    %c0_i32 = arith.constant 0 : i32
    %c0_i32_0 = arith.constant 0 : i32
    %c0_i32_1 = arith.constant 0 : i32
    return %c0_i32, %c0_i32_0 : i32, i32
  }
  func.func @transform_3(%arg0: i32) -> (i32, i32) {
    %c0_i32 = arith.constant 0 : i32
    %c0_i32_0 = arith.constant 0 : i32
    %c0_i32_1 = arith.constant 0 : i32
    return %c0_i32, %c0_i32_0 : i32, i32
  }
  func.func @transform_4(%arg0: i32) -> (i32, i32) {
    %c0_i32 = arith.constant 0 : i32
    %c0_i32_0 = arith.constant 0 : i32
    %c0_i32_1 = arith.constant 0 : i32
    return %c0_i32, %c0_i32_0 : i32, i32
  }
  func.func @transform_5(%arg0: i32) -> (i32, i32) {
    %c0_i32 = arith.constant 0 : i32
    %c0_i32_0 = arith.constant 0 : i32
    %c0_i32_1 = arith.constant 0 : i32
    return %c0_i32, %c0_i32_0 : i32, i32
  }
  func.func @transform_6(%arg0: i32) -> (i32, i32) {
    %c0_i32 = arith.constant 0 : i32
    %c0_i32_0 = arith.constant 0 : i32
    %c0_i32_1 = arith.constant 0 : i32
    return %c0_i32, %c0_i32_0 : i32, i32
  }
  func.func @transform_7(%arg0: i32) -> (i32, i32) {
    %c0_i32 = arith.constant 0 : i32
    %c0_i32_0 = arith.constant 0 : i32
    %c0_i32_1 = arith.constant 0 : i32
    return %c0_i32, %c0_i32_0 : i32, i32
  }
  func.func @transform_8(%arg0: i32) -> (i32, i32) {
    %c0_i32 = arith.constant 0 : i32
    %c0_i32_0 = arith.constant 0 : i32
    %c0_i32_1 = arith.constant 0 : i32
    return %c0_i32, %c0_i32_0 : i32, i32
  }
  func.func @transform_9(%arg0: i32) -> (i32, i32) {
    %c0_i32 = arith.constant 0 : i32
    %c0_i32_0 = arith.constant 0 : i32
    %c0_i32_1 = arith.constant 0 : i32
    return %c0_i32, %c0_i32_0 : i32, i32
  }
  func.func @transform_10(%arg0: i32) -> (i32, i32) {
    %c0_i32 = arith.constant 0 : i32
    %c0_i32_0 = arith.constant 0 : i32
    %c0_i32_1 = arith.constant 0 : i32
    return %c0_i32, %c0_i32_0 : i32, i32
  }
  func.func @transform_11(%arg0: i32) -> (i32, i32) {
    %c0_i32 = arith.constant 0 : i32
    %c0_i32_0 = arith.constant 0 : i32
    %c0_i32_1 = arith.constant 0 : i32
    return %c0_i32, %c0_i32_0 : i32, i32
  }
  func.func @transform_12(%arg0: i32) -> (i32, i32) {
    %c0_i32 = arith.constant 0 : i32
    %c0_i32_0 = arith.constant 0 : i32
    %c0_i32_1 = arith.constant 0 : i32
    return %c0_i32, %c0_i32_0 : i32, i32
  }
  func.func @transform_13(%arg0: i32) -> (i32, i32) {
    %c0_i32 = arith.constant 0 : i32
    %c0_i32_0 = arith.constant 0 : i32
    %c0_i32_1 = arith.constant 0 : i32
    return %c0_i32, %c0_i32_0 : i32, i32
  }
  func.func @transform_14(%arg0: i32) -> (i32, i32) {
    %c0_i32 = arith.constant 0 : i32
    %c0_i32_0 = arith.constant 0 : i32
    %c0_i32_1 = arith.constant 0 : i32
    return %c0_i32, %c0_i32_0 : i32, i32
  }
  func.func @transform_15(%arg0: i32) -> (i32, i32) {
    %c0_i32 = arith.constant 0 : i32
    %c0_i32_0 = arith.constant 0 : i32
    %c0_i32_1 = arith.constant 0 : i32
    return %c0_i32, %c0_i32_0 : i32, i32
  }
  func.func @transform_16(%arg0: i32) -> (i32, i32) {
    %c0_i32 = arith.constant 0 : i32
    %c0_i32_0 = arith.constant 0 : i32
    %c0_i32_1 = arith.constant 0 : i32
    return %c0_i32, %c0_i32_0 : i32, i32
  }
  func.func @transform_17(%arg0: i32) -> (i32, i32) {
    %c0_i32 = arith.constant 0 : i32
    %c0_i32_0 = arith.constant 0 : i32
    %c0_i32_1 = arith.constant 0 : i32
    return %c0_i32, %c0_i32_0 : i32, i32
  }
  func.func @transform_18(%arg0: i32) -> (i32, i32) {
    %c0_i32 = arith.constant 0 : i32
    %c0_i32_0 = arith.constant 0 : i32
    %c0_i32_1 = arith.constant 0 : i32
    return %c0_i32, %c0_i32_0 : i32, i32
  }
  func.func @transform_19(%arg0: i32) -> (i32, i32) {
    %c0_i32 = arith.constant 0 : i32
    %c0_i32_0 = arith.constant 0 : i32
    %c0_i32_1 = arith.constant 0 : i32
    return %c0_i32, %c0_i32_0 : i32, i32
  }
  func.func @transform_20(%arg0: i32) -> (i32, i32) {
    %c0_i32 = arith.constant 0 : i32
    %c0_i32_0 = arith.constant 0 : i32
    %c0_i32_1 = arith.constant 0 : i32
    return %c0_i32, %c0_i32_0 : i32, i32
  }
  func.func @transform_21(%arg0: i32) -> (i32, i32) {
    %c0_i32 = arith.constant 0 : i32
    %c0_i32_0 = arith.constant 0 : i32
    %c0_i32_1 = arith.constant 0 : i32
    return %c0_i32, %c0_i32_0 : i32, i32
  }
  func.func @transform_22(%arg0: i32) -> (i32, i32) {
    %c0_i32 = arith.constant 0 : i32
    %c0_i32_0 = arith.constant 0 : i32
    %c0_i32_1 = arith.constant 0 : i32
    return %c0_i32, %c0_i32_0 : i32, i32
  }
  func.func @transform_23(%arg0: i32) -> (i32, i32) {
    %c0_i32 = arith.constant 0 : i32
    %c0_i32_0 = arith.constant 0 : i32
    %c0_i32_1 = arith.constant 0 : i32
    return %c0_i32, %c0_i32_0 : i32, i32
  }
  func.func @transform_24(%arg0: i32) -> (i32, i32) {
    %c0_i32 = arith.constant 0 : i32
    %c0_i32_0 = arith.constant 0 : i32
    %c0_i32_1 = arith.constant 0 : i32
    return %c0_i32, %c0_i32_0 : i32, i32
  }
  func.func @transform_25(%arg0: i32) -> (i32, i32) {
    %c0_i32 = arith.constant 0 : i32
    %c0_i32_0 = arith.constant 0 : i32
    %c0_i32_1 = arith.constant 0 : i32
    return %c0_i32, %c0_i32_0 : i32, i32
  }
  func.func @transform_26(%arg0: i32) -> (i32, i32) {
    %c0_i32 = arith.constant 0 : i32
    %c0_i32_0 = arith.constant 0 : i32
    %c0_i32_1 = arith.constant 0 : i32
    return %c0_i32, %c0_i32_0 : i32, i32
  }
  func.func @transform_27(%arg0: i32) -> (i32, i32) {
    %c0_i32 = arith.constant 0 : i32
    %c0_i32_0 = arith.constant 0 : i32
    %c0_i32_1 = arith.constant 0 : i32
    return %c0_i32, %c0_i32_0 : i32, i32
  }
  func.func @transform_28(%arg0: i32) -> (i32, i32) {
    %c0_i32 = arith.constant 0 : i32
    %c0_i32_0 = arith.constant 0 : i32
    %c0_i32_1 = arith.constant 0 : i32
    return %c0_i32, %c0_i32_0 : i32, i32
  }
  func.func @transform_29(%arg0: i32) -> (i32, i32) {
    %c0_i32 = arith.constant 0 : i32
    %c0_i32_0 = arith.constant 0 : i32
    %c0_i32_1 = arith.constant 0 : i32
    return %c0_i32, %c0_i32_0 : i32, i32
  }
  func.func @transform_30(%arg0: i32) -> (i32, i32) {
    %c0_i32 = arith.constant 0 : i32
    %c0_i32_0 = arith.constant 0 : i32
    %c0_i32_1 = arith.constant 0 : i32
    return %c0_i32, %c0_i32_0 : i32, i32
  }
  func.func @transform_31(%arg0: i32) -> (i32, i32) {
    %c0_i32 = arith.constant 0 : i32
    %c0_i32_0 = arith.constant 0 : i32
    %c0_i32_1 = arith.constant 0 : i32
    return %c0_i32, %c0_i32_0 : i32, i32
  }
  func.func @transform_32(%arg0: i32) -> (i32, i32) {
    %c0_i32 = arith.constant 0 : i32
    %c0_i32_0 = arith.constant 0 : i32
    %c0_i32_1 = arith.constant 0 : i32
    return %c0_i32, %c0_i32_0 : i32, i32
  }
  func.func @transform_33(%arg0: i32) -> (i32, i32) {
    %c0_i32 = arith.constant 0 : i32
    %c0_i32_0 = arith.constant 0 : i32
    %c0_i32_1 = arith.constant 0 : i32
    return %c0_i32, %c0_i32_0 : i32, i32
  }
  func.func @transform_34(%arg0: i32) -> (i32, i32) {
    %c0_i32 = arith.constant 0 : i32
    %c0_i32_0 = arith.constant 0 : i32
    %c0_i32_1 = arith.constant 0 : i32
    return %c0_i32, %c0_i32_0 : i32, i32
  }
  func.func @transform_35(%arg0: i32) -> (i32, i32) {
    %c0_i32 = arith.constant 0 : i32
    %c0_i32_0 = arith.constant 0 : i32
    %c0_i32_1 = arith.constant 0 : i32
    return %c0_i32, %c0_i32_0 : i32, i32
  }
  func.func @transform_36(%arg0: i32) -> (i32, i32) {
    %c0_i32 = arith.constant 0 : i32
    %c0_i32_0 = arith.constant 0 : i32
    %c0_i32_1 = arith.constant 0 : i32
    return %c0_i32, %c0_i32_0 : i32, i32
  }
  func.func @transform_37(%arg0: i32) -> (i32, i32) {
    %c0_i32 = arith.constant 0 : i32
    %c0_i32_0 = arith.constant 0 : i32
    %c0_i32_1 = arith.constant 0 : i32
    return %c0_i32, %c0_i32_0 : i32, i32
  }
  func.func @transform_38(%arg0: i32) -> (i32, i32) {
    %c0_i32 = arith.constant 0 : i32
    %c0_i32_0 = arith.constant 0 : i32
    %c0_i32_1 = arith.constant 0 : i32
    return %c0_i32, %c0_i32_0 : i32, i32
  }
  func.func @transform_39(%arg0: i32) -> (i32, i32) {
    %c0_i32 = arith.constant 0 : i32
    %c0_i32_0 = arith.constant 0 : i32
    %c0_i32_1 = arith.constant 0 : i32
    return %c0_i32, %c0_i32_0 : i32, i32
  }
  func.func @transform_40(%arg0: i32) -> (i32, i32) {
    %c0_i32 = arith.constant 0 : i32
    %c0_i32_0 = arith.constant 0 : i32
    %c0_i32_1 = arith.constant 0 : i32
    return %c0_i32, %c0_i32_0 : i32, i32
  }
  func.func @transform_41(%arg0: i32) -> (i32, i32, i32) {
    %c0_i32 = arith.constant 0 : i32
    %c0_i32_0 = arith.constant 0 : i32
    %c0_i32_1 = arith.constant 0 : i32
    return %arg0, %c0_i32, %c0_i32_0 : i32, i32, i32
  }
}

</mosaic_0001>

<bundles_post_ra>
// kernel: tpu_custom_call.1
= control target key start
LH: loop header
LB: loop body
LE: loop exit
PB: predicated region body
PF: predicated region fallthrough
CT: control target
= control target key end

     0   :  { %s6984_s6 = smov 1   ;;  %s6985_s10 = smov 2   ;;  %s7449_s0 = inlined_call_operand.smem [shape: u32[42], index: -1, kind: input, shape index: {}] }
   0x1   :  { %s7056_s5 = sld [smem:[%s7449_s0]]   ;;  %s6986_s14 = smov 3  }
   0x2   :  { %s7061_s9 = sld [smem:[%s7449_s0 + %s6984_s6]]   ;;  %s6987_s18 = smov 4  }
   0x3   :  { %s7066_s13 = sld [smem:[%s7449_s0 + %s6985_s10]]   ;;  %s6988_s22 = smov 5  }
   0x4   :  { %s7071_s17 = sld [smem:[%s7449_s0 + %s6986_s14]]   ;;  %s6989_s26 = smov 6  }
   0x5   :  { %s7076_s21 = sld [smem:[%s7449_s0 + %s6987_s18]]   ;;  %s6990_s30 = smov 7  }
   0x6   :  { %s7081_s25 = sld [smem:[%s7449_s0 + %s6988_s22]]   ;;  %s6991_s4 = smov 8  }
   0x7   :  { %s7086_s29 = sld [smem:[%s7449_s0 + %s6989_s26]]   ;;  %s6992_s10 = smov 9  }
   0x8   :  { %s7091_s3 = sld [smem:[%s7449_s0 + %s6990_s30]]   ;;  %s6993_s15 = smov 10  }
   0x9   :  { %7450 = sst [smem:[#allocation41_spill]] %s7066_s13  ;;  %s6994_s20 = smov 11  }
   0xa   :  { %s7096_s8 = sld [smem:[%s7449_s0 + %s6991_s4]]   ;;  %s6995_s26 = smov 12  }
   0xb   :  { %7451 = sst [smem:[#allocation42_spill]] %s7076_s21  ;;  %s6996_s1 = smov 13  }
   0xc   :  { %s7101_s14 = sld [smem:[%s7449_s0 + %s6992_s10]]   ;;  %s6997_s7 = smov 14  }
   0xd   :  { %7452 = sst [smem:[#allocation43_spill]] %s7086_s29  ;;  %s6999_s22 = smov 16  }
   0xe   :  { %s7106_s19 = sld [smem:[%s7449_s0 + %s6993_s15]]   ;;  %s6998_s15 = smov 15  }
   0xf   :  { %s7111_s24 = sld [smem:[%s7449_s0 + %s6994_s20]]   ;;  %s7000_s28 = smov 17  }
  0x10   :  { %7453 = sst [smem:[#allocation44_spill]] %s7096_s8 }
  0x11   :  { %s7116_s30 = sld [smem:[%s7449_s0 + %s6995_s26]]  }
  0x12   :  { %7454 = sst [smem:[#allocation45_spill]] %s7101_s14 }
  0x13   :  { %s7121_s6 = sld [smem:[%s7449_s0 + %s6996_s1]]  }
  0x14   :  { %7455 = sst [smem:[#allocation46_spill]] %s7106_s19 }
  0x15   :  { %s7126_s12 = sld [smem:[%s7449_s0 + %s6997_s7]]   ;;  %s7001_s7 = smov 18  }
  0x16   :  { %s7131_s20 = sld [smem:[%s7449_s0 + %s6998_s15]]   ;;  %s7002_s15 = smov 19  }
  0x17   :  { %7456 = sst [smem:[#allocation47_spill]] %s7116_s30 }
  0x18   :  { %s7136_s27 = sld [smem:[%s7449_s0 + %s6999_s22]]   ;;  %s7003_s22 = smov 20  }
  0x19   :  { %s7141_s4 = sld [smem:[%s7449_s0 + %s7000_s28]]   ;;  %s7004_s28 = smov 21  }
  0x1a   :  { %s7151_s30 = sld [smem:[%s7449_s0 + %s7002_s15]]   ;;  %s7006_s15 = smov 23  }
  0x1b   :  { %7457 = sst [smem:[#allocation48_spill]] %s7126_s12 }
  0x1c   :  { %s7146_s12 = sld [smem:[%s7449_s0 + %s7001_s7]]   ;;  %s7005_s7 = smov 22  }
  0x1d   :  { %s7161_s19 = sld [smem:[%s7449_s0 + %s7004_s28]]   ;;  %s7008_s28 = smov 25  }
  0x1e   :  { %7458 = sst [smem:[#allocation49_spill]] %s7136_s27 }
  0x1f   :  { %s7156_s27 = sld [smem:[%s7449_s0 + %s7003_s22]]   ;;  %s7007_s22 = smov 24  }
  0x20   :  { %7460 = sst [smem:[#allocation51_spill]] %s7151_s30 }
  0x21   :  { %s7171_s30 = sld [smem:[%s7449_s0 + %s7006_s15]]   ;;  %s7010_s15 = smov 27  }
  0x22   :  { %7459 = sst [smem:[#allocation50_spill]] %s7146_s12 }
  0x23   :  { %s7166_s12 = sld [smem:[%s7449_s0 + %s7005_s7]]   ;;  %s7009_s7 = smov 26  }
  0x24   :  { %s7181_s14 = sld [smem:[%s7449_s0 + %s7008_s28]]   ;;  %s7012_s28 = smov 29  }
  0x25   :  { %7461 = sst [smem:[#allocation52_spill]] %s7156_s27 }
  0x26   :  { %s7176_s27 = sld [smem:[%s7449_s0 + %s7007_s22]]   ;;  %s7011_s22 = smov 28  }
  0x27   :  { %s7191_s8 = sld [smem:[%s7449_s0 + %s7010_s15]]   ;;  %s7014_s15 = smov 31  }
  0x28   :  { %s7201_s29 = sld [smem:[%s7449_s0 + %s7012_s28]]   ;;  %s7016_s28 = smov 33  }
  0x29   :  { %7462 = sst [smem:[#allocation53_spill]] %s7166_s12 }
  0x2a   :  { %s7186_s12 = sld [smem:[%s7449_s0 + %s7009_s7]]   ;;  %s7013_s7 = smov 30  }
  0x2b   :  { %s7211_s21 = sld [smem:[%s7449_s0 + %s7014_s15]]   ;;  %s7018_s15 = smov 35  }
  0x2c   :  { %7463 = sst [smem:[#allocation54_spill]] %s7176_s27 }
  0x2d   :  { %7465 = sst [smem:[#allocation56_spill]] %s7191_s8 }
  0x2e   :  { %s7196_s27 = sld [smem:[%s7449_s0 + %s7011_s22]]   ;;  %s7015_s22 = smov 32  }
  0x2f   :  { %7467 = sst [smem:[#allocation58_spill]] %s7201_s29 }
  0x30   :  { %7464 = sst [smem:[#allocation55_spill]] %s7186_s12 }
  0x31   :  { %s7206_s12 = sld [smem:[%s7449_s0 + %s7013_s7]]   ;;  %s7017_s7 = smov 34  }
  0x32   :  { %s7221_s29 = sld [smem:[%s7449_s0 + %s7016_s28]]   ;;  %s7020_s28 = smov 37  }
  0x33   :  { %s7231_s13 = sld [smem:[%s7449_s0 + %s7018_s15]]   ;;  %s7022_s15 = smov 39  }
  0x34   :  { %7466 = sst [smem:[#allocation57_spill]] %s7196_s27 }
  0x35   :  { %s7216_s27 = sld [smem:[%s7449_s0 + %s7015_s22]]   ;;  %s7019_s22 = smov 36  }
  0x36   :  { %s7251_s8 = sld [smem:[%s7449_s0 + %s7022_s15]]  }
  0x37   :  { %7468 = sst [smem:[#allocation59_spill]] %s7206_s12 }
  0x38   :  { %7470 = sst [smem:[#allocation61_spill]] %s7221_s29 }
  0x39   :  { %s7226_s12 = sld [smem:[%s7449_s0 + %s7017_s7]]   ;;  %s7021_s7 = smov 38  }
  0x3a   :  { %s7241_s29 = sld [smem:[%s7449_s0 + %s7020_s28]]   ;;  %s7024_s28 = smov 41  }
  0x3b   :  { %7469 = sst [smem:[#allocation60_spill]] %s7216_s27 }
  0x3c   :  { %s7236_s27 = sld [smem:[%s7449_s0 + %s7019_s22]]   ;;  %s7023_s22 = smov 40  }
  0x3f   :  { %7471 = sst [smem:[#allocation62_spill]] %s7226_s12 }
  0x40   :  { %7473 = sst [smem:[#allocation64_spill]] %s7241_s29 }
  0x41   :  { %s7246_s12 = sld [smem:[%s7449_s0 + %s7021_s7]]  }
  0x42   :  { %7472 = sst [smem:[#allocation63_spill]] %s7236_s27 }
  0x43   :  { %s7256_s27 = sld [smem:[%s7449_s0 + %s7023_s22]]  }
  0x44   :  { %s7261_s29 = sld [smem:[%s7449_s0 + %s7024_s28]]  }
  0x45   :  { %88 = vsyncpa [#allocation4], 0 }
  0x46   :  { %89 = vsyncpa [#allocation7], 0 }
  0x47   :  { %90 = vsyncpa [#allocation10], 0 }
  0x48   :  { %91 = vsyncpa [#allocation13], 0 }
  0x49   :  { %92 = vsyncpa [#allocation16], 0 }
  0x4a   :  { %93 = vsyncpa [#allocation19], 0 }
  0x4b   :  { %94 = vsyncpa [#allocation22], 0 }
  0x4c   :  { %95 = vsyncpa [#allocation25], 0 }
  0x4d   :  { %96 = vsyncpa [#allocation28], 0 }
  0x4e   :  { %97 = vsyncpa [#allocation5], 0  ;;  %s7025_s7 = smov [#allocation6]  }
  0x4f   :  { %s115_s10 = sshll.u32 %s7025_s7, 4  ;;  %s116_s10 = int_to_ptr.vmem [resolvable:$true] %s115_s10 }
  0x50   :  { %s6612_s11 = scalar_lea.vmem %s116_s10, 128  ;;  %p6617_p1 = scmp.lt.s32.totalorder %s116_s10, %s116_s10 }
  0x51   :  { %p6613_p0 = scmp.ne.s32.totalorder %s116_s10, %s6612_s11  ;;  %p6618_p2 = scmp.lt.s32.totalorder %s6612_s11, %s6612_s11 }
  0x53   :  { %p6619_p3 = por %p6618_p2, %p6617_p1 }
  0x55   :  { %p6620_p4 = pnand %p6619_p3, %p6613_p0 }
  0x57   :  { %6623 = shalt.err (!%p6620_p4)
}
  0x58   :  { %s7026_s0 = smov 64   ;;  %s7027_s15 = smov 4  }
  0x59   :  { %121 = dma.hbm_to_vmem [thread:$0]  %s7061_s9, 128, %s116_s10, [#allocation7], %s7026_s0, %s7026_s0, %s7027_s15  }
  0x5a   :  { %s7028_s16 = smov [#allocation9]   ;;  %s7029_s22 = smov [#allocation12]  }
  0x5b   :  { %s143_s18 = sshll.u32 %s7028_s16, 4  ;;  %s175_s23 = sshll.u32 %s7029_s22, 4  ;;  %s144_s18 = int_to_ptr.vmem [resolvable:$true] %s143_s18  ;;  %s176_s23 = int_to_ptr.vmem [resolvable:$true] %s175_s23 }
  0x5c   :  { %s6632_s26 = scalar_lea.vmem %s144_s18, 3072  ;;  %p6637_p6 = scmp.lt.s32.totalorder %s144_s18, %s144_s18 }
  0x5d   :  { %p6633_p5 = scmp.ne.s32.totalorder %s144_s18, %s6632_s26  ;;  %p6638_p7 = scmp.lt.s32.totalorder %s6632_s26, %s6632_s26 }
  0x5f   :  { %p6639_p8 = por %p6638_p7, %p6637_p6 }
  0x61   :  { %p6640_p9 = pnand %p6639_p8, %p6633_p5 }
  0x63   :  { %6643 = shalt.err (!%p6640_p9)
}
  0x64   :  { %149 = dma.hbm_to_vmem [thread:$0]  %s7081_s25, 3072, %s144_s18, [#allocation10], %s7026_s0, %s7026_s0, %s7027_s15  }
  0x65   :  { %s6652_s28 = scalar_lea.vmem %s176_s23, 1024  ;;  %p6657_p11 = scmp.lt.s32.totalorder %s176_s23, %s176_s23 }
  0x66   :  { %p6653_p10 = scmp.ne.s32.totalorder %s176_s23, %s6652_s28  ;;  %p6658_p12 = scmp.lt.s32.totalorder %s6652_s28, %s6652_s28 }
  0x68   :  { %p6659_p13 = por %p6658_p12, %p6657_p11 }
  0x6a   :  { %p6660_p0 = pnand %p6659_p13, %p6653_p10 }
  0x6c   :  { %6663 = shalt.err (!%p6660_p0)
}
  0x6d   :  { %181 = dma.hbm_to_vmem [thread:$0]  %s7111_s24, 1024, %s176_s23, [#allocation13], %s7026_s0, %s7026_s0, %s7027_s15  }
  0x6e   :  { %s7030_s9 = smov [#allocation15]   ;;  %s7031_s2 = smov [#allocation18]  }
  0x6f   :  { %s203_s1 = sshll.u32 %s7030_s9, 4  ;;  %s235_s7 = sshll.u32 %s7031_s2, 4  ;;  %s204_s1 = int_to_ptr.vmem [resolvable:$true] %s203_s1  ;;  %s236_s7 = int_to_ptr.vmem [resolvable:$true] %s235_s7 }
  0x70   :  { %s6672_s10 = scalar_lea.vmem %s204_s1, 3072  ;;  %p6677_p2 = scmp.lt.s32.totalorder %s204_s1, %s204_s1 }
  0x71   :  { %p6673_p1 = scmp.ne.s32.totalorder %s204_s1, %s6672_s10  ;;  %p6678_p3 = scmp.lt.s32.totalorder %s6672_s10, %s6672_s10 }
  0x73   :  { %p6679_p4 = por %p6678_p3, %p6677_p2 }
  0x75   :  { %p6680_p5 = pnand %p6679_p4, %p6673_p1 }
  0x77   :  { %6683 = shalt.err (!%p6680_p5)
}
  0x78   :  { %209 = dma.hbm_to_vmem [thread:$0]  %s7131_s20, 3072, %s204_s1, [#allocation16], %s7026_s0, %s7026_s0, %s7027_s15  }
  0x79   :  { %s6692_s25 = scalar_lea.vmem %s236_s7, 1024  ;;  %p6697_p7 = scmp.lt.s32.totalorder %s236_s7, %s236_s7 }
  0x7a   :  { %p6693_p6 = scmp.ne.s32.totalorder %s236_s7, %s6692_s25  ;;  %p6698_p8 = scmp.lt.s32.totalorder %s6692_s25, %s6692_s25 }
  0x7c   :  { %p6699_p9 = por %p6698_p8, %p6697_p7 }
  0x7e   :  { %p6700_p10 = pnand %p6699_p9, %p6693_p6 }
  0x80   :  { %6703 = shalt.err (!%p6700_p10)
}
  0x81   :  { %241 = dma.hbm_to_vmem [thread:$0]  %s7161_s19, 1024, %s236_s7, [#allocation19], %s7026_s0, %s7026_s0, %s7027_s15  }
  0x82   :  { %s7032_s24 = smov [#allocation21]   ;;  %s7033_s16 = smov [#allocation24]  }
  0x83   :  { %s263_s11 = sshll.u32 %s7032_s24, 4  ;;  %s295_s18 = sshll.u32 %s7033_s16, 4  ;;  %s264_s11 = int_to_ptr.vmem [resolvable:$true] %s263_s11  ;;  %s296_s18 = int_to_ptr.vmem [resolvable:$true] %s295_s18 }
  0x84   :  { %s6712_s22 = scalar_lea.vmem %s264_s11, 3072  ;;  %p6717_p12 = scmp.lt.s32.totalorder %s264_s11, %s264_s11 }
  0x85   :  { %p6713_p11 = scmp.ne.s32.totalorder %s264_s11, %s6712_s22  ;;  %p6718_p13 = scmp.lt.s32.totalorder %s6712_s22, %s6712_s22 }
  0x87   :  { %p6719_p0 = por %p6718_p13, %p6717_p12 }
  0x89   :  { %p6720_p1 = pnand %p6719_p0, %p6713_p11 }
  0x8b   :  { %6723 = shalt.err (!%p6720_p1)
}
  0x8c   :  { %269 = dma.hbm_to_vmem [thread:$0]  %s7181_s14, 3072, %s264_s11, [#allocation22], %s7026_s0, %s7026_s0, %s7027_s15  }
  0x8d   :  { %s6732_s20 = scalar_lea.vmem %s296_s18, 1024  ;;  %p6737_p3 = scmp.lt.s32.totalorder %s296_s18, %s296_s18 }
  0x8e   :  { %p6733_p2 = scmp.ne.s32.totalorder %s296_s18, %s6732_s20  ;;  %p6738_p4 = scmp.lt.s32.totalorder %s6732_s20, %s6732_s20 }
  0x90   :  { %p6739_p5 = por %p6738_p4, %p6737_p3 }
  0x92   :  { %p6740_p6 = pnand %p6739_p5, %p6733_p2 }
  0x94   :  { %6743 = shalt.err (!%p6740_p6)
}
  0x95   :  { %301 = dma.hbm_to_vmem [thread:$0]  %s7211_s21, 1024, %s296_s18, [#allocation25], %s7026_s0, %s7026_s0, %s7027_s15  }
  0x96   :  { %s7034_s19 = smov [#allocation27]   ;;  %s7035_s26 = smov [#allocation3]  }
  0x97   :  { %s323_s23 = sshll.u32 %s7034_s19, 4  ;;  %s103_s28 = sshll.u32 %s7035_s26, 4  ;;  %s324_s23 = int_to_ptr.vmem [resolvable:$true] %s323_s23  ;;  %s104_s28 = int_to_ptr.vmem [resolvable:$true] %s103_s28 }
  0x98   :  { %s6752_s9 = scalar_lea.vmem %s324_s23, 3072  ;;  %p6757_p8 = scmp.lt.s32.totalorder %s324_s23, %s324_s23 }
  0x99   :  { %p6753_p7 = scmp.ne.s32.totalorder %s324_s23, %s6752_s9  ;;  %p6758_p9 = scmp.lt.s32.totalorder %s6752_s9, %s6752_s9 }
  0x9b   :  { %p6759_p10 = por %p6758_p9, %p6757_p8 }
  0x9d   :  { %p6760_p11 = pnand %p6759_p10, %p6753_p7 }
  0x9f   :  { %6763 = shalt.err (!%p6760_p11)
}
  0xa0   :  { %329 = dma.hbm_to_vmem [thread:$0]  %s7231_s13, 3072, %s324_s23, [#allocation28], %s7026_s0, %s7026_s0, %s7027_s15  }
  0xa1   :  { %s6772_s14 = scalar_lea.vmem %s104_s28, 512  ;;  %p6777_p13 = scmp.lt.s32.totalorder %s104_s28, %s104_s28 }
  0xa2   :  { %p6773_p12 = scmp.ne.s32.totalorder %s104_s28, %s6772_s14  ;;  %p6778_p0 = scmp.lt.s32.totalorder %s6772_s14, %s6772_s14 }
  0xa4   :  { %p6779_p1 = por %p6778_p0, %p6777_p13 }
  0xa6   :  { %p6780_p2 = pnand %p6779_p1, %p6773_p12 }
  0xa8   :  { %6783 = shalt.err (!%p6780_p2)
}
  0xa9   :  { %s7036_s21 = smov 128   ;;  %s7037_s1 = smov 8  }
  0xaa   :  { %109 = dma.hbm_to_vmem [thread:$0]  %s7056_s5, 512, %s104_s28, [#allocation4], %s7036_s21, %s7036_s21, %s7037_s1  }
  0xab   :  { %s7038_s2 = smov [#allocation8]   ;;  %s7039_s10 = smov [#allocation11]  }
  0xac   :  { %s129_s7 = sshll.u32 %s7038_s2, 4  ;;  %s157_s13 = sshll.u32 %s7039_s10, 4  ;;  %s130_s7 = int_to_ptr.vmem [resolvable:$true] %s129_s7  ;;  %s158_s13 = int_to_ptr.vmem [resolvable:$true] %s157_s13 }
  0xad   :  { %s6792_s25 = scalar_lea.vmem %s130_s7, 3072  ;;  %p6797_p4 = scmp.lt.s32.totalorder %s130_s7, %s130_s7 }
  0xae   :  { %p6793_p3 = scmp.ne.s32.totalorder %s130_s7, %s6792_s25  ;;  %p6798_p5 = scmp.lt.s32.totalorder %s6792_s25, %s6792_s25 }
  0xb0   :  { %p6799_p6 = por %p6798_p5, %p6797_p4 }
  0xb2   :  { %p6800_p7 = pnand %p6799_p6, %p6793_p3 }
  0xb4   :  { %6803 = shalt.err (!%p6800_p7)
}
  0xb5   :  { %135 = dma.hbm_to_vmem [thread:$0]  %s7071_s17, 3072, %s130_s7, [#allocation7], %s7026_s0, %s7026_s0, %s7027_s15  }
  0xb6   :  { %s6812_s24 = scalar_lea.vmem %s158_s13, 3072  ;;  %p6817_p9 = scmp.lt.s32.totalorder %s158_s13, %s158_s13 }
  0xb7   :  { %p6813_p8 = scmp.ne.s32.totalorder %s158_s13, %s6812_s24  ;;  %p6818_p10 = scmp.lt.s32.totalorder %s6812_s24, %s6812_s24 }
  0xb9   :  { %p6819_p11 = por %p6818_p10, %p6817_p9 }
  0xbb   :  { %p6820_p12 = pnand %p6819_p11, %p6813_p8 }
  0xbd   :  { %6823 = shalt.err (!%p6820_p12)
}
  0xbe   :  { %163 = dma.hbm_to_vmem [thread:$0]  %s7091_s3, 3072, %s158_s13, [#allocation10], %s7026_s0, %s7026_s0, %s7027_s15  }
  0xbf   :  { %s7040_s5 = smov [#allocation14]   ;;  %s7041_s16 = smov [#allocation17]  }
  0xc0   :  { %s189_s11 = sshll.u32 %s7040_s5, 4  ;;  %s217_s18 = sshll.u32 %s7041_s16, 4  ;;  %s190_s11 = int_to_ptr.vmem [resolvable:$true] %s189_s11  ;;  %s218_s18 = int_to_ptr.vmem [resolvable:$true] %s217_s18 }
  0xc1   :  { %s6832_s22 = scalar_lea.vmem %s190_s11, 3072  ;;  %p6837_p0 = scmp.lt.s32.totalorder %s190_s11, %s190_s11 }
  0xc2   :  { %p6833_p13 = scmp.ne.s32.totalorder %s190_s11, %s6832_s22  ;;  %p6838_p1 = scmp.lt.s32.totalorder %s6832_s22, %s6832_s22 }
  0xc4   :  { %p6839_p2 = por %p6838_p1, %p6837_p0 }
  0xc6   :  { %p6840_p3 = pnand %p6839_p2, %p6833_p13 }
  0xc8   :  { %6843 = shalt.err (!%p6840_p3)
}
  0xc9   :  { %195 = dma.hbm_to_vmem [thread:$0]  %s7121_s6, 3072, %s190_s11, [#allocation13], %s7026_s0, %s7026_s0, %s7027_s15  }
  0xca   :  { %s6852_s17 = scalar_lea.vmem %s218_s18, 3072  ;;  %p6857_p5 = scmp.lt.s32.totalorder %s218_s18, %s218_s18 }
  0xcb   :  { %p6853_p4 = scmp.ne.s32.totalorder %s218_s18, %s6852_s17  ;;  %p6858_p6 = scmp.lt.s32.totalorder %s6852_s17, %s6852_s17 }
  0xcd   :  { %p6859_p7 = por %p6858_p6, %p6857_p5 }
  0xcf   :  { %p6860_p8 = pnand %p6859_p7, %p6853_p4 }
  0xd1   :  { %6863 = shalt.err (!%p6860_p8)
}
  0xd2   :  { %223 = dma.hbm_to_vmem [thread:$0]  %s7141_s4, 3072, %s218_s18, [#allocation16], %s7026_s0, %s7026_s0, %s7027_s15  }
  0xd3   :  { %s7042_s3 = smov [#allocation20]   ;;  %s7043_s19 = smov [#allocation23]  }
  0xd4   :  { %s249_s20 = sshll.u32 %s7042_s3, 4  ;;  %s277_s23 = sshll.u32 %s7043_s19, 4  ;;  %s250_s20 = int_to_ptr.vmem [resolvable:$true] %s249_s20  ;;  %s278_s23 = int_to_ptr.vmem [resolvable:$true] %s277_s23 }
  0xd5   :  { %s6872_s26 = scalar_lea.vmem %s250_s20, 3072  ;;  %p6877_p10 = scmp.lt.s32.totalorder %s250_s20, %s250_s20 }
  0xd6   :  { %p6873_p9 = scmp.ne.s32.totalorder %s250_s20, %s6872_s26  ;;  %p6878_p11 = scmp.lt.s32.totalorder %s6872_s26, %s6872_s26 }
  0xd8   :  { %p6879_p12 = por %p6878_p11, %p6877_p10 }
  0xda   :  { %p6880_p13 = pnand %p6879_p12, %p6873_p9 }
  0xdc   :  { %6883 = shalt.err (!%p6880_p13)
}
  0xdd   :  { %255 = dma.hbm_to_vmem [thread:$0]  %s7171_s30, 3072, %s250_s20, [#allocation19], %s7026_s0, %s7026_s0, %s7027_s15  }
  0xde   :  { %s6892_s6 = scalar_lea.vmem %s278_s23, 3072  ;;  %p6897_p1 = scmp.lt.s32.totalorder %s278_s23, %s278_s23 }
  0xdf   :  { %p6893_p0 = scmp.ne.s32.totalorder %s278_s23, %s6892_s6  ;;  %p6898_p2 = scmp.lt.s32.totalorder %s6892_s6, %s6892_s6 }
  0xe1   :  { %p6899_p3 = por %p6898_p2, %p6897_p1 }
  0xe3   :  { %p6900_p4 = pnand %p6899_p3, %p6893_p0 }
  0xe5   :  { %6903 = shalt.err (!%p6900_p4)
}
  0xe6   :  { %s7474_s4 = sld [smem:[#allocation56_spill]]  ;;  %s7044_s28 = smov [#allocation26]  }
  0xe7   :  { %s309_s9 = sshll.u32 %s7044_s28, 4  ;;  %s7045_s14 = smov [#allocation29]   ;;  %s310_s9 = int_to_ptr.vmem [resolvable:$true] %s309_s9 }
  0xe8   :  { %s337_s2 = sshll.u32 %s7045_s14, 4  ;;  %s6912_s7 = scalar_lea.vmem %s310_s9, 3072  ;;  %s338_s2 = int_to_ptr.vmem [resolvable:$true] %s337_s2 }
  0xe9   :  { %p6913_p5 = scmp.ne.s32.totalorder %s310_s9, %s6912_s7  ;;  %p6917_p6 = scmp.lt.s32.totalorder %s310_s9, %s310_s9 }
  0xea   :  { %p6918_p7 = scmp.lt.s32.totalorder %s6912_s7, %s6912_s7 }
  0xec   :  { %283 = dma.hbm_to_vmem [thread:$0]  %s7474_s4, 3072, %s278_s23, [#allocation22], %s7026_s0, %s7026_s0, %s7027_s15  }
  0xed   :  { %p6919_p8 = por %p6918_p7, %p6917_p6 }
  0xef   :  { %p6920_p9 = pnand %p6919_p8, %p6913_p5 }
  0xf1   :  { %6923 = shalt.err (!%p6920_p9)
}
  0xf2   :  { %s7475_s30 = sld [smem:[#allocation61_spill]]  ;;  %s6932_s10 = scalar_lea.vmem %s338_s2, 3072 }
  0xf3   :  { %p6933_p10 = scmp.ne.s32.totalorder %s338_s2, %s6932_s10  ;;  %p6937_p11 = scmp.lt.s32.totalorder %s338_s2, %s338_s2 }
  0xf4   :  { %p6938_p12 = scmp.lt.s32.totalorder %s6932_s10, %s6932_s10 }
  0xf6   :  { %p6939_p13 = por %p6938_p12, %p6937_p11 }
  0xf8   :  { %315 = dma.hbm_to_vmem [thread:$0]  %s7475_s30, 3072, %s310_s9, [#allocation25], %s7026_s0, %s7026_s0, %s7027_s15  }
  0xf9   :  { %p6940_p0 = pnand %p6939_p13, %p6933_p10 }
  0xfb   :  { %6943 = shalt.err (!%p6940_p0)
}
  0xfc   :  { %s7476_s13 = sld [smem:[#allocation64_spill]] }
 0x102   :  { %343 = dma.hbm_to_vmem [thread:$0]  %s7476_s13, 3072, %s338_s2, [#allocation28], %s7026_s0, %s7026_s0, %s7027_s15  }
 0x103   :  { %6964 = dma.done.wait [#allocation4], 512  }
 0x104   :  { %6965 = vsyncadd [#allocation4], 4294966784 }
 0x105   :  { %6966 = dma.done.wait [#allocation7], 3200  }
 0x106   :  { %6967 = vsyncadd [#allocation7], 4294964096 }
 0x107   :  { %6968 = dma.done.wait [#allocation10], 6144  }
 0x108   :  { %6969 = vsyncadd [#allocation10], 4294961152 }
 0x109   :  { %6970 = dma.done.wait [#allocation13], 4096  }
 0x10a   :  { %6971 = vsyncadd [#allocation13], 4294963200 }
 0x10b   :  { %6972 = dma.done.wait [#allocation16], 6144  }
 0x10c   :  { %6973 = vsyncadd [#allocation16], 4294961152 }
 0x10d   :  { %6974 = dma.done.wait [#allocation19], 4096  }
 0x10e   :  { %6975 = vsyncadd [#allocation19], 4294963200 }
 0x10f   :  { %6976 = dma.done.wait [#allocation22], 6144  }
 0x110   :  { %6977 = vsyncadd [#allocation22], 4294961152 }
 0x111   :  { %6978 = dma.done.wait [#allocation25], 4096  }
 0x112   :  { %6979 = vsyncadd [#allocation25], 4294963200 }
 0x113   :  { %6980 = dma.done.wait [#allocation28], 6144  }
 0x114   :  { %6981 = vsyncadd [#allocation28], 4294961152  ;;  %v7046_v0 = vmov 0.0   ;;  %v6259_v1 = vld [vmem:[#allocation6] sm:$0xff]   ;;  %v409_v3 = vld [vmem:[#allocation3 + $0x8] sm:$0xff]  ;;  %vm429_vm0 = vcmask 130048  }
 0x115   :  { %402 = vst [vmem:[#allocation2] sm:$0xff] %v7046_v0  ;;  %404 = vst [vmem:[#allocation2 + $0x10] sm:$0xf] %v7046_v0  ;;  %v408_v2 = vld [vmem:[#allocation3] sm:$0xff]  ;;  %v410_v4 = vld [vmem:[#allocation3 + $0x10] sm:$0xff]  ;;  %5889 = vmatprep.subr.bf16.mxu0 %v6259_v1  ;;  %s7477_s0 = sld [smem:[#allocation41_spill]] }
 0x116   :  { %405 = vst [vmem:[#allocation2 + $0x18] sm:$0xff] %v7046_v0  ;;  %406 = vst [vmem:[#allocation2 + $0x20] sm:$0xff] %v7046_v0  ;;  %v412_v5 = vpack.c.bf16 %v409_v3, %v408_v2  ;;  %v411_v6 = vld [vmem:[#allocation3 + $0x18] sm:$0xff]  ;;  %5890 = vmatpush3.bf16.msra.mxu0 %v6259_v1  ;;  %v6260_v8 = vld [vmem:[#allocation8 + $0x78] sm:$0xff]   ;;  %s7478_s15 = sld [smem:[#allocation42_spill]] }
 0x117   :  { %407 = vst [vmem:[#allocation2 + $0x28] sm:$0xf] %v7046_v0  ;;  %403 = vst [vmem:[#allocation2 + $0x8] sm:$0xff] %v7046_v0  ;;  %v413_v7 = vpack.c.bf16 %v411_v6, %v410_v4  ;;  %v6261_v9 = vld [vmem:[#allocation8 + $0xb8] sm:$0xff]   ;;  %5403 = vmatprep.subr.bf16.mxu1 %v6260_v8  ;;  %v6263_v11 = vld [vmem:[#allocation8 + $0x70] sm:$0xff]   ;;  %s7479_s25 = sld [smem:[#allocation43_spill]] }
 0x118   :  { %5891 = vmatprep.mubr.msk.bf16.mxu0 %vm429_vm0, %v412_v5  ;;  %v6262_v10 = vld [vmem:[#allocation8 + $0x38] sm:$0xff]   ;;  %5895 = vmatprep.subr.bf16.mxu0 %v6261_v9  ;;  %v6264_v12 = vld [vmem:[#allocation8 + $0xb0] sm:$0xff]   ;;  %v6266_v14 = vld [vmem:[#allocation8 + $0x68] sm:$0xff]   ;;  %s7480_s24 = sld [smem:[#allocation44_spill]] }
 0x119   :  { %5892 = vmatmul.mubr.msk.bf16.vlgmr.msra.gmra.mxu0 %vm429_vm0, %v413_v7  ;;  %5404 = vmatpush3.bf16.msra.mxu1 %v6262_v10  ;;  %v6265_v13 = vld [vmem:[#allocation8 + $0x30] sm:$0xff]   ;;  %v6267_v15 = vld [vmem:[#allocation8 + $0xa8] sm:$0xff]   ;;  %v6269_v17 = vld [vmem:[#allocation8 + $0x60] sm:$0xff]   ;;  %s7481_s5 = sld [smem:[#allocation45_spill]] }
 0x11a   :  { %5896 = vmatpush3.bf16.msra.mxu0 %v6261_v9  ;;  %5405 = vmatprep.subr.bf16.mxu1 %v6263_v11  ;;  %v6268_v16 = vld [vmem:[#allocation8 + $0x28] sm:$0xff]   ;;  %v6270_v18 = vld [vmem:[#allocation8 + $0xa0] sm:$0xff]   ;;  %v6272_v20 = vld [vmem:[#allocation8 + $0x58] sm:$0xff]   ;;  %s7482_s11 = sld [smem:[#allocation46_spill]] }
 0x11b   :  { %5897 = vmatprep.subr.bf16.mxu0 %v6264_v12  ;;  %v6271_v19 = vld [vmem:[#allocation8 + $0x20] sm:$0xff]   ;;  %v6273_v21 = vld [vmem:[#allocation8 + $0x98] sm:$0xff]   ;;  %v6275_v23 = vld [vmem:[#allocation8 + $0x50] sm:$0xff]   ;;  %s7483_s16 = sld [smem:[#allocation47_spill]] }
 0x11c   :  { %v6274_v22 = vld [vmem:[#allocation8 + $0x18] sm:$0xff]   ;;  %v6276_v24 = vld [vmem:[#allocation8 + $0x90] sm:$0xff]   ;;  %v6278_v26 = vld [vmem:[#allocation8 + $0x48] sm:$0xff]   ;;  %s7484_s18 = sld [smem:[#allocation48_spill]] }
 0x11d   :  { %5406 = vmatpush3.bf16.msra.mxu1 %v6265_v13  ;;  %v6277_v25 = vld [vmem:[#allocation8 + $0x10] sm:$0xff]   ;;  %v6279_v27 = vld [vmem:[#allocation8 + $0x88] sm:$0xff]   ;;  %v6281_v29 = vld [vmem:[#allocation8 + $0x40] sm:$0xff]   ;;  %s7485_s22 = sld [smem:[#allocation49_spill]] }
 0x11e   :  { %5898 = vmatpush3.bf16.msra.mxu0 %v6264_v12  ;;  %5407 = vmatprep.subr.bf16.mxu1 %v6266_v14  ;;  %v6280_v28 = vld [vmem:[#allocation8 + $0x8] sm:$0xff]   ;;  %v6282_v30 = vld [vmem:[#allocation8 + $0x80] sm:$0xff]   ;;  %v6284_v32 = vld [vmem:[#allocation9 + $0x78] sm:$0xff]   ;;  %s7486_s17 = sld [smem:[#allocation50_spill]] }
 0x11f   :  { %5899 = vmatprep.subr.bf16.mxu0 %v6267_v15  ;;  %v6283_v31 = vld [vmem:[#allocation8] sm:$0xff]   ;;  %v6288_v33 = vld [vmem:[#allocation9 + $0xb8] sm:$0xff]   ;;  %v5061_v34 = vld [vmem:[%s7477_s0] ss:$0 sm:$0xff]  ;;  %s7487_s3 = sld [smem:[#allocation51_spill]] }
 0x120   :  { %v6285_v47 = vld [vmem:[#allocation9 + $0x38] sm:$0xff]   ;;  %v6286_v51 = vld [vmem:[#allocation9 + $0x70] sm:$0xff]   ;;  %v6289_v60 = vld [vmem:[#allocation9 + $0x68] sm:$0xff]   ;;  %s7488_s20 = sld [smem:[#allocation52_spill]] }
 0x121   :  { %5408 = vmatpush3.bf16.msra.mxu1 %v6268_v16  ;;  %v6287_v56 = vld [vmem:[#allocation9 + $0x30] sm:$0xff]   ;;  %v6290_v61 = vld [vmem:[#allocation9 + $0x28] sm:$0xff]   ;;  %v6292_v63 = vld [vmem:[#allocation9 + $0x60] sm:$0xff]   ;;  %s7489_s19 = sld [smem:[#allocation53_spill]] }
 0x122   :  { %5900 = vmatpush3.bf16.msra.mxu0 %v6267_v15  ;;  %5409 = vmatprep.subr.bf16.mxu1 %v6269_v17  ;;  %v6291_v62 = vld [vmem:[#allocation9 + $0xb0] sm:$0xff]   ;;  %v6293_v0 = vld [vmem:[#allocation9 + $0x20] sm:$0xff]   ;;  %v6294_v1 = vld [vmem:[#allocation9 + $0xa8] sm:$0xff]   ;;  %s7490_s23 = sld [smem:[#allocation54_spill]] }
 0x123   :  { %5901 = vmatprep.subr.bf16.mxu0 %v6270_v18  ;;  %v6295_v2 = vld [vmem:[#allocation9 + $0x58] sm:$0xff]   ;;  %v6297_v4 = vld [vmem:[#allocation9 + $0xa0] sm:$0xff]   ;;  %v6298_v5 = vld [vmem:[#allocation9 + $0x50] sm:$0xff]   ;;  %s7491_s26 = sld [smem:[#allocation55_spill]] }
 0x124   :  { %v6296_v3 = vld [vmem:[#allocation9 + $0x18] sm:$0xff]   ;;  %v6299_v6 = vld [vmem:[#allocation9 + $0x10] sm:$0xff]   ;;  %v6301_v8 = vld [vmem:[#allocation9 + $0x48] sm:$0xff]   ;;  %s7492_s6 = sld [smem:[#allocation57_spill]] }
 0x125   :  { %5410 = vmatpush3.bf16.msra.mxu1 %v6271_v19  ;;  %v6300_v7 = vld [vmem:[#allocation9 + $0x98] sm:$0xff]   ;;  %v6302_v9 = vld [vmem:[#allocation9 + $0x8] sm:$0xff]   ;;  %v6303_v10 = vld [vmem:[#allocation9 + $0x90] sm:$0xff]   ;;  %s7493_s4 = sld [smem:[#allocation58_spill]] }
 0x126   :  { %5902 = vmatpush3.bf16.msra.mxu0 %v6270_v18  ;;  %5411 = vmatprep.subr.bf16.mxu1 %v6272_v20  ;;  %v6304_v11 = vld [vmem:[#allocation9 + $0x40] sm:$0xff]   ;;  %v6306_v13 = vld [vmem:[#allocation9 + $0x88] sm:$0xff]   ;;  %v6308_v15 = vld [vmem:[#allocation11 + $0x78] sm:$0xff]   ;;  %s7494_s28 = sld [smem:[#allocation59_spill]] }
 0x127   :  { %5903 = vmatprep.subr.bf16.mxu0 %v6273_v21  ;;  %v6305_v12 = vld [vmem:[#allocation9] sm:$0xff]   ;;  %v6311_v16 = vld [vmem:[#allocation11 + $0xb8] sm:$0xff]   ;;  %v5065_v20 = vld [vmem:[%s7478_s15] ss:$0 sm:$0xff]  ;;  %s7495_s9 = sld [smem:[#allocation60_spill]] }
 0x128   :  { %v6307_v14 = vld [vmem:[#allocation9 + $0x80] sm:$0xff]   ;;  %s7496_s14 = sld [smem:[#allocation62_spill]] }
 0x129   :  { %5412 = vmatpush3.bf16.msra.mxu1 %v6274_v22  ;;  %s7497_s2 = sld [smem:[#allocation63_spill]] }
 0x12a   :  { %5904 = vmatpush3.bf16.msra.mxu0 %v6273_v21  ;;  %5413 = vmatprep.subr.bf16.mxu1 %v6275_v23 }
 0x12b   :  { %5905 = vmatprep.subr.bf16.mxu0 %v6276_v24 }
 0x12d   :  { %5414 = vmatpush3.bf16.msra.mxu1 %v6277_v25 }
 0x12e   :  { %5906 = vmatpush3.bf16.msra.mxu0 %v6276_v24  ;;  %5415 = vmatprep.subr.bf16.mxu1 %v6278_v26 }
 0x12f   :  { %5907 = vmatprep.subr.bf16.mxu0 %v6279_v27 }
 0x131   :  { %5416 = vmatpush3.bf16.msra.mxu1 %v6280_v28 }
 0x132   :  { %5908 = vmatpush3.bf16.msra.mxu0 %v6279_v27  ;;  %5417 = vmatprep.subr.bf16.mxu1 %v6281_v29 }
 0x133   :  { %5909 = vmatprep.subr.bf16.mxu0 %v6282_v30 }
 0x135   :  { %5418 = vmatpush3.bf16.msra.mxu1 %v6283_v31 }
 0x136   :  { %5910 = vmatpush3.bf16.msra.mxu0 %v6282_v30  ;;  %5441 = vmatprep.subr.bf16.mxu1 %v6284_v32 }
 0x137   :  { %5915 = vmatprep.subr.bf16.mxu0 %v6288_v33 }
 0x1d9   :  { %v5893_v35 = vpop.f32.mrf.mxu0 }
 0x1da   :  { %v479_v36 = vadd.f32 %v5893_v35, %v5061_v34 }
 0x1db   :  { %v470_v37 = vpop.f32.mrf.mxu0 }
 0x1dc   :  { %487 = vst [vmem:[#allocation2 + $0x1a] sm:$0xff] %v479_v36  ;;  %v471_v38 = vadd.f32 %v5061_v34, %v470_v37 }
 0x1dd   :  { %v5894_v39 = vpop.f32.mrf.mxu0 }
 0x1de   :  { %485 = vst [vmem:[#allocation2 + $0x2] sm:$0xff] %v471_v38  ;;  %v482_v40 = vadd.f32 %v5894_v39, %v5061_v34 }
 0x1df   :  { %v473_v41 = vpop.f32.mrf.mxu0 }
 0x1e0   :  { %488 = vst [vmem:[#allocation2 + $0x22] sm:$0xff] %v482_v40  ;;  %v474_v42 = vadd.f32 %v5061_v34, %v473_v41  ;;  %v505_v55 = vpack.c.bf16 %v482_v40, %v479_v36 }
 0x1e2   :  { %486 = vst [vmem:[#allocation2 + $0xa] sm:$0xff] %v474_v42  ;;  %v502_v43 = vpack.c.bf16 %v474_v42, %v471_v38 }
 0x1e3   :  { %v491_v58 = vld [vmem:[#allocation2 + $0x19] sm:$0xff] }
 0x1e4   :  { %738 = vmatprep.mubr.bf16.mxu1 %v502_v43 }
 0x1e5   :  { %v489_v46 = vld [vmem:[#allocation2 + $0x1] sm:$0xff] }
 0x1e7   :  { %v499_v44 = vld [vmem:[#allocation2 + $0x1b] sm:$0xff]  ;;  %v500_v45 = vld [vmem:[#allocation2 + $0x23] sm:$0xff] }
 0x1e8   :  { %v506_v54 = vpack.c.bf16 %v500_v45, %v499_v44  ;;  %v492_v57 = vld [vmem:[#allocation2 + $0x21] sm:$0xff]  ;;  %v6309_v44 = vld [vmem:[#allocation11 + $0x38] sm:$0xff]  }
 0x1e9   :  { %v490_v48 = vld [vmem:[#allocation2 + $0x9] sm:$0xff]  ;;  %v504_v59 = vpack.c.bf16 %v492_v57, %v491_v58 }
 0x1ea   :  { %v497_v49 = vld [vmem:[#allocation2 + $0x3] sm:$0xff]  ;;  %v498_v50 = vld [vmem:[#allocation2 + $0xb] sm:$0xff]  ;;  %v501_v53 = vpack.c.bf16 %v490_v48, %v489_v46 }
 0x1eb   :  { %v503_v52 = vpack.c.bf16 %v498_v50, %v497_v49  ;;  %v6312_v58 = vld [vmem:[#allocation11 + $0x30] sm:$0xff]  }
 0x1ec   :  { %739 = vmatmul.mubr.bf16.vlgmr.msra.gmra.mxu1 %v501_v53 }
 0x1ed   :  { %5911 = vmatprep.mubr.bf16.mxu0 %v503_v52  ;;  %746 = vmatprep.mubr.bf16.mxu1 %v505_v55 }
 0x1ee   :  { %5912 = vmatmul.mubr.bf16.vlgmr.msra.gmra.mxu0 %v506_v54  ;;  %5442 = vmatpush3.bf16.msra.mxu1 %v6285_v47 }
 0x1ef   :  { %5916 = vmatpush3.bf16.msra.mxu0 %v6288_v33  ;;  %5443 = vmatprep.subr.bf16.mxu1 %v6286_v51  ;;  %v6310_v51 = vld [vmem:[#allocation11 + $0x70] sm:$0xff]  }
 0x1f0   :  { %5917 = vmatprep.subr.bf16.mxu0 %v6291_v62 }
 0x1f2   :  { %5444 = vmatpush3.bf16.msra.mxu1 %v6287_v56 }
 0x1f3   :  { %5445 = vmatprep.subr.bf16.mxu1 %v6289_v60  ;;  %5918 = vmatpush3.bf16.msra.mxu0 %v6291_v62  ;;  %v6314_v60 = vld [vmem:[#allocation11 + $0xb0] sm:$0xff]   ;;  %v6316_v62 = vld [vmem:[#allocation11 + $0x60] sm:$0xff]  }
 0x1f4   :  { %747 = vmatmul.mubr.bf16.gmra.mxu1 %v504_v59  ;;  %5919 = vmatprep.subr.bf16.mxu0 %v6294_v1  ;;  %v6313_v59 = vld [vmem:[#allocation11 + $0x68] sm:$0xff]  }
 0x1f6   :  { %5446 = vmatpush3.bf16.msra.mxu1 %v6290_v61  ;;  %v6315_v61 = vld [vmem:[#allocation11 + $0x28] sm:$0xff]  }
 0x1f7   :  { %5447 = vmatprep.subr.bf16.mxu1 %v6292_v63  ;;  %5920 = vmatpush3.bf16.msra.mxu0 %v6294_v1  ;;  %v6317_v63 = vld [vmem:[#allocation11 + $0xa8] sm:$0xff]   ;;  %v6319_v1 = vld [vmem:[#allocation11 + $0x58] sm:$0xff]  }
 0x1f8   :  { %5921 = vmatprep.subr.bf16.mxu0 %v6297_v4 }
 0x1fa   :  { %5448 = vmatpush3.bf16.msra.mxu1 %v6293_v0  ;;  %v6318_v0 = vld [vmem:[#allocation11 + $0x20] sm:$0xff]  }
 0x1fb   :  { %5449 = vmatprep.subr.bf16.mxu1 %v6295_v2  ;;  %5922 = vmatpush3.bf16.msra.mxu0 %v6297_v4  ;;  %v6320_v2 = vld [vmem:[#allocation11 + $0xa0] sm:$0xff]   ;;  %v6322_v4 = vld [vmem:[#allocation11 + $0x50] sm:$0xff]  }
 0x1fc   :  { %5923 = vmatprep.subr.bf16.mxu0 %v6300_v7 }
 0x1fe   :  { %5450 = vmatpush3.bf16.msra.mxu1 %v6296_v3  ;;  %v6321_v3 = vld [vmem:[#allocation11 + $0x18] sm:$0xff]  }
 0x1ff   :  { %5451 = vmatprep.subr.bf16.mxu1 %v6298_v5  ;;  %5924 = vmatpush3.bf16.msra.mxu0 %v6300_v7  ;;  %v6323_v5 = vld [vmem:[#allocation11 + $0x98] sm:$0xff]   ;;  %v6325_v7 = vld [vmem:[#allocation11 + $0x48] sm:$0xff]  }
 0x200   :  { %5925 = vmatprep.subr.bf16.mxu0 %v6303_v10 }
 0x202   :  { %5452 = vmatpush3.bf16.msra.mxu1 %v6299_v6  ;;  %v6324_v6 = vld [vmem:[#allocation11 + $0x10] sm:$0xff]  }
 0x203   :  { %5453 = vmatprep.subr.bf16.mxu1 %v6301_v8  ;;  %5926 = vmatpush3.bf16.msra.mxu0 %v6303_v10  ;;  %v6326_v8 = vld [vmem:[#allocation11 + $0x90] sm:$0xff]   ;;  %v6328_v10 = vld [vmem:[#allocation11 + $0x40] sm:$0xff]  }
 0x204   :  { %5927 = vmatprep.subr.bf16.mxu0 %v6306_v13 }
 0x206   :  { %5454 = vmatpush3.bf16.msra.mxu1 %v6302_v9  ;;  %v6327_v9 = vld [vmem:[#allocation11 + $0x8] sm:$0xff]  }
 0x207   :  { %5455 = vmatprep.subr.bf16.mxu1 %v6304_v11  ;;  %5928 = vmatpush3.bf16.msra.mxu0 %v6306_v13  ;;  %v6329_v11 = vld [vmem:[#allocation11 + $0x88] sm:$0xff]   ;;  %v6331_v13 = vld [vmem:[#allocation11 + $0x80] sm:$0xff]  }
 0x208   :  { %5929 = vmatprep.subr.bf16.mxu0 %v6307_v14 }
 0x20a   :  { %5456 = vmatpush3.bf16.msra.mxu1 %v6305_v12  ;;  %v6330_v12 = vld [vmem:[#allocation11] sm:$0xff]  }
 0x20b   :  { %5930 = vmatpush3.bf16.msra.mxu0 %v6307_v14  ;;  %5479 = vmatprep.subr.bf16.mxu1 %v6308_v15 }
 0x20c   :  { %5935 = vmatprep.subr.bf16.mxu0 %v6311_v16 }
 0x2ac   :  { %v5419_v17 = vpop.f32.mrf.mxu1 }
 0x2ae   :  { %v5913_v18 = vpop.f32.mrf.mxu0  ;;  %v5420_v19 = vpop.f32.mrf.mxu1 }
 0x2af   :  { %v5421_v21 = vadd.f32 %v5420_v19, %v5419_v17  ;;  %v5090_v19 = vld [vmem:[%s7479_s25] ss:$0 sm:$0xff] }
 0x2b0   :  { %v789_v22 = vpop.f32.mrf.mxu0  ;;  %v5422_v23 = vpop.f32.mrf.mxu1 }
 0x2b1   :  { %v741_v24 = vadd.f32 %v5421_v21, %v5065_v20 }
 0x2b2   :  { %v5914_v25 = vpop.f32.mrf.mxu0  ;;  %v5423_v26 = vpop.f32.mrf.mxu1 }
 0x2b3   :  { %v790_v27 = vadd.f32 %v789_v22, %v741_v24  ;;  %v5424_v28 = vadd.f32 %v5423_v26, %v5422_v23 }
 0x2b4   :  { %v5425_v29 = vpop.f32.mrf.mxu1  ;;  %v792_v31 = vpop.f32.mrf.mxu0 }
 0x2b5   :  { %804 = vst [vmem:[#allocation2 + $0x2] sm:$0xff] %v790_v27  ;;  %v744_v30 = vadd.f32 %v5424_v28, %v5065_v20 }
 0x2b6   :  { %v5426_v32 = vpop.f32.mrf.mxu1 }
 0x2b7   :  { %v793_v33 = vadd.f32 %v792_v31, %v744_v30  ;;  %v5427_v34 = vadd.f32 %v5426_v32, %v5425_v29 }
 0x2b8   :  { %v5428_v35 = vpop.f32.mrf.mxu1 }
 0x2b9   :  { %805 = vst [vmem:[#allocation2 + $0xa] sm:$0xff] %v793_v33  ;;  %v749_v36 = vadd.f32 %v5427_v34, %v5065_v20  ;;  %v821_v37 = vpack.c.bf16 %v793_v33, %v790_v27 }
 0x2ba   :  { %v5429_v38 = vpop.f32.mrf.mxu1 }
 0x2bb   :  { %v798_v39 = vadd.f32 %v5913_v18, %v749_v36  ;;  %v5430_v40 = vadd.f32 %v5429_v38, %v5428_v35  ;;  %1057 = vmatprep.mubr.bf16.mxu1 %v821_v37 }
 0x2bc   :  { %v808_v43 = vld [vmem:[#allocation2 + $0x1] sm:$0xff] }
 0x2bd   :  { %806 = vst [vmem:[#allocation2 + $0x1a] sm:$0xff] %v798_v39  ;;  %v752_v41 = vadd.f32 %v5430_v40, %v5065_v20 }
 0x2bf   :  { %v801_v42 = vadd.f32 %v5914_v25, %v752_v41 }
 0x2c0   :  { %v809_v45 = vld [vmem:[#allocation2 + $0x9] sm:$0xff] }
 0x2c1   :  { %v816_v46 = vld [vmem:[#allocation2 + $0x3] sm:$0xff]  ;;  %v817_v47 = vld [vmem:[#allocation2 + $0xb] sm:$0xff]  ;;  %807 = vst [vmem:[#allocation2 + $0x22] sm:$0xff] %v801_v42  ;;  %v820_v49 = vpack.c.bf16 %v809_v45, %v808_v43  ;;  %v824_v50 = vpack.c.bf16 %v801_v42, %v798_v39 }
 0x2c2   :  { %v822_v48 = vpack.c.bf16 %v817_v47, %v816_v46 }
 0x2c3   :  { %1058 = vmatmul.mubr.bf16.vlgmr.msra.gmra.mxu1 %v820_v49 }
 0x2c4   :  { %5931 = vmatprep.mubr.bf16.mxu0 %v822_v48  ;;  %1065 = vmatprep.mubr.bf16.mxu1 %v824_v50  ;;  %v810_v52 = vld [vmem:[#allocation2 + $0x19] sm:$0xff] }
 0x2c5   :  { %5480 = vmatpush3.bf16.msra.mxu1 %v6309_v44 }
 0x2c6   :  { %5481 = vmatprep.subr.bf16.mxu1 %v6310_v51 }
 0x2c8   :  { %v811_v53 = vld [vmem:[#allocation2 + $0x21] sm:$0xff] }
 0x2c9   :  { %v818_v54 = vld [vmem:[#allocation2 + $0x1b] sm:$0xff]  ;;  %v819_v55 = vld [vmem:[#allocation2 + $0x23] sm:$0xff]  ;;  %v823_v57 = vpack.c.bf16 %v811_v53, %v810_v52  ;;  %5482 = vmatpush3.bf16.msra.mxu1 %v6312_v58 }
 0x2ca   :  { %v825_v56 = vpack.c.bf16 %v819_v55, %v818_v54  ;;  %5483 = vmatprep.subr.bf16.mxu1 %v6313_v59  ;;  %v5115_v55 = vld [vmem:[%s7480_s24] ss:$0 sm:$0xff] }
 0x2cb   :  { %1066 = vmatmul.mubr.bf16.gmra.mxu1 %v823_v57 }
 0x2cc   :  { %5932 = vmatmul.mubr.bf16.vlgmr.msra.gmra.mxu0 %v825_v56 }
 0x2cd   :  { %5936 = vmatpush3.bf16.msra.mxu0 %v6311_v16  ;;  %5484 = vmatpush3.bf16.msra.mxu1 %v6315_v61 }
 0x2ce   :  { %5937 = vmatprep.subr.bf16.mxu0 %v6314_v60  ;;  %5485 = vmatprep.subr.bf16.mxu1 %v6316_v62 }
 0x2d1   :  { %5938 = vmatpush3.bf16.msra.mxu0 %v6314_v60  ;;  %5486 = vmatpush3.bf16.msra.mxu1 %v6318_v0 }
 0x2d2   :  { %5939 = vmatprep.subr.bf16.mxu0 %v6317_v63  ;;  %5487 = vmatprep.subr.bf16.mxu1 %v6319_v1 }
 0x2d5   :  { %5940 = vmatpush3.bf16.msra.mxu0 %v6317_v63  ;;  %5488 = vmatpush3.bf16.msra.mxu1 %v6321_v3 }
 0x2d6   :  { %5941 = vmatprep.subr.bf16.mxu0 %v6320_v2  ;;  %5489 = vmatprep.subr.bf16.mxu1 %v6322_v4 }
 0x2d9   :  { %5942 = vmatpush3.bf16.msra.mxu0 %v6320_v2  ;;  %5490 = vmatpush3.bf16.msra.mxu1 %v6324_v6 }
 0x2da   :  { %5943 = vmatprep.subr.bf16.mxu0 %v6323_v5  ;;  %5491 = vmatprep.subr.bf16.mxu1 %v6325_v7 }
 0x2dd   :  { %5944 = vmatpush3.bf16.msra.mxu0 %v6323_v5  ;;  %5492 = vmatpush3.bf16.msra.mxu1 %v6327_v9 }
 0x2de   :  { %5945 = vmatprep.subr.bf16.mxu0 %v6326_v8  ;;  %5493 = vmatprep.subr.bf16.mxu1 %v6328_v10 }
 0x2e1   :  { %5946 = vmatpush3.bf16.msra.mxu0 %v6326_v8  ;;  %5494 = vmatpush3.bf16.msra.mxu1 %v6330_v12 }
 0x2e2   :  { %5947 = vmatprep.subr.bf16.mxu0 %v6329_v11 }
 0x2e5   :  { %5948 = vmatpush3.bf16.msra.mxu0 %v6329_v11 }
 0x2e6   :  { %5949 = vmatprep.subr.bf16.mxu0 %v6331_v13 }
 0x2e9   :  { %5950 = vmatpush3.bf16.msra.mxu0 %v6331_v13 }
 0x383   :  { %v5457_v14 = vpop.f32.mrf.mxu1 }
 0x385   :  { %v5458_v15 = vpop.f32.mrf.mxu1 }
 0x386   :  { %v5459_v17 = vadd.f32 %v5458_v15, %v5457_v14 }
 0x387   :  { %v5460_v16 = vpop.f32.mrf.mxu1 }
 0x388   :  { %v1060_v23 = vadd.f32 %v5459_v17, %v5090_v19 }
 0x389   :  { %v5461_v18 = vpop.f32.mrf.mxu1 }
 0x38a   :  { %v5462_v22 = vadd.f32 %v5461_v18, %v5460_v16 }
 0x38b   :  { %v5463_v21 = vpop.f32.mrf.mxu1 }
 0x38c   :  { %v5933_v20 = vpop.f32.mrf.mxu0  ;;  %v1063_v31 = vadd.f32 %v5462_v22, %v5090_v19  ;;  %v6332_v22 = vld [vmem:[#allocation12 + $0x38] sm:$0xff]  }
 0x38d   :  { %v5464_v25 = vpop.f32.mrf.mxu1  ;;  %5955 = vmatprep.subr.bf16.mxu1 %v6332_v22 }
 0x38e   :  { %v1108_v24 = vpop.f32.mrf.mxu0  ;;  %v5465_v27 = vadd.f32 %v5464_v25, %v5463_v21  ;;  %v6335_v25 = vld [vmem:[#allocation12 + $0x20] sm:$0xff]  }
 0x38f   :  { %v1109_v26 = vadd.f32 %v1108_v24, %v1060_v23  ;;  %v5466_v29 = vpop.f32.mrf.mxu1  ;;  %v6333_v23 = vld [vmem:[#allocation12 + $0x30] sm:$0xff]   ;;  %v6334_v24 = vld [vmem:[#allocation12 + $0x28] sm:$0xff]  }
 0x390   :  { %v5934_v28 = vpop.f32.mrf.mxu0  ;;  %v1068_v30 = vadd.f32 %v5465_v27, %v5090_v19  ;;  %v6337_v27 = vld [vmem:[#allocation12 + $0x10] sm:$0xff]  }
 0x391   :  { %1123 = vst [vmem:[#allocation2 + $0x2] sm:$0xff] %v1109_v26  ;;  %v5467_v33 = vpop.f32.mrf.mxu1 }
 0x392   :  { %v1111_v32 = vpop.f32.mrf.mxu0  ;;  %v1117_v34 = vadd.f32 %v5933_v20, %v1068_v30  ;;  %v5468_v36 = vadd.f32 %v5467_v33, %v5466_v29  ;;  %v6339_v29 = vld [vmem:[#allocation12] sm:$0xff]   ;;  %v6340_v30 = vld [vmem:[#allocation14 + $0x78] sm:$0xff]   ;;  %v6343_v33 = vld [vmem:[#allocation14 + $0x70] sm:$0xff]  }
 0x393   :  { %v1112_v35 = vadd.f32 %v1111_v32, %v1063_v31  ;;  %v7355_v31 = vld [vmem:[#allocation14 + $0xb8] sm:$0xff]   ;;  %5527 = vmatprep.subr.bf16.mxu0 %v6340_v30 }
 0x394   :  { %1125 = vst [vmem:[#allocation2 + $0x1a] sm:$0xff] %v1117_v34  ;;  %v1071_v37 = vadd.f32 %v5468_v36, %v5090_v19  ;;  %v6342_v32 = vld [vmem:[#allocation14 + $0x38] sm:$0xff]   ;;  %v6348_v36 = vld [vmem:[#allocation14 + $0x28] sm:$0xff]  }
 0x395   :  { %1124 = vst [vmem:[#allocation2 + $0xa] sm:$0xff] %v1112_v35  ;;  %v1140_v38 = vpack.c.bf16 %v1112_v35, %v1109_v26  ;;  %v6336_v26 = vld [vmem:[#allocation12 + $0x18] sm:$0xff]   ;;  %v6346_v35 = vld [vmem:[#allocation14 + $0x68] sm:$0xff]  }
 0x396   :  { %v1120_v39 = vadd.f32 %v5934_v28, %v1071_v37  ;;  %v6338_v28 = vld [vmem:[#allocation12 + $0x8] sm:$0xff]   ;;  %v6352_v30 = vld [vmem:[#allocation14 + $0x58] sm:$0xff]  }
 0x397   :  { %1376 = vmatprep.mubr.bf16.mxu1 %v1140_v38 }
 0x398   :  { %1126 = vst [vmem:[#allocation2 + $0x22] sm:$0xff] %v1120_v39  ;;  %v1127_v40 = vld [vmem:[#allocation2] sm:$0xff]  ;;  %v1143_v46 = vpack.c.bf16 %v1120_v39, %v1117_v34  ;;  %v6345_v34 = vld [vmem:[#allocation14 + $0x30] sm:$0xff]  }
 0x39b   :  { %v1129_v51 = vld [vmem:[#allocation2 + $0x18] sm:$0xff] }
 0x39c   :  { %v1128_v41 = vld [vmem:[#allocation2 + $0x8] sm:$0xff] }
 0x39d   :  { %v1135_v42 = vld [vmem:[#allocation2 + $0x4] sm:$0xff]  ;;  %v1136_v43 = vld [vmem:[#allocation2 + $0xc] sm:$0xff]  ;;  %v1139_v45 = vpack.c.bf16 %v1128_v41, %v1127_v40 }
 0x39e   :  { %v1141_v44 = vpack.c.bf16 %v1136_v43, %v1135_v42 }
 0x39f   :  { %1377 = vmatmul.mubr.bf16.vlgmr.msra.gmra.mxu1 %v1139_v45  ;;  %v1137_v47 = vld [vmem:[#allocation2 + $0x1c] sm:$0xff]  ;;  %v1138_v48 = vld [vmem:[#allocation2 + $0x24] sm:$0xff] }
 0x3a0   :  { %5951 = vmatprep.mubr.bf16.mxu0 %v1141_v44  ;;  %1384 = vmatprep.mubr.bf16.mxu1 %v1143_v46  ;;  %v1144_v49 = vpack.c.bf16 %v1138_v48, %v1137_v47  ;;  %v1130_v50 = vld [vmem:[#allocation2 + $0x20] sm:$0xff] }
 0x3a1   :  { %v1142_v52 = vpack.c.bf16 %v1130_v50, %v1129_v51  ;;  %5956 = vmatpush3.bf16.msra.mxu1 %v6332_v22 }
 0x3a2   :  { %5952 = vmatmul.mubr.bf16.vlgmr.msra.gmra.mxu0 %v1144_v49  ;;  %5957 = vmatprep.subr.bf16.mxu1 %v6333_v23 }
 0x3a3   :  { %5528 = vmatpush3.bf16.msra.mxu0 %v6342_v32  ;;  %v6353_v32 = vld [vmem:[#allocation14 + $0x98] sm:$0xff]  }
 0x3a4   :  { %5529 = vmatprep.subr.bf16.mxu0 %v6343_v33  ;;  %v6354_v33 = vld [vmem:[#allocation14 + $0x18] sm:$0xff]  }
 0x3a5   :  { %5958 = vmatpush3.bf16.msra.mxu1 %v6333_v23 }
 0x3a6   :  { %5959 = vmatprep.subr.bf16.mxu1 %v6334_v24 }
 0x3a7   :  { %1385 = vmatmul.mubr.bf16.gmra.mxu1 %v1142_v52  ;;  %5530 = vmatpush3.bf16.msra.mxu0 %v6345_v34  ;;  %v6356_v34 = vld [vmem:[#allocation14 + $0x90] sm:$0xff]  }
 0x3a8   :  { %5531 = vmatprep.subr.bf16.mxu0 %v6346_v35  ;;  %v6357_v35 = vld [vmem:[#allocation14 + $0x10] sm:$0xff]  }
 0x3a9   :  { %5960 = vmatpush3.bf16.msra.mxu1 %v6334_v24 }
 0x3aa   :  { %5961 = vmatprep.subr.bf16.mxu1 %v6335_v25 }
 0x3ab   :  { %5532 = vmatpush3.bf16.msra.mxu0 %v6348_v36  ;;  %v6358_v36 = vld [vmem:[#allocation14 + $0x48] sm:$0xff]  }
 0x3ad   :  { %5962 = vmatpush3.bf16.msra.mxu1 %v6335_v25 }
 0x3ae   :  { %5963 = vmatprep.subr.bf16.mxu1 %v6336_v26 }
 0x3b1   :  { %5964 = vmatpush3.bf16.msra.mxu1 %v6336_v26 }
 0x3b2   :  { %5965 = vmatprep.subr.bf16.mxu1 %v6337_v27 }
 0x3b5   :  { %5966 = vmatpush3.bf16.msra.mxu1 %v6337_v27  ;;  %v6344_v27 = vld [vmem:[#allocation14 + $0xb0] sm:$0xff]  }
 0x3b6   :  { %5967 = vmatprep.subr.bf16.mxu1 %v6338_v28 }
 0x3b9   :  { %5968 = vmatpush3.bf16.msra.mxu1 %v6338_v28  ;;  %v6349_v28 = vld [vmem:[#allocation14 + $0x60] sm:$0xff]  }
 0x3ba   :  { %5969 = vmatprep.subr.bf16.mxu1 %v6339_v29  ;;  %5533 = vmatprep.subr.bf16.mxu0 %v6349_v28 }
 0x3bd   :  { %5970 = vmatpush3.bf16.msra.mxu1 %v6339_v29  ;;  %v6351_v29 = vld [vmem:[#allocation14 + $0x20] sm:$0xff]  }
 0x3be   :  { %5975 = vmatprep.subr.bf16.mxu1 %v7355_v31  ;;  %5534 = vmatpush3.bf16.msra.mxu0 %v6351_v29 }
 0x3bf   :  { %5535 = vmatprep.subr.bf16.mxu0 %v6352_v30  ;;  %v5151_v30 = vld [vmem:[%s7484_s18] ss:$0 sm:$0xff] }
 0x3c2   :  { %5536 = vmatpush3.bf16.msra.mxu0 %v6354_v33 }
 0x45f   :  { %v5495_v53 = vpop.f32.mrf.mxu1 }
 0x461   :  { %v5496_v54 = vpop.f32.mrf.mxu1 }
 0x462   :  { %v5497_v56 = vadd.f32 %v5496_v54, %v5495_v53  ;;  %v5953_v58 = vpop.f32.mrf.mxu0 }
 0x463   :  { %v5498_v57 = vpop.f32.mrf.mxu1 }
 0x464   :  { %v1379_v59 = vadd.f32 %v5497_v56, %v5115_v55  ;;  %v1427_v61 = vpop.f32.mrf.mxu0 }
 0x465   :  { %v5499_v60 = vpop.f32.mrf.mxu1 }
 0x466   :  { %v5500_v62 = vadd.f32 %v5499_v60, %v5498_v57  ;;  %v1428_v63 = vadd.f32 %v1427_v61, %v1379_v59  ;;  %v5954_v1 = vpop.f32.mrf.mxu0 }
 0x467   :  { %v5501_v0 = vpop.f32.mrf.mxu1 }
 0x468   :  { %v7335_v2 = vmax.f32 %v1428_v63, 0.0  ;;  %v1382_v3 = vadd.f32 %v5500_v62, %v5115_v55  ;;  %v1430_v5 = vpop.f32.mrf.mxu0 }
 0x469   :  { %v5502_v4 = vpop.f32.mrf.mxu1 }
 0x46a   :  { %v5503_v6 = vadd.f32 %v5502_v4, %v5501_v0  ;;  %v1431_v7 = vadd.f32 %v1430_v5, %v1382_v3  ;;  %1446 = vadd.xlane.f32.xlu0 %v7335_v2  ;;  %v1458_v11 = vmul.f32 %v7335_v2, %v7335_v2  ;;  %v5140_v5 = vld [vmem:[%s7481_s5] ss:$0 sm:$0xff] }
 0x46b   :  { %v5504_v8 = vpop.f32.mrf.mxu1 }
 0x46c   :  { %v1387_v9 = vadd.f32 %v5503_v6, %v5115_v55  ;;  %v7338_v10 = vmax.f32 %v1431_v7, 0.0 }
 0x46d   :  { %v5505_v12 = vpop.f32.mrf.mxu1 }
 0x46e   :  { %v5506_v13 = vadd.f32 %v5505_v12, %v5504_v8  ;;  %1462 = vadd.xlane.f32.xlu0 %v1458_v11  ;;  %v1459_v14 = vmul.f32 %v7338_v10, %v7338_v10  ;;  %v1436_v15 = vadd.f32 %v5953_v58, %v1387_v9  ;;  %v5141_v12 = vld [vmem:[%s7482_s11] ss:$0 sm:$0xff] }
 0x470   :  { %v1390_v16 = vadd.f32 %v5506_v13, %v5115_v55  ;;  %1464 = vadd.xlane.f32.xlu1 %v1459_v14  ;;  %v7344_v17 = vmax.f32 %v1436_v15, 0.0 }
 0x472   :  { %1448 = vadd.xlane.f32.xlu0 %v7338_v10  ;;  %v1439_v18 = vadd.f32 %v5954_v1, %v1390_v16  ;;  %v1460_v19 = vmul.f32 %v7344_v17, %v7344_v17 }
 0x474   :  { %1450 = vadd.xlane.f32.xlu1 %v7344_v17  ;;  %v7350_v20 = vmax.f32 %v1439_v18, 0.0 }
 0x476   :  { %1466 = vadd.xlane.f32.xlu0 %v1460_v19  ;;  %v1461_v21 = vmul.f32 %v7350_v20, %v7350_v20 }
 0x478   :  { %1452 = vadd.xlane.f32.xlu1 %v7350_v20 }
 0x47c   :  { %1468 = vadd.xlane.f32.xlu1 %v1461_v21 }
 0x4f3   :  { %v1447_v37 = vpop.xlane.xlu0 %1446 }
 0x4f4   :  { %v1454_v38 = vmul.f32 0.03125, %v1447_v37  ;;  %v6359_v37 = vld [vmem:[#allocation14 + $0x88] sm:$0xff]  }
 0x4f6   :  { %v1474_v40 = vmul.f32 %v1454_v38, %v1454_v38  ;;  %v1482_v3 = vsub.f32 %v7335_v2, %v1454_v38  ;;  %v6360_v38 = vld [vmem:[#allocation14 + $0x8] sm:$0xff]  }
 0x4f7   :  { %v1463_v39 = vpop.xlane.xlu0 %1462 }
 0x4f8   :  { %v1470_v41 = vmul.f32 0.03125, %v1463_v39  ;;  %v6361_v39 = vld [vmem:[#allocation14 + $0x40] sm:$0xff]  }
 0x4f9   :  { %v1465_v42 = vpop.xlane.xlu1 %1464 }
 0x4fa   :  { %v1478_v43 = vsub.f32 %v1470_v41, %v1474_v40  ;;  %v1471_v48 = vmul.f32 0.03125, %v1465_v42  ;;  %v6362_v40 = vld [vmem:[#allocation14 + $0x80] sm:$0xff]   ;;  %v6364_v42 = vld [vmem:[#allocation15 + $0x78] sm:$0xff]  }
 0x4fb   :  { %v1449_v44 = vpop.xlane.xlu0 %1448  ;;  %v6363_v41 = vld [vmem:[#allocation14] sm:$0xff]  }
 0x4fc   :  { %v1486_v45 = vadd.f32 1e-05, %v1478_v43  ;;  %v1455_v46 = vmul.f32 0.03125, %v1449_v44  ;;  %v6368_v43 = vld [vmem:[#allocation15 + $0xb8] sm:$0xff]   ;;  %v5142_v44 = vld [vmem:[%s7483_s16] ss:$0 sm:$0xff] }
 0x4fd   :  { %v1451_v47 = vpop.xlane.xlu1 %1450 }
 0x4fe   :  { %6572 = vrsqrt.f32 %v1486_v45  ;;  %v1475_v49 = vmul.f32 %v1455_v46, %v1455_v46  ;;  %v1456_v50 = vmul.f32 0.03125, %v1451_v47  ;;  %v1483_v6 = vsub.f32 %v7338_v10, %v1455_v46 }
 0x4ff   :  { %v1467_v51 = vpop.xlane.xlu0 %1466 }
 0x500   :  { %v1479_v52 = vsub.f32 %v1471_v48, %v1475_v49  ;;  %v1476_v53 = vmul.f32 %v1456_v50, %v1456_v50  ;;  %v1472_v54 = vmul.f32 0.03125, %v1467_v51  ;;  %v1484_v14 = vsub.f32 %v7344_v17, %v1456_v50  ;;  %v6347_v17 = vld [vmem:[#allocation14 + $0xa8] sm:$0xff]  }
 0x501   :  { %v1453_v55 = vpop.xlane.xlu1 %1452 }
 0x502   :  { %v1487_v56 = vadd.f32 1e-05, %v1479_v52  ;;  %v1480_v57 = vsub.f32 %v1472_v54, %v1476_v53  ;;  %v1457_v58 = vmul.f32 0.03125, %v1453_v55 }
 0x504   :  { %6574 = vrsqrt.f32 %v1487_v56  ;;  %v1488_v59 = vadd.f32 1e-05, %v1480_v57  ;;  %v1477_v61 = vmul.f32 %v1457_v58, %v1457_v58  ;;  %v1485_v19 = vsub.f32 %v7350_v20, %v1457_v58  ;;  %v6350_v20 = vld [vmem:[#allocation14 + $0xa0] sm:$0xff]  }
 0x505   :  { %v1469_v60 = vpop.xlane.xlu1 %1468 }
 0x506   :  { %6576 = vrsqrt.f32 %v1488_v59  ;;  %v1473_v62 = vmul.f32 0.03125, %v1469_v60 }
 0x508   :  { %v1481_v63 = vsub.f32 %v1473_v62, %v1477_v61  ;;  %v6365_v62 = vld [vmem:[#allocation15 + $0x38] sm:$0xff]  }
 0x50a   :  { %v1489_v0 = vadd.f32 1e-05, %v1481_v63 }
 0x50b   :  { %v6573_v1 = vpop.eup %6572 }
 0x50c   :  { %6578 = vrsqrt.f32 %v1489_v0  ;;  %v1494_v4 = vmul.f32 %v6573_v1, %v1482_v3  ;;  %v6366_v1 = vld [vmem:[#allocation15 + $0x70] sm:$0xff]  }
 0x50d   :  { %v6367_v3 = vld [vmem:[#allocation15 + $0x30] sm:$0xff]  }
 0x50e   :  { %v1505_v9 = vmul.f32 %v5140_v5, %v1494_v4 }
 0x510   :  { %v1516_v16 = vadd.f32 %v5141_v12, %v1505_v9  ;;  %v6371_v9 = vld [vmem:[#allocation15 + $0xb0] sm:$0xff]  }
 0x511   :  { %v6575_v7 = vpop.eup %6574 }
 0x512   :  { %v1495_v8 = vmul.f32 %v6575_v7, %v1483_v6  ;;  %v6369_v7 = vld [vmem:[#allocation15 + $0x68] sm:$0xff]  }
 0x513   :  { %v6577_v11 = vpop.eup %6576 }
 0x514   :  { %v1506_v13 = vmul.f32 %v5140_v5, %v1495_v8  ;;  %v1496_v15 = vmul.f32 %v6577_v11, %v1484_v14  ;;  %v6370_v8 = vld [vmem:[#allocation15 + $0x28] sm:$0xff]   ;;  %v6372_v11 = vld [vmem:[#allocation15 + $0x60] sm:$0xff]   ;;  %v6375_v14 = vld [vmem:[#allocation15 + $0x58] sm:$0xff]  }
 0x516   :  { %v1517_v18 = vadd.f32 %v5141_v12, %v1506_v13  ;;  %v1507_v23 = vmul.f32 %v5140_v5, %v1496_v15  ;;  %v6374_v13 = vld [vmem:[#allocation15 + $0xa8] sm:$0xff]   ;;  %v6376_v15 = vld [vmem:[#allocation15 + $0x18] sm:$0xff]  }
 0x518   :  { %v1520_v21 = vpack.c.bf16 %v1517_v18, %v1516_v16  ;;  %v1518_v10 = vadd.f32 %v5141_v12, %v1507_v23  ;;  %v6377_v16 = vld [vmem:[#allocation15 + $0xa0] sm:$0xff]   ;;  %v6378_v18 = vld [vmem:[#allocation15 + $0x50] sm:$0xff]  }
 0x519   :  { %v6579_v2 = vpop.eup %6578  ;;  %v6383_v23 = vld [vmem:[#allocation15 + $0x90] sm:$0xff]  }
 0x51a   :  { %v1497_v22 = vmul.f32 %v6579_v2, %v1485_v19  ;;  %5971 = vmatprep.mubr.bf16.mxu1 %v1520_v21  ;;  %v6379_v19 = vld [vmem:[#allocation15 + $0x10] sm:$0xff]   ;;  %v6380_v21 = vld [vmem:[#allocation15 + $0x98] sm:$0xff]   ;;  %v6381_v2 = vld [vmem:[#allocation15 + $0x48] sm:$0xff]  }
 0x51c   :  { %v1508_v24 = vmul.f32 %v5140_v5, %v1497_v22  ;;  %v6382_v22 = vld [vmem:[#allocation15 + $0x8] sm:$0xff]  }
 0x51e   :  { %v1519_v25 = vadd.f32 %v5141_v12, %v1508_v24  ;;  %v6373_v12 = vld [vmem:[#allocation15 + $0x20] sm:$0xff]  }
 0x51f   :  { %v6384_v24 = vld [vmem:[#allocation15 + $0x40] sm:$0xff]  }
 0x520   :  { %v1521_v26 = vpack.c.bf16 %v1519_v25, %v1518_v10  ;;  %v6385_v10 = vld [vmem:[#allocation15] sm:$0xff]   ;;  %v6386_v25 = vld [vmem:[#allocation15 + $0x88] sm:$0xff]  }
 0x522   :  { %5972 = vmatmul.mubr.bf16.vlgmr.msra.gmra.mxu1 %v1521_v26  ;;  %v6387_v26 = vld [vmem:[#allocation15 + $0x80] sm:$0xff]  }
 0x523   :  { %5976 = vmatpush3.bf16.msra.mxu1 %v7355_v31  ;;  %v6355_v31 = vld [vmem:[#allocation14 + $0x50] sm:$0xff]  }
 0x524   :  { %5977 = vmatprep.subr.bf16.mxu1 %v6344_v27  ;;  %5537 = vmatprep.subr.bf16.mxu0 %v6355_v31 }
 0x525   :  { %5538 = vmatpush3.bf16.msra.mxu0 %v6357_v35 }
 0x526   :  { %5539 = vmatprep.subr.bf16.mxu0 %v6358_v36 }
 0x527   :  { %5978 = vmatpush3.bf16.msra.mxu1 %v6344_v27  ;;  %v6388_v27 = vld [vmem:[#allocation17 + $0x78] sm:$0xff]  }
 0x528   :  { %5979 = vmatprep.subr.bf16.mxu1 %v6347_v17 }
 0x529   :  { %5540 = vmatpush3.bf16.msra.mxu0 %v6360_v38 }
 0x52a   :  { %5541 = vmatprep.subr.bf16.mxu0 %v6361_v39 }
 0x52b   :  { %5980 = vmatpush3.bf16.msra.mxu1 %v6347_v17  ;;  %v6391_v17 = vld [vmem:[#allocation17 + $0xb8] sm:$0xff]  }
 0x52c   :  { %5981 = vmatprep.subr.bf16.mxu1 %v6350_v20 }
 0x52d   :  { %5542 = vmatpush3.bf16.msra.mxu0 %v6363_v41 }
 0x52e   :  { %5565 = vmatprep.subr.bf16.mxu0 %v6364_v42 }
 0x52f   :  { %5982 = vmatpush3.bf16.msra.mxu1 %v6350_v20 }
 0x530   :  { %5983 = vmatprep.subr.bf16.mxu1 %v6353_v32 }
 0x533   :  { %5984 = vmatpush3.bf16.msra.mxu1 %v6353_v32 }
 0x534   :  { %5985 = vmatprep.subr.bf16.mxu1 %v6356_v34 }
 0x537   :  { %5986 = vmatpush3.bf16.msra.mxu1 %v6356_v34 }
 0x538   :  { %5987 = vmatprep.subr.bf16.mxu1 %v6359_v37 }
 0x53b   :  { %5988 = vmatpush3.bf16.msra.mxu1 %v6359_v37 }
 0x53c   :  { %5989 = vmatprep.subr.bf16.mxu1 %v6362_v40 }
 0x53f   :  { %5990 = vmatpush3.bf16.msra.mxu1 %v6362_v40 }
 0x540   :  { %5995 = vmatprep.subr.bf16.mxu1 %v6368_v43 }
 0x5e2   :  { %v5973_v45 = vpop.f32.mrf.mxu1 }
 0x5e3   :  { %v1636_v46 = vadd.f32 %v5973_v45, %v5142_v44 }
 0x5e4   :  { %v1627_v47 = vpop.f32.mrf.mxu1 }
 0x5e5   :  { %1644 = vst [vmem:[#allocation2 + $0x1a] sm:$0xff] %v1636_v46  ;;  %v1628_v48 = vadd.f32 %v5142_v44, %v1627_v47 }
 0x5e6   :  { %v5974_v49 = vpop.f32.mrf.mxu1 }
 0x5e7   :  { %1642 = vst [vmem:[#allocation2 + $0x2] sm:$0xff] %v1628_v48  ;;  %v1639_v50 = vadd.f32 %v5974_v49, %v5142_v44 }
 0x5e8   :  { %v1630_v51 = vpop.f32.mrf.mxu1 }
 0x5e9   :  { %1645 = vst [vmem:[#allocation2 + $0x22] sm:$0xff] %v1639_v50  ;;  %v1631_v52 = vadd.f32 %v5142_v44, %v1630_v51  ;;  %v1662_v0 = vpack.c.bf16 %v1639_v50, %v1636_v46 }
 0x5eb   :  { %1643 = vst [vmem:[#allocation2 + $0xa] sm:$0xff] %v1631_v52  ;;  %v1659_v53 = vpack.c.bf16 %v1631_v52, %v1628_v48 }
 0x5ec   :  { %v1648_v5 = vld [vmem:[#allocation2 + $0x19] sm:$0xff] }
 0x5ed   :  { %1895 = vmatprep.mubr.bf16.mxu0 %v1659_v53 }
 0x5ee   :  { %v1646_v54 = vld [vmem:[#allocation2 + $0x1] sm:$0xff] }
 0x5f0   :  { %v1656_v55 = vld [vmem:[#allocation2 + $0x1b] sm:$0xff]  ;;  %v1657_v56 = vld [vmem:[#allocation2 + $0x23] sm:$0xff] }
 0x5f1   :  { %v1663_v63 = vpack.c.bf16 %v1657_v56, %v1656_v55  ;;  %v1649_v4 = vld [vmem:[#allocation2 + $0x21] sm:$0xff] }
 0x5f2   :  { %v1647_v57 = vld [vmem:[#allocation2 + $0x9] sm:$0xff]  ;;  %v1661_v6 = vpack.c.bf16 %v1649_v4, %v1648_v5 }
 0x5f3   :  { %v1654_v58 = vld [vmem:[#allocation2 + $0x3] sm:$0xff]  ;;  %v1655_v59 = vld [vmem:[#allocation2 + $0xb] sm:$0xff]  ;;  %v1658_v61 = vpack.c.bf16 %v1647_v57, %v1646_v54 }
 0x5f4   :  { %v1660_v60 = vpack.c.bf16 %v1655_v59, %v1654_v58  ;;  %v6389_v54 = vld [vmem:[#allocation17 + $0x38] sm:$0xff]   ;;  %v6392_v5 = vld [vmem:[#allocation17 + $0x30] sm:$0xff]  }
 0x5f5   :  { %1896 = vmatmul.mubr.bf16.vlgmr.msra.gmra.mxu0 %v1658_v61  ;;  %v6390_v61 = vld [vmem:[#allocation17 + $0x70] sm:$0xff]  }
 0x5f6   :  { %5991 = vmatprep.mubr.bf16.mxu1 %v1660_v60  ;;  %1903 = vmatprep.mubr.bf16.mxu0 %v1662_v0 }
 0x5f7   :  { %5992 = vmatmul.mubr.bf16.vlgmr.msra.gmra.mxu1 %v1663_v63  ;;  %5566 = vmatpush3.bf16.msra.mxu0 %v6365_v62 }
 0x5f8   :  { %5996 = vmatpush3.bf16.msra.mxu1 %v6368_v43  ;;  %5567 = vmatprep.subr.bf16.mxu0 %v6366_v1 }
 0x5f9   :  { %5997 = vmatprep.subr.bf16.mxu1 %v6371_v9 }
 0x5fb   :  { %5568 = vmatpush3.bf16.msra.mxu0 %v6367_v3 }
 0x5fc   :  { %5569 = vmatprep.subr.bf16.mxu0 %v6369_v7  ;;  %5998 = vmatpush3.bf16.msra.mxu1 %v6371_v9  ;;  %v6394_v7 = vld [vmem:[#allocation17 + $0xb0] sm:$0xff]   ;;  %v6396_v9 = vld [vmem:[#allocation17 + $0x60] sm:$0xff]  }
 0x5fd   :  { %1904 = vmatmul.mubr.bf16.gmra.mxu0 %v1661_v6  ;;  %5999 = vmatprep.subr.bf16.mxu1 %v6374_v13  ;;  %v6393_v6 = vld [vmem:[#allocation17 + $0x68] sm:$0xff]  }
 0x5ff   :  { %5570 = vmatpush3.bf16.msra.mxu0 %v6370_v8  ;;  %v6395_v8 = vld [vmem:[#allocation17 + $0x28] sm:$0xff]  }
 0x600   :  { %5571 = vmatprep.subr.bf16.mxu0 %v6372_v11  ;;  %6000 = vmatpush3.bf16.msra.mxu1 %v6374_v13  ;;  %v6397_v11 = vld [vmem:[#allocation17 + $0xa8] sm:$0xff]   ;;  %v6399_v13 = vld [vmem:[#allocation17 + $0x58] sm:$0xff]  }
 0x601   :  { %6001 = vmatprep.subr.bf16.mxu1 %v6377_v16 }
 0x603   :  { %5572 = vmatpush3.bf16.msra.mxu0 %v6373_v12  ;;  %v6398_v12 = vld [vmem:[#allocation17 + $0x20] sm:$0xff]  }
 0x604   :  { %5573 = vmatprep.subr.bf16.mxu0 %v6375_v14  ;;  %6002 = vmatpush3.bf16.msra.mxu1 %v6377_v16  ;;  %v6400_v14 = vld [vmem:[#allocation17 + $0xa0] sm:$0xff]   ;;  %v6402_v16 = vld [vmem:[#allocation17 + $0x50] sm:$0xff]  }
 0x605   :  { %6003 = vmatprep.subr.bf16.mxu1 %v6380_v21 }
 0x607   :  { %5574 = vmatpush3.bf16.msra.mxu0 %v6376_v15  ;;  %v6401_v15 = vld [vmem:[#allocation17 + $0x18] sm:$0xff]  }
 0x608   :  { %5575 = vmatprep.subr.bf16.mxu0 %v6378_v18  ;;  %6004 = vmatpush3.bf16.msra.mxu1 %v6380_v21  ;;  %v6403_v18 = vld [vmem:[#allocation17 + $0x98] sm:$0xff]   ;;  %v6405_v21 = vld [vmem:[#allocation17 + $0x48] sm:$0xff]  }
 0x609   :  { %6005 = vmatprep.subr.bf16.mxu1 %v6383_v23 }
 0x60b   :  { %5576 = vmatpush3.bf16.msra.mxu0 %v6379_v19  ;;  %v6404_v19 = vld [vmem:[#allocation17 + $0x10] sm:$0xff]  }
 0x60c   :  { %5577 = vmatprep.subr.bf16.mxu0 %v6381_v2  ;;  %6006 = vmatpush3.bf16.msra.mxu1 %v6383_v23  ;;  %v6406_v2 = vld [vmem:[#allocation17 + $0x90] sm:$0xff]   ;;  %v6408_v23 = vld [vmem:[#allocation17 + $0x40] sm:$0xff]  }
 0x60d   :  { %6007 = vmatprep.subr.bf16.mxu1 %v6386_v25 }
 0x60f   :  { %5578 = vmatpush3.bf16.msra.mxu0 %v6382_v22  ;;  %v6407_v22 = vld [vmem:[#allocation17 + $0x8] sm:$0xff]  }
 0x610   :  { %5579 = vmatprep.subr.bf16.mxu0 %v6384_v24  ;;  %6008 = vmatpush3.bf16.msra.mxu1 %v6386_v25  ;;  %v6409_v24 = vld [vmem:[#allocation17 + $0x88] sm:$0xff]   ;;  %v6411_v25 = vld [vmem:[#allocation17 + $0x80] sm:$0xff]  }
 0x611   :  { %6009 = vmatprep.subr.bf16.mxu1 %v6387_v26 }
 0x613   :  { %5580 = vmatpush3.bf16.msra.mxu0 %v6385_v10  ;;  %v6410_v10 = vld [vmem:[#allocation17] sm:$0xff]  }
 0x614   :  { %6010 = vmatpush3.bf16.msra.mxu1 %v6387_v26  ;;  %5603 = vmatprep.subr.bf16.mxu0 %v6388_v27 }
 0x615   :  { %6015 = vmatprep.subr.bf16.mxu1 %v6391_v17 }
 0x6b5   :  { %v5543_v28 = vpop.f32.mrf.mxu0 }
 0x6b7   :  { %v5993_v20 = vpop.f32.mrf.mxu1  ;;  %v5544_v29 = vpop.f32.mrf.mxu0 }
 0x6b8   :  { %v5545_v32 = vadd.f32 %v5544_v29, %v5543_v28  ;;  %v5176_v29 = vld [vmem:[%s7485_s22] ss:$0 sm:$0xff] }
 0x6b9   :  { %v1946_v33 = vpop.f32.mrf.mxu1  ;;  %v5546_v31 = vpop.f32.mrf.mxu0 }
 0x6ba   :  { %v1898_v34 = vadd.f32 %v5545_v32, %v5151_v30 }
 0x6bb   :  { %v5994_v35 = vpop.f32.mrf.mxu1  ;;  %v5547_v36 = vpop.f32.mrf.mxu0 }
 0x6bc   :  { %v1947_v37 = vadd.f32 %v1946_v33, %v1898_v34  ;;  %v5548_v38 = vadd.f32 %v5547_v36, %v5546_v31 }
 0x6bd   :  { %v5549_v39 = vpop.f32.mrf.mxu0  ;;  %v1949_v41 = vpop.f32.mrf.mxu1 }
 0x6be   :  { %1961 = vst [vmem:[#allocation2 + $0x2] sm:$0xff] %v1947_v37  ;;  %v1901_v40 = vadd.f32 %v5548_v38, %v5151_v30 }
 0x6bf   :  { %v5550_v42 = vpop.f32.mrf.mxu0 }
 0x6c0   :  { %v1950_v43 = vadd.f32 %v1949_v41, %v1901_v40  ;;  %v5551_v44 = vadd.f32 %v5550_v42, %v5549_v39 }
 0x6c1   :  { %v5552_v45 = vpop.f32.mrf.mxu0 }
 0x6c2   :  { %1962 = vst [vmem:[#allocation2 + $0xa] sm:$0xff] %v1950_v43  ;;  %v1906_v46 = vadd.f32 %v5551_v44, %v5151_v30  ;;  %v1978_v47 = vpack.c.bf16 %v1950_v43, %v1947_v37 }
 0x6c3   :  { %v5553_v48 = vpop.f32.mrf.mxu0 }
 0x6c4   :  { %v1955_v49 = vadd.f32 %v5993_v20, %v1906_v46  ;;  %v5554_v50 = vadd.f32 %v5553_v48, %v5552_v45  ;;  %2214 = vmatprep.mubr.bf16.mxu0 %v1978_v47 }
 0x6c5   :  { %v1965_v53 = vld [vmem:[#allocation2 + $0x1] sm:$0xff] }
 0x6c6   :  { %1963 = vst [vmem:[#allocation2 + $0x1a] sm:$0xff] %v1955_v49  ;;  %v1909_v51 = vadd.f32 %v5554_v50, %v5151_v30 }
 0x6c8   :  { %v1958_v52 = vadd.f32 %v5994_v35, %v1909_v51 }
 0x6c9   :  { %v1973_v55 = vld [vmem:[#allocation2 + $0x3] sm:$0xff]  ;;  %v1974_v56 = vld [vmem:[#allocation2 + $0xb] sm:$0xff] }
 0x6ca   :  { %v1966_v57 = vld [vmem:[#allocation2 + $0x9] sm:$0xff]  ;;  %1964 = vst [vmem:[#allocation2 + $0x22] sm:$0xff] %v1958_v52  ;;  %v1979_v58 = vpack.c.bf16 %v1974_v56, %v1973_v55  ;;  %v1981_v60 = vpack.c.bf16 %v1958_v52, %v1955_v49 }
 0x6cb   :  { %v1977_v59 = vpack.c.bf16 %v1966_v57, %v1965_v53 }
 0x6cc   :  { %6011 = vmatprep.mubr.bf16.mxu1 %v1979_v58 }
 0x6cd   :  { %2215 = vmatmul.mubr.bf16.vlgmr.msra.gmra.mxu0 %v1977_v59  ;;  %v1967_v62 = vld [vmem:[#allocation2 + $0x19] sm:$0xff] }
 0x6ce   :  { %2222 = vmatprep.mubr.bf16.mxu0 %v1981_v60  ;;  %5604 = vmatpush3.bf16.msra.mxu0 %v6389_v54 }
 0x6cf   :  { %5605 = vmatprep.subr.bf16.mxu0 %v6390_v61 }
 0x6d1   :  { %v1975_v63 = vld [vmem:[#allocation2 + $0x1b] sm:$0xff]  ;;  %v1976_v0 = vld [vmem:[#allocation2 + $0x23] sm:$0xff] }
 0x6d2   :  { %v1968_v1 = vld [vmem:[#allocation2 + $0x21] sm:$0xff]  ;;  %v1982_v3 = vpack.c.bf16 %v1976_v0, %v1975_v63  ;;  %5606 = vmatpush3.bf16.msra.mxu0 %v6392_v5 }
 0x6d3   :  { %v1980_v4 = vpack.c.bf16 %v1968_v1, %v1967_v62  ;;  %5607 = vmatprep.subr.bf16.mxu0 %v6393_v6  ;;  %v5201_v1 = vld [vmem:[%s7486_s17] ss:$0 sm:$0xff] }
 0x6d4   :  { %6012 = vmatmul.mubr.bf16.vlgmr.msra.gmra.mxu1 %v1982_v3 }
 0x6d5   :  { %2223 = vmatmul.mubr.bf16.gmra.mxu0 %v1980_v4  ;;  %6016 = vmatpush3.bf16.msra.mxu1 %v6391_v17 }
 0x6d6   :  { %6017 = vmatprep.subr.bf16.mxu1 %v6394_v7  ;;  %5608 = vmatpush3.bf16.msra.mxu0 %v6395_v8 }
 0x6d7   :  { %5609 = vmatprep.subr.bf16.mxu0 %v6396_v9 }
 0x6d9   :  { %6018 = vmatpush3.bf16.msra.mxu1 %v6394_v7 }
 0x6da   :  { %6019 = vmatprep.subr.bf16.mxu1 %v6397_v11  ;;  %5610 = vmatpush3.bf16.msra.mxu0 %v6398_v12 }
 0x6db   :  { %5611 = vmatprep.subr.bf16.mxu0 %v6399_v13 }
 0x6dd   :  { %6020 = vmatpush3.bf16.msra.mxu1 %v6397_v11 }
 0x6de   :  { %6021 = vmatprep.subr.bf16.mxu1 %v6400_v14  ;;  %5612 = vmatpush3.bf16.msra.mxu0 %v6401_v15 }
 0x6df   :  { %5613 = vmatprep.subr.bf16.mxu0 %v6402_v16 }
 0x6e1   :  { %6022 = vmatpush3.bf16.msra.mxu1 %v6400_v14 }
 0x6e2   :  { %6023 = vmatprep.subr.bf16.mxu1 %v6403_v18  ;;  %5614 = vmatpush3.bf16.msra.mxu0 %v6404_v19 }
 0x6e3   :  { %5615 = vmatprep.subr.bf16.mxu0 %v6405_v21 }
 0x6e5   :  { %6024 = vmatpush3.bf16.msra.mxu1 %v6403_v18 }
 0x6e6   :  { %6025 = vmatprep.subr.bf16.mxu1 %v6406_v2  ;;  %5616 = vmatpush3.bf16.msra.mxu0 %v6407_v22 }
 0x6e7   :  { %5617 = vmatprep.subr.bf16.mxu0 %v6408_v23 }
 0x6e9   :  { %6026 = vmatpush3.bf16.msra.mxu1 %v6406_v2 }
 0x6ea   :  { %6027 = vmatprep.subr.bf16.mxu1 %v6409_v24  ;;  %5618 = vmatpush3.bf16.msra.mxu0 %v6410_v10 }
 0x6ed   :  { %6028 = vmatpush3.bf16.msra.mxu1 %v6409_v24 }
 0x6ee   :  { %6029 = vmatprep.subr.bf16.mxu1 %v6411_v25 }
 0x6f1   :  { %6030 = vmatpush3.bf16.msra.mxu1 %v6411_v25 }
 0x78d   :  { %v5581_v26 = vpop.f32.mrf.mxu0 }
 0x78f   :  { %v5582_v27 = vpop.f32.mrf.mxu0 }
 0x790   :  { %v5583_v28 = vadd.f32 %v5582_v27, %v5581_v26 }
 0x791   :  { %v5584_v17 = vpop.f32.mrf.mxu0 }
 0x792   :  { %v2217_v31 = vadd.f32 %v5583_v28, %v5176_v29 }
 0x793   :  { %v5585_v20 = vpop.f32.mrf.mxu0 }
 0x794   :  { %v6013_v30 = vpop.f32.mrf.mxu1  ;;  %v5586_v33 = vadd.f32 %v5585_v20, %v5584_v17 }
 0x795   :  { %v5587_v32 = vpop.f32.mrf.mxu0 }
 0x796   :  { %v2265_v34 = vpop.f32.mrf.mxu1  ;;  %v2220_v41 = vadd.f32 %v5586_v33, %v5176_v29  ;;  %v6412_v33 = vld [vmem:[#allocation18 + $0x38] sm:$0xff]  }
 0x797   :  { %v5588_v35 = vpop.f32.mrf.mxu0  ;;  %v2266_v36 = vadd.f32 %v2265_v34, %v2217_v31  ;;  %6035 = vmatprep.subr.bf16.mxu0 %v6412_v33  ;;  %v6413_v31 = vld [vmem:[#allocation18 + $0x30] sm:$0xff]   ;;  %v6414_v34 = vld [vmem:[#allocation18 + $0x28] sm:$0xff]  }
 0x798   :  { %v5589_v37 = vadd.f32 %v5588_v35, %v5587_v32  ;;  %v6014_v38 = vpop.f32.mrf.mxu1  ;;  %v6415_v35 = vld [vmem:[#allocation18 + $0x20] sm:$0xff]  }
 0x799   :  { %v5590_v39 = vpop.f32.mrf.mxu0  ;;  %2280 = vst [vmem:[#allocation2 + $0x2] sm:$0xff] %v2266_v36 }
 0x79a   :  { %v2225_v40 = vadd.f32 %v5589_v37, %v5176_v29  ;;  %v2268_v42 = vpop.f32.mrf.mxu1  ;;  %v6417_v37 = vld [vmem:[#allocation18 + $0x10] sm:$0xff]  }
 0x79b   :  { %v5591_v43 = vpop.f32.mrf.mxu0  ;;  %v2269_v45 = vadd.f32 %v2268_v42, %v2220_v41  ;;  %v7389_v41 = vld [vmem:[#allocation20 + $0xb8] sm:$0xff]  }
 0x79c   :  { %v2274_v44 = vadd.f32 %v6013_v30, %v2225_v40  ;;  %v5592_v46 = vadd.f32 %v5591_v43, %v5590_v39  ;;  %v6419_v39 = vld [vmem:[#allocation18] sm:$0xff]   ;;  %v6420_v40 = vld [vmem:[#allocation20 + $0x78] sm:$0xff]   ;;  %v6423_v43 = vld [vmem:[#allocation20 + $0x70] sm:$0xff]  }
 0x79d   :  { %2281 = vst [vmem:[#allocation2 + $0xa] sm:$0xff] %v2269_v45  ;;  %v2297_v48 = vpack.c.bf16 %v2269_v45, %v2266_v36  ;;  %v6416_v36 = vld [vmem:[#allocation18 + $0x18] sm:$0xff]   ;;  %5651 = vmatprep.subr.bf16.mxu1 %v6420_v40  ;;  %v6426_v45 = vld [vmem:[#allocation20 + $0x68] sm:$0xff]  }
 0x79e   :  { %2282 = vst [vmem:[#allocation2 + $0x1a] sm:$0xff] %v2274_v44  ;;  %v2228_v47 = vadd.f32 %v5592_v46, %v5176_v29  ;;  %v6422_v42 = vld [vmem:[#allocation20 + $0x38] sm:$0xff]   ;;  %v6428_v46 = vld [vmem:[#allocation20 + $0x28] sm:$0xff]  }
 0x79f   :  { %2533 = vmatprep.mubr.bf16.mxu0 %v2297_v48  ;;  %v6432_v40 = vld [vmem:[#allocation20 + $0x58] sm:$0xff]  }
 0x7a0   :  { %v2277_v49 = vadd.f32 %v6014_v38, %v2228_v47  ;;  %v2284_v50 = vld [vmem:[#allocation2] sm:$0xff] }
 0x7a1   :  { %v6418_v38 = vld [vmem:[#allocation18 + $0x8] sm:$0xff]  }
 0x7a2   :  { %2283 = vst [vmem:[#allocation2 + $0x22] sm:$0xff] %v2277_v49  ;;  %v2300_v56 = vpack.c.bf16 %v2277_v49, %v2274_v44  ;;  %v6425_v44 = vld [vmem:[#allocation20 + $0x30] sm:$0xff]  }
 0x7a4   :  { %v2292_v51 = vld [vmem:[#allocation2 + $0x4] sm:$0xff]  ;;  %v2293_v52 = vld [vmem:[#allocation2 + $0xc] sm:$0xff] }
 0x7a5   :  { %v2285_v53 = vld [vmem:[#allocation2 + $0x8] sm:$0xff]  ;;  %v2298_v54 = vpack.c.bf16 %v2293_v52, %v2292_v51  ;;  %v2286_v61 = vld [vmem:[#allocation2 + $0x18] sm:$0xff] }
 0x7a6   :  { %v2296_v55 = vpack.c.bf16 %v2285_v53, %v2284_v50 }
 0x7a7   :  { %6031 = vmatprep.mubr.bf16.mxu1 %v2298_v54 }
 0x7a8   :  { %2534 = vmatmul.mubr.bf16.vlgmr.msra.gmra.mxu0 %v2296_v55 }
 0x7a9   :  { %2541 = vmatprep.mubr.bf16.mxu0 %v2300_v56  ;;  %v2294_v57 = vld [vmem:[#allocation2 + $0x1c] sm:$0xff]  ;;  %v2295_v58 = vld [vmem:[#allocation2 + $0x24] sm:$0xff]  ;;  %6036 = vmatpush3.bf16.msra.mxu0 %v6412_v33 }
 0x7aa   :  { %v2301_v59 = vpack.c.bf16 %v2295_v58, %v2294_v57  ;;  %v2287_v60 = vld [vmem:[#allocation2 + $0x20] sm:$0xff]  ;;  %6037 = vmatprep.subr.bf16.mxu0 %v6413_v31 }
 0x7ab   :  { %v2299_v62 = vpack.c.bf16 %v2287_v60, %v2286_v61 }
 0x7ac   :  { %6032 = vmatmul.mubr.bf16.vlgmr.msra.gmra.mxu1 %v2301_v59 }
 0x7ad   :  { %6038 = vmatpush3.bf16.msra.mxu0 %v6413_v31  ;;  %5652 = vmatpush3.bf16.msra.mxu1 %v6422_v42  ;;  %v6433_v42 = vld [vmem:[#allocation20 + $0x98] sm:$0xff]  }
 0x7ae   :  { %6039 = vmatprep.subr.bf16.mxu0 %v6414_v34  ;;  %5653 = vmatprep.subr.bf16.mxu1 %v6423_v43  ;;  %v6434_v43 = vld [vmem:[#allocation20 + $0x18] sm:$0xff]  }
 0x7b0   :  { %2542 = vmatmul.mubr.bf16.gmra.mxu0 %v2299_v62 }
 0x7b1   :  { %6040 = vmatpush3.bf16.msra.mxu0 %v6414_v34  ;;  %5654 = vmatpush3.bf16.msra.mxu1 %v6425_v44  ;;  %v6436_v44 = vld [vmem:[#allocation20 + $0x90] sm:$0xff]  }
 0x7b2   :  { %6041 = vmatprep.subr.bf16.mxu0 %v6415_v35  ;;  %5655 = vmatprep.subr.bf16.mxu1 %v6426_v45  ;;  %v6437_v45 = vld [vmem:[#allocation20 + $0x10] sm:$0xff]  }
 0x7b5   :  { %6042 = vmatpush3.bf16.msra.mxu0 %v6415_v35  ;;  %5656 = vmatpush3.bf16.msra.mxu1 %v6428_v46  ;;  %v6438_v46 = vld [vmem:[#allocation20 + $0x48] sm:$0xff]  }
 0x7b6   :  { %6043 = vmatprep.subr.bf16.mxu0 %v6416_v36 }
 0x7b9   :  { %6044 = vmatpush3.bf16.msra.mxu0 %v6416_v36 }
 0x7ba   :  { %6045 = vmatprep.subr.bf16.mxu0 %v6417_v37 }
 0x7bd   :  { %6046 = vmatpush3.bf16.msra.mxu0 %v6417_v37  ;;  %v6424_v37 = vld [vmem:[#allocation20 + $0xb0] sm:$0xff]  }
 0x7be   :  { %6047 = vmatprep.subr.bf16.mxu0 %v6418_v38 }
 0x7c1   :  { %6048 = vmatpush3.bf16.msra.mxu0 %v6418_v38  ;;  %v6429_v38 = vld [vmem:[#allocation20 + $0x60] sm:$0xff]  }
 0x7c2   :  { %6049 = vmatprep.subr.bf16.mxu0 %v6419_v39  ;;  %5657 = vmatprep.subr.bf16.mxu1 %v6429_v38 }
 0x7c5   :  { %6050 = vmatpush3.bf16.msra.mxu0 %v6419_v39  ;;  %v6431_v39 = vld [vmem:[#allocation20 + $0x20] sm:$0xff]  }
 0x7c6   :  { %6055 = vmatprep.subr.bf16.mxu0 %v7389_v41  ;;  %5658 = vmatpush3.bf16.msra.mxu1 %v6431_v39 }
 0x7c7   :  { %5659 = vmatprep.subr.bf16.mxu1 %v6432_v40  ;;  %v5237_v40 = vld [vmem:[%s7490_s23] ss:$0 sm:$0xff] }
 0x7ca   :  { %5660 = vmatpush3.bf16.msra.mxu1 %v6434_v43 }
 0x868   :  { %v5619_v63 = vpop.f32.mrf.mxu0 }
 0x86a   :  { %v5620_v0 = vpop.f32.mrf.mxu0 }
 0x86b   :  { %v5621_v3 = vadd.f32 %v5620_v0, %v5619_v63 }
 0x86c   :  { %v5622_v4 = vpop.f32.mrf.mxu0  ;;  %v6033_v5 = vpop.f32.mrf.mxu1 }
 0x86d   :  { %v2536_v6 = vadd.f32 %v5621_v3, %v5201_v1 }
 0x86e   :  { %v5623_v7 = vpop.f32.mrf.mxu0  ;;  %v2584_v8 = vpop.f32.mrf.mxu1 }
 0x86f   :  { %v5624_v9 = vadd.f32 %v5623_v7, %v5622_v4  ;;  %v2585_v11 = vadd.f32 %v2584_v8, %v2536_v6 }
 0x870   :  { %v5625_v12 = vpop.f32.mrf.mxu0  ;;  %v6034_v13 = vpop.f32.mrf.mxu1 }
 0x871   :  { %v7369_v14 = vmax.f32 %v2585_v11, 0.0  ;;  %v2539_v15 = vadd.f32 %v5624_v9, %v5201_v1 }
 0x872   :  { %v5626_v16 = vpop.f32.mrf.mxu0  ;;  %v2587_v18 = vpop.f32.mrf.mxu1 }
 0x873   :  { %v5627_v19 = vadd.f32 %v5626_v16, %v5625_v12  ;;  %v2588_v21 = vadd.f32 %v2587_v18, %v2539_v15  ;;  %2603 = vadd.xlane.f32.xlu0 %v7369_v14  ;;  %v2615_v24 = vmul.f32 %v7369_v14, %v7369_v14  ;;  %v5226_v18 = vld [vmem:[%s7487_s3] ss:$0 sm:$0xff] }
 0x874   :  { %v5628_v2 = vpop.f32.mrf.mxu0 }
 0x875   :  { %v2544_v22 = vadd.f32 %v5627_v19, %v5201_v1  ;;  %v7372_v23 = vmax.f32 %v2588_v21, 0.0 }
 0x876   :  { %v5629_v10 = vpop.f32.mrf.mxu0 }
 0x877   :  { %v5630_v25 = vadd.f32 %v5629_v10, %v5628_v2  ;;  %2605 = vadd.xlane.f32.xlu1 %v7372_v23  ;;  %2619 = vadd.xlane.f32.xlu0 %v2615_v24  ;;  %v2593_v26 = vadd.f32 %v6033_v5, %v2544_v22  ;;  %v2616_v17 = vmul.f32 %v7372_v23, %v7372_v23  ;;  %v5227_v24 = vld [vmem:[%s7488_s20] ss:$0 sm:$0xff] }
 0x879   :  { %v2547_v27 = vadd.f32 %v5630_v25, %v5201_v1  ;;  %v7379_v28 = vmax.f32 %v2593_v26, 0.0 }
 0x87b   :  { %2621 = vadd.xlane.f32.xlu1 %v2616_v17  ;;  %2607 = vadd.xlane.f32.xlu0 %v7379_v28  ;;  %v2596_v20 = vadd.f32 %v6034_v13, %v2547_v27  ;;  %v2617_v30 = vmul.f32 %v7379_v28, %v7379_v28 }
 0x87d   :  { %v7382_v29 = vmax.f32 %v2596_v20, 0.0 }
 0x87f   :  { %2609 = vadd.xlane.f32.xlu1 %v7382_v29  ;;  %2623 = vadd.xlane.f32.xlu0 %v2617_v30  ;;  %v2618_v32 = vmul.f32 %v7382_v29, %v7382_v29 }
 0x883   :  { %2625 = vadd.xlane.f32.xlu1 %v2618_v32 }
 0x8fc   :  { %v2604_v47 = vpop.xlane.xlu0 %2603 }
 0x8fd   :  { %v2611_v48 = vmul.f32 0.03125, %v2604_v47  ;;  %v6439_v47 = vld [vmem:[#allocation20 + $0x88] sm:$0xff]  }
 0x8ff   :  { %v2631_v51 = vmul.f32 %v2611_v48, %v2611_v48  ;;  %v2639_v13 = vsub.f32 %v7369_v14, %v2611_v48  ;;  %v6440_v48 = vld [vmem:[#allocation20 + $0x8] sm:$0xff]  }
 0x900   :  { %v2606_v49 = vpop.xlane.xlu1 %2605  ;;  %v2620_v50 = vpop.xlane.xlu0 %2619 }
 0x901   :  { %v2612_v52 = vmul.f32 0.03125, %v2606_v49  ;;  %v2627_v53 = vmul.f32 0.03125, %v2620_v50  ;;  %v6441_v49 = vld [vmem:[#allocation20 + $0x40] sm:$0xff]  }
 0x902   :  { %v6442_v50 = vld [vmem:[#allocation20 + $0x80] sm:$0xff]  }
 0x903   :  { %v2635_v54 = vsub.f32 %v2627_v53, %v2631_v51  ;;  %v2632_v57 = vmul.f32 %v2612_v52, %v2612_v52  ;;  %v2640_v19 = vsub.f32 %v7372_v23, %v2612_v52  ;;  %v6443_v51 = vld [vmem:[#allocation20] sm:$0xff]   ;;  %v6444_v52 = vld [vmem:[#allocation21 + $0x78] sm:$0xff]  }
 0x904   :  { %v2622_v55 = vpop.xlane.xlu1 %2621  ;;  %v2608_v56 = vpop.xlane.xlu0 %2607  ;;  %v6448_v53 = vld [vmem:[#allocation21 + $0xb8] sm:$0xff]  }
 0x905   :  { %v2643_v58 = vadd.f32 1e-05, %v2635_v54  ;;  %v2628_v59 = vmul.f32 0.03125, %v2622_v55  ;;  %v2613_v60 = vmul.f32 0.03125, %v2608_v56  ;;  %v5228_v54 = vld [vmem:[%s7489_s19] ss:$0 sm:$0xff] }
 0x907   :  { %6580 = vrsqrt.f32 %v2643_v58  ;;  %v2636_v61 = vsub.f32 %v2628_v59, %v2632_v57  ;;  %v2633_v1 = vmul.f32 %v2613_v60, %v2613_v60  ;;  %v2641_v10 = vsub.f32 %v7379_v28, %v2613_v60  ;;  %v6427_v28 = vld [vmem:[#allocation20 + $0xa8] sm:$0xff]  }
 0x908   :  { %v2610_v62 = vpop.xlane.xlu1 %2609  ;;  %v2624_v63 = vpop.xlane.xlu0 %2623 }
 0x909   :  { %v2644_v0 = vadd.f32 1e-05, %v2636_v61  ;;  %v2614_v3 = vmul.f32 0.03125, %v2610_v62  ;;  %v2629_v4 = vmul.f32 0.03125, %v2624_v63 }
 0x90b   :  { %6582 = vrsqrt.f32 %v2644_v0  ;;  %v2637_v5 = vsub.f32 %v2629_v4, %v2633_v1  ;;  %v2634_v7 = vmul.f32 %v2614_v3, %v2614_v3  ;;  %v2642_v30 = vsub.f32 %v7382_v29, %v2614_v3  ;;  %v6430_v29 = vld [vmem:[#allocation20 + $0xa0] sm:$0xff]  }
 0x90c   :  { %v2626_v6 = vpop.xlane.xlu1 %2625 }
 0x90d   :  { %v2645_v8 = vadd.f32 1e-05, %v2637_v5  ;;  %v2630_v9 = vmul.f32 0.03125, %v2626_v6 }
 0x90f   :  { %6584 = vrsqrt.f32 %v2645_v8  ;;  %v2638_v11 = vsub.f32 %v2630_v9, %v2634_v7  ;;  %v6445_v9 = vld [vmem:[#allocation21 + $0x38] sm:$0xff]  }
 0x911   :  { %v2646_v12 = vadd.f32 1e-05, %v2638_v11 }
 0x913   :  { %6586 = vrsqrt.f32 %v2646_v12 }
 0x914   :  { %v6581_v15 = vpop.eup %6580 }
 0x915   :  { %v2651_v16 = vmul.f32 %v6581_v15, %v2639_v13  ;;  %v6446_v13 = vld [vmem:[#allocation21 + $0x70] sm:$0xff]  }
 0x916   :  { %v6447_v15 = vld [vmem:[#allocation21 + $0x30] sm:$0xff]  }
 0x917   :  { %v2662_v22 = vmul.f32 %v5226_v18, %v2651_v16 }
 0x918   :  { %v6583_v21 = vpop.eup %6582 }
 0x919   :  { %v2652_v2 = vmul.f32 %v6583_v21, %v2640_v19  ;;  %v2673_v17 = vadd.f32 %v5227_v24, %v2662_v22  ;;  %v6449_v21 = vld [vmem:[#allocation21 + $0x68] sm:$0xff]   ;;  %v6451_v22 = vld [vmem:[#allocation21 + $0xb0] sm:$0xff]  }
 0x91b   :  { %v2663_v25 = vmul.f32 %v5226_v18, %v2652_v2  ;;  %v6450_v2 = vld [vmem:[#allocation21 + $0x28] sm:$0xff]  }
 0x91c   :  { %v6585_v26 = vpop.eup %6584 }
 0x91d   :  { %v2653_v27 = vmul.f32 %v6585_v26, %v2641_v10  ;;  %v2674_v20 = vadd.f32 %v5227_v24, %v2663_v25  ;;  %v6453_v10 = vld [vmem:[#allocation21 + $0x20] sm:$0xff]   ;;  %v6454_v25 = vld [vmem:[#allocation21 + $0xa8] sm:$0xff]   ;;  %v6455_v26 = vld [vmem:[#allocation21 + $0x58] sm:$0xff]  }
 0x91f   :  { %v2677_v14 = vpack.c.bf16 %v2674_v20, %v2673_v17  ;;  %v2664_v31 = vmul.f32 %v5226_v18, %v2653_v27  ;;  %v6456_v27 = vld [vmem:[#allocation21 + $0x18] sm:$0xff]   ;;  %v6457_v17 = vld [vmem:[#allocation21 + $0xa0] sm:$0xff]   ;;  %v6458_v20 = vld [vmem:[#allocation21 + $0x50] sm:$0xff]  }
 0x920   :  { %v6587_v32 = vpop.eup %6586 }
 0x921   :  { %v2654_v33 = vmul.f32 %v6587_v32, %v2642_v30  ;;  %6051 = vmatprep.mubr.bf16.mxu0 %v2677_v14  ;;  %v2675_v23 = vadd.f32 %v5227_v24, %v2664_v31  ;;  %v6459_v30 = vld [vmem:[#allocation21 + $0x10] sm:$0xff]   ;;  %v6460_v14 = vld [vmem:[#allocation21 + $0x98] sm:$0xff]   ;;  %v6461_v32 = vld [vmem:[#allocation21 + $0x48] sm:$0xff]  }
 0x922   :  { %v6463_v31 = vld [vmem:[#allocation21 + $0x90] sm:$0xff]  }
 0x923   :  { %v2665_v34 = vmul.f32 %v5226_v18, %v2654_v33  ;;  %v6462_v33 = vld [vmem:[#allocation21 + $0x8] sm:$0xff]  }
 0x925   :  { %v2676_v35 = vadd.f32 %v5227_v24, %v2665_v34  ;;  %v6452_v24 = vld [vmem:[#allocation21 + $0x60] sm:$0xff]  }
 0x926   :  { %v6464_v34 = vld [vmem:[#allocation21 + $0x40] sm:$0xff]  }
 0x927   :  { %v2678_v36 = vpack.c.bf16 %v2676_v35, %v2675_v23  ;;  %v6465_v23 = vld [vmem:[#allocation21] sm:$0xff]   ;;  %v6466_v35 = vld [vmem:[#allocation21 + $0x88] sm:$0xff]  }
 0x929   :  { %6052 = vmatmul.mubr.bf16.vlgmr.msra.gmra.mxu0 %v2678_v36  ;;  %v6467_v36 = vld [vmem:[#allocation21 + $0x80] sm:$0xff]  }
 0x92a   :  { %6056 = vmatpush3.bf16.msra.mxu0 %v7389_v41  ;;  %v6435_v41 = vld [vmem:[#allocation20 + $0x50] sm:$0xff]  }
 0x92b   :  { %6057 = vmatprep.subr.bf16.mxu0 %v6424_v37  ;;  %5661 = vmatprep.subr.bf16.mxu1 %v6435_v41 }
 0x92c   :  { %5662 = vmatpush3.bf16.msra.mxu1 %v6437_v45 }
 0x92d   :  { %5663 = vmatprep.subr.bf16.mxu1 %v6438_v46 }
 0x92e   :  { %6058 = vmatpush3.bf16.msra.mxu0 %v6424_v37  ;;  %v6468_v37 = vld [vmem:[#allocation23 + $0x78] sm:$0xff]  }
 0x92f   :  { %6059 = vmatprep.subr.bf16.mxu0 %v6427_v28 }
 0x930   :  { %5664 = vmatpush3.bf16.msra.mxu1 %v6440_v48 }
 0x931   :  { %5665 = vmatprep.subr.bf16.mxu1 %v6441_v49 }
 0x932   :  { %6060 = vmatpush3.bf16.msra.mxu0 %v6427_v28  ;;  %v6471_v28 = vld [vmem:[#allocation23 + $0xb8] sm:$0xff]  }
 0x933   :  { %6061 = vmatprep.subr.bf16.mxu0 %v6430_v29 }
 0x934   :  { %5666 = vmatpush3.bf16.msra.mxu1 %v6443_v51 }
 0x935   :  { %5689 = vmatprep.subr.bf16.mxu1 %v6444_v52 }
 0x936   :  { %6062 = vmatpush3.bf16.msra.mxu0 %v6430_v29 }
 0x937   :  { %6063 = vmatprep.subr.bf16.mxu0 %v6433_v42 }
 0x93a   :  { %6064 = vmatpush3.bf16.msra.mxu0 %v6433_v42 }
 0x93b   :  { %6065 = vmatprep.subr.bf16.mxu0 %v6436_v44 }
 0x93e   :  { %6066 = vmatpush3.bf16.msra.mxu0 %v6436_v44 }
 0x93f   :  { %6067 = vmatprep.subr.bf16.mxu0 %v6439_v47 }
 0x942   :  { %6068 = vmatpush3.bf16.msra.mxu0 %v6439_v47 }
 0x943   :  { %6069 = vmatprep.subr.bf16.mxu0 %v6442_v50 }
 0x946   :  { %6070 = vmatpush3.bf16.msra.mxu0 %v6442_v50 }
 0x947   :  { %6075 = vmatprep.subr.bf16.mxu0 %v6448_v53 }
 0x9e9   :  { %v6053_v55 = vpop.f32.mrf.mxu0 }
 0x9ea   :  { %v2793_v56 = vadd.f32 %v6053_v55, %v5228_v54 }
 0x9eb   :  { %v2784_v57 = vpop.f32.mrf.mxu0 }
 0x9ec   :  { %2801 = vst [vmem:[#allocation2 + $0x1a] sm:$0xff] %v2793_v56  ;;  %v2785_v58 = vadd.f32 %v5228_v54, %v2784_v57 }
 0x9ed   :  { %v6054_v59 = vpop.f32.mrf.mxu0 }
 0x9ee   :  { %2799 = vst [vmem:[#allocation2 + $0x2] sm:$0xff] %v2785_v58  ;;  %v2796_v60 = vadd.f32 %v6054_v59, %v5228_v54 }
 0x9ef   :  { %v2787_v61 = vpop.f32.mrf.mxu0 }
 0x9f0   :  { %2802 = vst [vmem:[#allocation2 + $0x22] sm:$0xff] %v2796_v60  ;;  %v2788_v62 = vadd.f32 %v5228_v54, %v2787_v61  ;;  %v2819_v12 = vpack.c.bf16 %v2796_v60, %v2793_v56 }
 0x9f2   :  { %2800 = vst [vmem:[#allocation2 + $0xa] sm:$0xff] %v2788_v62  ;;  %v2816_v63 = vpack.c.bf16 %v2788_v62, %v2785_v58 }
 0x9f3   :  { %v2805_v18 = vld [vmem:[#allocation2 + $0x19] sm:$0xff] }
 0x9f4   :  { %3052 = vmatprep.mubr.bf16.mxu1 %v2816_v63 }
 0x9f5   :  { %v2803_v0 = vld [vmem:[#allocation2 + $0x1] sm:$0xff] }
 0x9f7   :  { %v2813_v1 = vld [vmem:[#allocation2 + $0x1b] sm:$0xff]  ;;  %v2814_v3 = vld [vmem:[#allocation2 + $0x23] sm:$0xff] }
 0x9f8   :  { %v2820_v11 = vpack.c.bf16 %v2814_v3, %v2813_v1  ;;  %v2806_v16 = vld [vmem:[#allocation2 + $0x21] sm:$0xff] }
 0x9f9   :  { %v2811_v4 = vld [vmem:[#allocation2 + $0x3] sm:$0xff]  ;;  %v2812_v5 = vld [vmem:[#allocation2 + $0xb] sm:$0xff]  ;;  %v2818_v19 = vpack.c.bf16 %v2806_v16, %v2805_v18 }
 0x9fa   :  { %v2804_v6 = vld [vmem:[#allocation2 + $0x9] sm:$0xff]  ;;  %v2817_v7 = vpack.c.bf16 %v2812_v5, %v2811_v4 }
 0x9fb   :  { %v2815_v8 = vpack.c.bf16 %v2804_v6, %v2803_v0  ;;  %v6469_v0 = vld [vmem:[#allocation23 + $0x38] sm:$0xff]   ;;  %v6472_v18 = vld [vmem:[#allocation23 + $0x30] sm:$0xff]  }
 0x9fc   :  { %6071 = vmatprep.mubr.bf16.mxu0 %v2817_v7 }
 0x9fd   :  { %3053 = vmatmul.mubr.bf16.vlgmr.msra.gmra.mxu1 %v2815_v8  ;;  %6072 = vmatmul.mubr.bf16.vlgmr.msra.gmra.mxu0 %v2820_v11  ;;  %v6470_v8 = vld [vmem:[#allocation23 + $0x70] sm:$0xff]  }
 0x9fe   :  { %3060 = vmatprep.mubr.bf16.mxu1 %v2819_v12  ;;  %5690 = vmatpush3.bf16.msra.mxu1 %v6445_v9 }
 0x9ff   :  { %6076 = vmatpush3.bf16.msra.mxu0 %v6448_v53  ;;  %5691 = vmatprep.subr.bf16.mxu1 %v6446_v13 }
 0xa00   :  { %6077 = vmatprep.subr.bf16.mxu0 %v6451_v22 }
 0xa02   :  { %5692 = vmatpush3.bf16.msra.mxu1 %v6447_v15 }
 0xa03   :  { %5693 = vmatprep.subr.bf16.mxu1 %v6449_v21  ;;  %6078 = vmatpush3.bf16.msra.mxu0 %v6451_v22  ;;  %v6474_v21 = vld [vmem:[#allocation23 + $0xb0] sm:$0xff]   ;;  %v6476_v22 = vld [vmem:[#allocation23 + $0x60] sm:$0xff]  }
 0xa04   :  { %6079 = vmatprep.subr.bf16.mxu0 %v6454_v25 }
 0xa05   :  { %3061 = vmatmul.mubr.bf16.gmra.mxu1 %v2818_v19  ;;  %v6473_v19 = vld [vmem:[#allocation23 + $0x68] sm:$0xff]  }
 0xa06   :  { %5694 = vmatpush3.bf16.msra.mxu1 %v6450_v2  ;;  %v6475_v2 = vld [vmem:[#allocation23 + $0x28] sm:$0xff]  }
 0xa07   :  { %5695 = vmatprep.subr.bf16.mxu1 %v6452_v24  ;;  %6080 = vmatpush3.bf16.msra.mxu0 %v6454_v25  ;;  %v6477_v24 = vld [vmem:[#allocation23 + $0xa8] sm:$0xff]   ;;  %v6479_v25 = vld [vmem:[#allocation23 + $0x58] sm:$0xff]  }
 0xa08   :  { %6081 = vmatprep.subr.bf16.mxu0 %v6457_v17 }
 0xa0a   :  { %5696 = vmatpush3.bf16.msra.mxu1 %v6453_v10  ;;  %v6478_v10 = vld [vmem:[#allocation23 + $0x20] sm:$0xff]  }
 0xa0b   :  { %5697 = vmatprep.subr.bf16.mxu1 %v6455_v26  ;;  %6082 = vmatpush3.bf16.msra.mxu0 %v6457_v17  ;;  %v6480_v26 = vld [vmem:[#allocation23 + $0xa0] sm:$0xff]   ;;  %v6482_v17 = vld [vmem:[#allocation23 + $0x50] sm:$0xff]  }
 0xa0c   :  { %6083 = vmatprep.subr.bf16.mxu0 %v6460_v14 }
 0xa0e   :  { %5698 = vmatpush3.bf16.msra.mxu1 %v6456_v27  ;;  %v6481_v27 = vld [vmem:[#allocation23 + $0x18] sm:$0xff]  }
 0xa0f   :  { %5699 = vmatprep.subr.bf16.mxu1 %v6458_v20  ;;  %6084 = vmatpush3.bf16.msra.mxu0 %v6460_v14  ;;  %v6483_v20 = vld [vmem:[#allocation23 + $0x98] sm:$0xff]   ;;  %v6485_v14 = vld [vmem:[#allocation23 + $0x48] sm:$0xff]  }
 0xa10   :  { %6085 = vmatprep.subr.bf16.mxu0 %v6463_v31 }
 0xa12   :  { %5700 = vmatpush3.bf16.msra.mxu1 %v6459_v30  ;;  %v6484_v30 = vld [vmem:[#allocation23 + $0x10] sm:$0xff]  }
 0xa13   :  { %5701 = vmatprep.subr.bf16.mxu1 %v6461_v32  ;;  %6086 = vmatpush3.bf16.msra.mxu0 %v6463_v31  ;;  %v6486_v32 = vld [vmem:[#allocation23 + $0x90] sm:$0xff]   ;;  %v6488_v31 = vld [vmem:[#allocation23 + $0x40] sm:$0xff]  }
 0xa14   :  { %6087 = vmatprep.subr.bf16.mxu0 %v6466_v35 }
 0xa16   :  { %5702 = vmatpush3.bf16.msra.mxu1 %v6462_v33  ;;  %v6487_v33 = vld [vmem:[#allocation23 + $0x8] sm:$0xff]  }
 0xa17   :  { %5703 = vmatprep.subr.bf16.mxu1 %v6464_v34  ;;  %6088 = vmatpush3.bf16.msra.mxu0 %v6466_v35  ;;  %v6489_v34 = vld [vmem:[#allocation23 + $0x88] sm:$0xff]   ;;  %v6491_v35 = vld [vmem:[#allocation23 + $0x80] sm:$0xff]  }
 0xa18   :  { %6089 = vmatprep.subr.bf16.mxu0 %v6467_v36 }
 0xa1a   :  { %5704 = vmatpush3.bf16.msra.mxu1 %v6465_v23  ;;  %v6490_v23 = vld [vmem:[#allocation23] sm:$0xff]  }
 0xa1b   :  { %6090 = vmatpush3.bf16.msra.mxu0 %v6467_v36  ;;  %5727 = vmatprep.subr.bf16.mxu1 %v6468_v37 }
 0xa1c   :  { %6095 = vmatprep.subr.bf16.mxu0 %v6471_v28 }
 0xabd   :  { %v5667_v38 = vpop.f32.mrf.mxu1  ;;  %v6073_v29 = vpop.f32.mrf.mxu0 }
 0xabf   :  { %v5668_v39 = vpop.f32.mrf.mxu1  ;;  %v3103_v43 = vpop.f32.mrf.mxu0 }
 0xac0   :  { %v5669_v42 = vadd.f32 %v5668_v39, %v5667_v38  ;;  %v5262_v39 = vld [vmem:[%s7491_s26] ss:$0 sm:$0xff] }
 0xac1   :  { %v5670_v41 = vpop.f32.mrf.mxu1  ;;  %v6074_v45 = vpop.f32.mrf.mxu0 }
 0xac2   :  { %v3055_v44 = vadd.f32 %v5669_v42, %v5237_v40 }
 0xac3   :  { %v5671_v46 = vpop.f32.mrf.mxu1  ;;  %v3106_v51 = vpop.f32.mrf.mxu0 }
 0xac4   :  { %v3104_v47 = vadd.f32 %v3103_v43, %v3055_v44  ;;  %v5672_v48 = vadd.f32 %v5671_v46, %v5670_v41 }
 0xac5   :  { %v5673_v49 = vpop.f32.mrf.mxu1 }
 0xac6   :  { %3118 = vst [vmem:[#allocation2 + $0x2] sm:$0xff] %v3104_v47  ;;  %v3058_v50 = vadd.f32 %v5672_v48, %v5237_v40 }
 0xac7   :  { %v5674_v52 = vpop.f32.mrf.mxu1 }
 0xac8   :  { %v3107_v53 = vadd.f32 %v3106_v51, %v3058_v50  ;;  %v5675_v54 = vadd.f32 %v5674_v52, %v5673_v49 }
 0xac9   :  { %v5676_v55 = vpop.f32.mrf.mxu1 }
 0xaca   :  { %3119 = vst [vmem:[#allocation2 + $0xa] sm:$0xff] %v3107_v53  ;;  %v3063_v56 = vadd.f32 %v5675_v54, %v5237_v40  ;;  %v3135_v57 = vpack.c.bf16 %v3107_v53, %v3104_v47 }
 0xacb   :  { %v5677_v58 = vpop.f32.mrf.mxu1 }
 0xacc   :  { %v3112_v59 = vadd.f32 %v6073_v29, %v3063_v56  ;;  %v5678_v60 = vadd.f32 %v5677_v58, %v5676_v55  ;;  %3371 = vmatprep.mubr.bf16.mxu1 %v3135_v57 }
 0xacd   :  { %v3122_v63 = vld [vmem:[#allocation2 + $0x1] sm:$0xff] }
 0xace   :  { %3120 = vst [vmem:[#allocation2 + $0x1a] sm:$0xff] %v3112_v59  ;;  %v3066_v61 = vadd.f32 %v5678_v60, %v5237_v40 }
 0xad0   :  { %v3115_v62 = vadd.f32 %v6074_v45, %v3066_v61 }
 0xad1   :  { %v3130_v1 = vld [vmem:[#allocation2 + $0x3] sm:$0xff]  ;;  %v3131_v3 = vld [vmem:[#allocation2 + $0xb] sm:$0xff] }
 0xad2   :  { %v3123_v4 = vld [vmem:[#allocation2 + $0x9] sm:$0xff]  ;;  %3121 = vst [vmem:[#allocation2 + $0x22] sm:$0xff] %v3115_v62  ;;  %v3136_v5 = vpack.c.bf16 %v3131_v3, %v3130_v1  ;;  %v3138_v7 = vpack.c.bf16 %v3115_v62, %v3112_v59 }
 0xad3   :  { %v3134_v6 = vpack.c.bf16 %v3123_v4, %v3122_v63 }
 0xad4   :  { %6091 = vmatprep.mubr.bf16.mxu0 %v3136_v5 }
 0xad5   :  { %3372 = vmatmul.mubr.bf16.vlgmr.msra.gmra.mxu1 %v3134_v6  ;;  %v3124_v9 = vld [vmem:[#allocation2 + $0x19] sm:$0xff] }
 0xad6   :  { %3379 = vmatprep.mubr.bf16.mxu1 %v3138_v7  ;;  %5728 = vmatpush3.bf16.msra.mxu1 %v6469_v0 }
 0xad7   :  { %5729 = vmatprep.subr.bf16.mxu1 %v6470_v8 }
 0xad9   :  { %v3132_v11 = vld [vmem:[#allocation2 + $0x1b] sm:$0xff]  ;;  %v3133_v12 = vld [vmem:[#allocation2 + $0x23] sm:$0xff] }
 0xada   :  { %v3125_v13 = vld [vmem:[#allocation2 + $0x21] sm:$0xff]  ;;  %v3139_v15 = vpack.c.bf16 %v3133_v12, %v3132_v11  ;;  %5730 = vmatpush3.bf16.msra.mxu1 %v6472_v18 }
 0xadb   :  { %v3137_v16 = vpack.c.bf16 %v3125_v13, %v3124_v9  ;;  %5731 = vmatprep.subr.bf16.mxu1 %v6473_v19  ;;  %v5287_v13 = vld [vmem:[%s7492_s6] ss:$0 sm:$0xff] }
 0xadc   :  { %6092 = vmatmul.mubr.bf16.vlgmr.msra.gmra.mxu0 %v3139_v15 }
 0xadd   :  { %3380 = vmatmul.mubr.bf16.gmra.mxu1 %v3137_v16  ;;  %6096 = vmatpush3.bf16.msra.mxu0 %v6471_v28 }
 0xade   :  { %6097 = vmatprep.subr.bf16.mxu0 %v6474_v21  ;;  %5732 = vmatpush3.bf16.msra.mxu1 %v6475_v2 }
 0xadf   :  { %5733 = vmatprep.subr.bf16.mxu1 %v6476_v22 }
 0xae1   :  { %6098 = vmatpush3.bf16.msra.mxu0 %v6474_v21 }
 0xae2   :  { %6099 = vmatprep.subr.bf16.mxu0 %v6477_v24  ;;  %5734 = vmatpush3.bf16.msra.mxu1 %v6478_v10 }
 0xae3   :  { %5735 = vmatprep.subr.bf16.mxu1 %v6479_v25 }
 0xae5   :  { %6100 = vmatpush3.bf16.msra.mxu0 %v6477_v24 }
 0xae6   :  { %6101 = vmatprep.subr.bf16.mxu0 %v6480_v26  ;;  %5736 = vmatpush3.bf16.msra.mxu1 %v6481_v27 }
 0xae7   :  { %5737 = vmatprep.subr.bf16.mxu1 %v6482_v17 }
 0xae9   :  { %6102 = vmatpush3.bf16.msra.mxu0 %v6480_v26 }
 0xaea   :  { %6103 = vmatprep.subr.bf16.mxu0 %v6483_v20  ;;  %5738 = vmatpush3.bf16.msra.mxu1 %v6484_v30 }
 0xaeb   :  { %5739 = vmatprep.subr.bf16.mxu1 %v6485_v14 }
 0xaed   :  { %6104 = vmatpush3.bf16.msra.mxu0 %v6483_v20 }
 0xaee   :  { %6105 = vmatprep.subr.bf16.mxu0 %v6486_v32  ;;  %5740 = vmatpush3.bf16.msra.mxu1 %v6487_v33 }
 0xaef   :  { %5741 = vmatprep.subr.bf16.mxu1 %v6488_v31 }
 0xaf1   :  { %6106 = vmatpush3.bf16.msra.mxu0 %v6486_v32 }
 0xaf2   :  { %6107 = vmatprep.subr.bf16.mxu0 %v6489_v34  ;;  %5742 = vmatpush3.bf16.msra.mxu1 %v6490_v23 }
 0xaf5   :  { %6108 = vmatpush3.bf16.msra.mxu0 %v6489_v34 }
 0xaf6   :  { %6109 = vmatprep.subr.bf16.mxu0 %v6491_v35 }
 0xaf9   :  { %6110 = vmatpush3.bf16.msra.mxu0 %v6491_v35 }
 0xb95   :  { %v5705_v36 = vpop.f32.mrf.mxu1 }
 0xb97   :  { %v5706_v37 = vpop.f32.mrf.mxu1 }
 0xb98   :  { %v5707_v38 = vadd.f32 %v5706_v37, %v5705_v36 }
 0xb99   :  { %v5708_v28 = vpop.f32.mrf.mxu1 }
 0xb9a   :  { %v3374_v41 = vadd.f32 %v5707_v38, %v5262_v39 }
 0xb9b   :  { %v5709_v29 = vpop.f32.mrf.mxu1 }
 0xb9c   :  { %v6093_v40 = vpop.f32.mrf.mxu0  ;;  %v5710_v43 = vadd.f32 %v5709_v29, %v5708_v28 }
 0xb9d   :  { %v5711_v42 = vpop.f32.mrf.mxu1 }
 0xb9e   :  { %v3422_v44 = vpop.f32.mrf.mxu0  ;;  %v3377_v51 = vadd.f32 %v5710_v43, %v5262_v39  ;;  %v6492_v43 = vld [vmem:[#allocation24 + $0x38] sm:$0xff]  }
 0xb9f   :  { %v5712_v45 = vpop.f32.mrf.mxu1  ;;  %v3423_v46 = vadd.f32 %v3422_v44, %v3374_v41  ;;  %6115 = vmatprep.subr.bf16.mxu1 %v6492_v43  ;;  %v6493_v41 = vld [vmem:[#allocation24 + $0x30] sm:$0xff]   ;;  %v6494_v44 = vld [vmem:[#allocation24 + $0x28] sm:$0xff]  }
 0xba0   :  { %v5713_v47 = vadd.f32 %v5712_v45, %v5711_v42  ;;  %v6094_v48 = vpop.f32.mrf.mxu0  ;;  %v6495_v45 = vld [vmem:[#allocation24 + $0x20] sm:$0xff]  }
 0xba1   :  { %v5714_v49 = vpop.f32.mrf.mxu1  ;;  %3437 = vst [vmem:[#allocation2 + $0x2] sm:$0xff] %v3423_v46 }
 0xba2   :  { %v3382_v50 = vadd.f32 %v5713_v47, %v5262_v39  ;;  %v3425_v52 = vpop.f32.mrf.mxu0  ;;  %v6497_v47 = vld [vmem:[#allocation24 + $0x10] sm:$0xff]  }
 0xba3   :  { %v5715_v53 = vpop.f32.mrf.mxu1  ;;  %v3426_v55 = vadd.f32 %v3425_v52, %v3377_v51  ;;  %v7423_v51 = vld [vmem:[#allocation26 + $0xb8] sm:$0xff]  }
 0xba4   :  { %v3431_v54 = vadd.f32 %v6093_v40, %v3382_v50  ;;  %v5716_v56 = vadd.f32 %v5715_v53, %v5714_v49  ;;  %v6499_v49 = vld [vmem:[#allocation24] sm:$0xff]   ;;  %v6500_v50 = vld [vmem:[#allocation26 + $0x78] sm:$0xff]   ;;  %v6503_v53 = vld [vmem:[#allocation26 + $0x70] sm:$0xff]  }
 0xba5   :  { %3438 = vst [vmem:[#allocation2 + $0xa] sm:$0xff] %v3426_v55  ;;  %v3454_v58 = vpack.c.bf16 %v3426_v55, %v3423_v46  ;;  %v6496_v46 = vld [vmem:[#allocation24 + $0x18] sm:$0xff]   ;;  %5775 = vmatprep.subr.bf16.mxu0 %v6500_v50  ;;  %v6506_v55 = vld [vmem:[#allocation26 + $0x68] sm:$0xff]  }
 0xba6   :  { %3439 = vst [vmem:[#allocation2 + $0x1a] sm:$0xff] %v3431_v54  ;;  %v3385_v57 = vadd.f32 %v5716_v56, %v5262_v39  ;;  %v6502_v52 = vld [vmem:[#allocation26 + $0x38] sm:$0xff]   ;;  %v6508_v56 = vld [vmem:[#allocation26 + $0x28] sm:$0xff]  }
 0xba7   :  { %3690 = vmatprep.mubr.bf16.mxu1 %v3454_v58  ;;  %v6512_v50 = vld [vmem:[#allocation26 + $0x58] sm:$0xff]  }
 0xba8   :  { %v3434_v59 = vadd.f32 %v6094_v48, %v3385_v57  ;;  %v3441_v60 = vld [vmem:[#allocation2] sm:$0xff] }
 0xba9   :  { %v6498_v48 = vld [vmem:[#allocation24 + $0x8] sm:$0xff]  }
 0xbaa   :  { %3440 = vst [vmem:[#allocation2 + $0x22] sm:$0xff] %v3434_v59  ;;  %v3457_v3 = vpack.c.bf16 %v3434_v59, %v3431_v54  ;;  %v6505_v54 = vld [vmem:[#allocation26 + $0x30] sm:$0xff]  }
 0xbac   :  { %v3449_v61 = vld [vmem:[#allocation2 + $0x4] sm:$0xff]  ;;  %v3450_v62 = vld [vmem:[#allocation2 + $0xc] sm:$0xff] }
 0xbad   :  { %v3442_v63 = vld [vmem:[#allocation2 + $0x8] sm:$0xff]  ;;  %v3455_v0 = vpack.c.bf16 %v3450_v62, %v3449_v61  ;;  %v3443_v8 = vld [vmem:[#allocation2 + $0x18] sm:$0xff] }
 0xbae   :  { %v3453_v1 = vpack.c.bf16 %v3442_v63, %v3441_v60 }
 0xbaf   :  { %6111 = vmatprep.mubr.bf16.mxu0 %v3455_v0 }
 0xbb0   :  { %3691 = vmatmul.mubr.bf16.vlgmr.msra.gmra.mxu1 %v3453_v1 }
 0xbb1   :  { %3698 = vmatprep.mubr.bf16.mxu1 %v3457_v3  ;;  %v3451_v4 = vld [vmem:[#allocation2 + $0x1c] sm:$0xff]  ;;  %v3452_v5 = vld [vmem:[#allocation2 + $0x24] sm:$0xff]  ;;  %6116 = vmatpush3.bf16.msra.mxu1 %v6492_v43 }
 0xbb2   :  { %v3458_v6 = vpack.c.bf16 %v3452_v5, %v3451_v4  ;;  %v3444_v7 = vld [vmem:[#allocation2 + $0x20] sm:$0xff]  ;;  %6117 = vmatprep.subr.bf16.mxu1 %v6493_v41 }
 0xbb3   :  { %v3456_v9 = vpack.c.bf16 %v3444_v7, %v3443_v8 }
 0xbb4   :  { %6112 = vmatmul.mubr.bf16.vlgmr.msra.gmra.mxu0 %v3458_v6 }
 0xbb5   :  { %6118 = vmatpush3.bf16.msra.mxu1 %v6493_v41  ;;  %5776 = vmatpush3.bf16.msra.mxu0 %v6502_v52  ;;  %v6513_v52 = vld [vmem:[#allocation26 + $0x98] sm:$0xff]  }
 0xbb6   :  { %6119 = vmatprep.subr.bf16.mxu1 %v6494_v44  ;;  %5777 = vmatprep.subr.bf16.mxu0 %v6503_v53  ;;  %v6514_v53 = vld [vmem:[#allocation26 + $0x18] sm:$0xff]  }
 0xbb8   :  { %3699 = vmatmul.mubr.bf16.gmra.mxu1 %v3456_v9 }
 0xbb9   :  { %6120 = vmatpush3.bf16.msra.mxu1 %v6494_v44  ;;  %5778 = vmatpush3.bf16.msra.mxu0 %v6505_v54  ;;  %v6516_v54 = vld [vmem:[#allocation26 + $0x90] sm:$0xff]  }
 0xbba   :  { %6121 = vmatprep.subr.bf16.mxu1 %v6495_v45  ;;  %5779 = vmatprep.subr.bf16.mxu0 %v6506_v55  ;;  %v6517_v55 = vld [vmem:[#allocation26 + $0x10] sm:$0xff]  }
 0xbbd   :  { %6122 = vmatpush3.bf16.msra.mxu1 %v6495_v45  ;;  %5780 = vmatpush3.bf16.msra.mxu0 %v6508_v56  ;;  %v6518_v56 = vld [vmem:[#allocation26 + $0x48] sm:$0xff]  }
 0xbbe   :  { %6123 = vmatprep.subr.bf16.mxu1 %v6496_v46 }
 0xbc1   :  { %6124 = vmatpush3.bf16.msra.mxu1 %v6496_v46 }
 0xbc2   :  { %6125 = vmatprep.subr.bf16.mxu1 %v6497_v47 }
 0xbc5   :  { %6126 = vmatpush3.bf16.msra.mxu1 %v6497_v47  ;;  %v6504_v47 = vld [vmem:[#allocation26 + $0xb0] sm:$0xff]  }
 0xbc6   :  { %6127 = vmatprep.subr.bf16.mxu1 %v6498_v48 }
 0xbc9   :  { %6128 = vmatpush3.bf16.msra.mxu1 %v6498_v48  ;;  %v6509_v48 = vld [vmem:[#allocation26 + $0x60] sm:$0xff]  }
 0xbca   :  { %6129 = vmatprep.subr.bf16.mxu1 %v6499_v49  ;;  %5781 = vmatprep.subr.bf16.mxu0 %v6509_v48 }
 0xbcd   :  { %6130 = vmatpush3.bf16.msra.mxu1 %v6499_v49  ;;  %v6511_v49 = vld [vmem:[#allocation26 + $0x20] sm:$0xff]  }
 0xbce   :  { %6135 = vmatprep.subr.bf16.mxu1 %v7423_v51  ;;  %5782 = vmatpush3.bf16.msra.mxu0 %v6511_v49 }
 0xbcf   :  { %5783 = vmatprep.subr.bf16.mxu0 %v6512_v50  ;;  %v5323_v50 = vld [vmem:[%s7496_s14] ss:$0 sm:$0xff] }
 0xbd2   :  { %5784 = vmatpush3.bf16.msra.mxu0 %v6514_v53 }
 0xc70   :  { %v5743_v11 = vpop.f32.mrf.mxu1 }
 0xc72   :  { %v5744_v12 = vpop.f32.mrf.mxu1 }
 0xc73   :  { %v5745_v15 = vadd.f32 %v5744_v12, %v5743_v11 }
 0xc74   :  { %v5746_v16 = vpop.f32.mrf.mxu1  ;;  %v6113_v18 = vpop.f32.mrf.mxu0 }
 0xc75   :  { %v3693_v19 = vadd.f32 %v5745_v15, %v5287_v13 }
 0xc76   :  { %v5747_v21 = vpop.f32.mrf.mxu1  ;;  %v3741_v2 = vpop.f32.mrf.mxu0 }
 0xc77   :  { %v5748_v22 = vadd.f32 %v5747_v21, %v5746_v16  ;;  %v3742_v24 = vadd.f32 %v3741_v2, %v3693_v19 }
 0xc78   :  { %v5749_v10 = vpop.f32.mrf.mxu1  ;;  %v6114_v25 = vpop.f32.mrf.mxu0 }
 0xc79   :  { %v7403_v26 = vmax.f32 %v3742_v24, 0.0  ;;  %v3696_v27 = vadd.f32 %v5748_v22, %v5287_v13 }
 0xc7a   :  { %v5750_v17 = vpop.f32.mrf.mxu1  ;;  %v3744_v20 = vpop.f32.mrf.mxu0 }
 0xc7b   :  { %v5751_v30 = vadd.f32 %v5750_v17, %v5749_v10  ;;  %v3745_v14 = vadd.f32 %v3744_v20, %v3696_v27  ;;  %3760 = vadd.xlane.f32.xlu0 %v7403_v26  ;;  %v3772_v34 = vmul.f32 %v7403_v26, %v7403_v26  ;;  %v5312_v20 = vld [vmem:[%s7493_s4] ss:$0 sm:$0xff] }
 0xc7c   :  { %v5752_v32 = vpop.f32.mrf.mxu1 }
 0xc7d   :  { %v3701_v33 = vadd.f32 %v5751_v30, %v5287_v13  ;;  %v7406_v31 = vmax.f32 %v3745_v14, 0.0 }
 0xc7e   :  { %v5753_v23 = vpop.f32.mrf.mxu1 }
 0xc7f   :  { %v5754_v35 = vadd.f32 %v5753_v23, %v5752_v32  ;;  %3762 = vadd.xlane.f32.xlu1 %v7406_v31  ;;  %3776 = vadd.xlane.f32.xlu0 %v3772_v34  ;;  %v3750_v36 = vadd.f32 %v6113_v18, %v3701_v33  ;;  %v3773_v28 = vmul.f32 %v7406_v31, %v7406_v31  ;;  %v5313_v34 = vld [vmem:[%s7494_s28] ss:$0 sm:$0xff] }
 0xc81   :  { %v3704_v37 = vadd.f32 %v5754_v35, %v5287_v13  ;;  %v7413_v38 = vmax.f32 %v3750_v36, 0.0 }
 0xc83   :  { %3778 = vadd.xlane.f32.xlu1 %v3773_v28  ;;  %3764 = vadd.xlane.f32.xlu0 %v7413_v38  ;;  %v3753_v29 = vadd.f32 %v6114_v25, %v3704_v37  ;;  %v3774_v40 = vmul.f32 %v7413_v38, %v7413_v38 }
 0xc85   :  { %v7416_v39 = vmax.f32 %v3753_v29, 0.0 }
 0xc87   :  { %3766 = vadd.xlane.f32.xlu1 %v7416_v39  ;;  %3780 = vadd.xlane.f32.xlu0 %v3774_v40  ;;  %v3775_v42 = vmul.f32 %v7416_v39, %v7416_v39 }
 0xc8b   :  { %3782 = vadd.xlane.f32.xlu1 %v3775_v42 }
 0xd04   :  { %v3761_v57 = vpop.xlane.xlu0 %3760 }
 0xd05   :  { %v3768_v58 = vmul.f32 0.03125, %v3761_v57  ;;  %v6519_v57 = vld [vmem:[#allocation26 + $0x88] sm:$0xff]  }
 0xd07   :  { %v3788_v61 = vmul.f32 %v3768_v58, %v3768_v58  ;;  %v3796_v25 = vsub.f32 %v7403_v26, %v3768_v58  ;;  %v6520_v58 = vld [vmem:[#allocation26 + $0x8] sm:$0xff]  }
 0xd08   :  { %v3763_v59 = vpop.xlane.xlu1 %3762  ;;  %v3777_v60 = vpop.xlane.xlu0 %3776 }
 0xd09   :  { %v3769_v62 = vmul.f32 0.03125, %v3763_v59  ;;  %v3784_v63 = vmul.f32 0.03125, %v3777_v60  ;;  %v6521_v59 = vld [vmem:[#allocation26 + $0x40] sm:$0xff]  }
 0xd0a   :  { %v6522_v60 = vld [vmem:[#allocation26 + $0x80] sm:$0xff]  }
 0xd0b   :  { %v3792_v0 = vsub.f32 %v3784_v63, %v3788_v61  ;;  %v3789_v4 = vmul.f32 %v3769_v62, %v3769_v62  ;;  %v3797_v30 = vsub.f32 %v7406_v31, %v3769_v62  ;;  %v6523_v61 = vld [vmem:[#allocation26] sm:$0xff]   ;;  %v6524_v62 = vld [vmem:[#allocation27 + $0x78] sm:$0xff]  }
 0xd0c   :  { %v3779_v1 = vpop.xlane.xlu1 %3778  ;;  %v3765_v3 = vpop.xlane.xlu0 %3764  ;;  %v6528_v63 = vld [vmem:[#allocation27 + $0xb8] sm:$0xff]  }
 0xd0d   :  { %v3800_v5 = vadd.f32 1e-05, %v3792_v0  ;;  %v3785_v6 = vmul.f32 0.03125, %v3779_v1  ;;  %v3770_v7 = vmul.f32 0.03125, %v3765_v3  ;;  %v5314_v0 = vld [vmem:[%s7495_s9] ss:$0 sm:$0xff] }
 0xd0f   :  { %6588 = vrsqrt.f32 %v3800_v5  ;;  %v3793_v8 = vsub.f32 %v3785_v6, %v3789_v4  ;;  %v3790_v13 = vmul.f32 %v3770_v7, %v3770_v7  ;;  %v3798_v23 = vsub.f32 %v7413_v38, %v3770_v7  ;;  %v6507_v38 = vld [vmem:[#allocation26 + $0xa8] sm:$0xff]  }
 0xd10   :  { %v3767_v9 = vpop.xlane.xlu1 %3766  ;;  %v3781_v11 = vpop.xlane.xlu0 %3780 }
 0xd11   :  { %v3801_v12 = vadd.f32 1e-05, %v3793_v8  ;;  %v3771_v15 = vmul.f32 0.03125, %v3767_v9  ;;  %v3786_v16 = vmul.f32 0.03125, %v3781_v11 }
 0xd13   :  { %6590 = vrsqrt.f32 %v3801_v12  ;;  %v3794_v18 = vsub.f32 %v3786_v16, %v3790_v13  ;;  %v3791_v21 = vmul.f32 %v3771_v15, %v3771_v15  ;;  %v3799_v40 = vsub.f32 %v7416_v39, %v3771_v15  ;;  %v6510_v39 = vld [vmem:[#allocation26 + $0xa0] sm:$0xff]  }
 0xd14   :  { %v3783_v19 = vpop.xlane.xlu1 %3782 }
 0xd15   :  { %v3802_v2 = vadd.f32 1e-05, %v3794_v18  ;;  %v3787_v22 = vmul.f32 0.03125, %v3783_v19 }
 0xd17   :  { %6592 = vrsqrt.f32 %v3802_v2  ;;  %v3795_v24 = vsub.f32 %v3787_v22, %v3791_v21  ;;  %v6525_v22 = vld [vmem:[#allocation27 + $0x38] sm:$0xff]  }
 0xd19   :  { %v3803_v10 = vadd.f32 1e-05, %v3795_v24 }
 0xd1b   :  { %6594 = vrsqrt.f32 %v3803_v10 }
 0xd1c   :  { %v6589_v27 = vpop.eup %6588 }
 0xd1d   :  { %v3808_v17 = vmul.f32 %v6589_v27, %v3796_v25  ;;  %v6526_v25 = vld [vmem:[#allocation27 + $0x70] sm:$0xff]  }
 0xd1e   :  { %v6527_v27 = vld [vmem:[#allocation27 + $0x30] sm:$0xff]  }
 0xd1f   :  { %v3819_v33 = vmul.f32 %v5312_v20, %v3808_v17 }
 0xd20   :  { %v6591_v14 = vpop.eup %6590 }
 0xd21   :  { %v3809_v32 = vmul.f32 %v6591_v14, %v3797_v30  ;;  %v3830_v28 = vadd.f32 %v5313_v34, %v3819_v33  ;;  %v6529_v14 = vld [vmem:[#allocation27 + $0x68] sm:$0xff]   ;;  %v6531_v33 = vld [vmem:[#allocation27 + $0xb0] sm:$0xff]  }
 0xd23   :  { %v3820_v35 = vmul.f32 %v5312_v20, %v3809_v32  ;;  %v6530_v32 = vld [vmem:[#allocation27 + $0x28] sm:$0xff]  }
 0xd24   :  { %v6593_v36 = vpop.eup %6592 }
 0xd25   :  { %v3810_v37 = vmul.f32 %v6593_v36, %v3798_v23  ;;  %v3831_v29 = vadd.f32 %v5313_v34, %v3820_v35  ;;  %v6533_v23 = vld [vmem:[#allocation27 + $0x20] sm:$0xff]   ;;  %v6534_v35 = vld [vmem:[#allocation27 + $0xa8] sm:$0xff]   ;;  %v6535_v36 = vld [vmem:[#allocation27 + $0x58] sm:$0xff]  }
 0xd27   :  { %v3834_v26 = vpack.c.bf16 %v3831_v29, %v3830_v28  ;;  %v3821_v41 = vmul.f32 %v5312_v20, %v3810_v37  ;;  %v6536_v37 = vld [vmem:[#allocation27 + $0x18] sm:$0xff]   ;;  %v6537_v28 = vld [vmem:[#allocation27 + $0xa0] sm:$0xff]   ;;  %v6538_v29 = vld [vmem:[#allocation27 + $0x50] sm:$0xff]  }
 0xd28   :  { %v6595_v42 = vpop.eup %6594 }
 0xd29   :  { %v3811_v43 = vmul.f32 %v6595_v42, %v3799_v40  ;;  %6131 = vmatprep.mubr.bf16.mxu1 %v3834_v26  ;;  %v3832_v31 = vadd.f32 %v5313_v34, %v3821_v41  ;;  %v6539_v40 = vld [vmem:[#allocation27 + $0x10] sm:$0xff]   ;;  %v6540_v26 = vld [vmem:[#allocation27 + $0x98] sm:$0xff]   ;;  %v6541_v42 = vld [vmem:[#allocation27 + $0x48] sm:$0xff]  }
 0xd2a   :  { %v6543_v41 = vld [vmem:[#allocation27 + $0x90] sm:$0xff]  }
 0xd2b   :  { %v3822_v44 = vmul.f32 %v5312_v20, %v3811_v43  ;;  %v6542_v43 = vld [vmem:[#allocation27 + $0x8] sm:$0xff]  }
 0xd2d   :  { %v3833_v45 = vadd.f32 %v5313_v34, %v3822_v44  ;;  %v6532_v34 = vld [vmem:[#allocation27 + $0x60] sm:$0xff]  }
 0xd2e   :  { %v6544_v44 = vld [vmem:[#allocation27 + $0x40] sm:$0xff]  }
 0xd2f   :  { %v3835_v46 = vpack.c.bf16 %v3833_v45, %v3832_v31  ;;  %v6545_v31 = vld [vmem:[#allocation27] sm:$0xff]   ;;  %v6546_v45 = vld [vmem:[#allocation27 + $0x88] sm:$0xff]  }
 0xd31   :  { %6132 = vmatmul.mubr.bf16.vlgmr.msra.gmra.mxu1 %v3835_v46  ;;  %v6547_v46 = vld [vmem:[#allocation27 + $0x80] sm:$0xff]  }
 0xd32   :  { %6136 = vmatpush3.bf16.msra.mxu1 %v7423_v51  ;;  %v6515_v51 = vld [vmem:[#allocation26 + $0x50] sm:$0xff]  }
 0xd33   :  { %6137 = vmatprep.subr.bf16.mxu1 %v6504_v47  ;;  %5785 = vmatprep.subr.bf16.mxu0 %v6515_v51 }
 0xd34   :  { %5786 = vmatpush3.bf16.msra.mxu0 %v6517_v55 }
 0xd35   :  { %5787 = vmatprep.subr.bf16.mxu0 %v6518_v56 }
 0xd36   :  { %6138 = vmatpush3.bf16.msra.mxu1 %v6504_v47  ;;  %v6548_v47 = vld [vmem:[#allocation29 + $0x78] sm:$0xff]  }
 0xd37   :  { %6139 = vmatprep.subr.bf16.mxu1 %v6507_v38 }
 0xd38   :  { %5788 = vmatpush3.bf16.msra.mxu0 %v6520_v58 }
 0xd39   :  { %5789 = vmatprep.subr.bf16.mxu0 %v6521_v59 }
 0xd3a   :  { %6140 = vmatpush3.bf16.msra.mxu1 %v6507_v38  ;;  %v6551_v38 = vld [vmem:[#allocation29 + $0xb8] sm:$0xff]  }
 0xd3b   :  { %6141 = vmatprep.subr.bf16.mxu1 %v6510_v39 }
 0xd3c   :  { %5790 = vmatpush3.bf16.msra.mxu0 %v6523_v61 }
 0xd3d   :  { %5813 = vmatprep.subr.bf16.mxu0 %v6524_v62 }
 0xd3e   :  { %6142 = vmatpush3.bf16.msra.mxu1 %v6510_v39 }
 0xd3f   :  { %6143 = vmatprep.subr.bf16.mxu1 %v6513_v52 }
 0xd42   :  { %6144 = vmatpush3.bf16.msra.mxu1 %v6513_v52 }
 0xd43   :  { %6145 = vmatprep.subr.bf16.mxu1 %v6516_v54 }
 0xd46   :  { %6146 = vmatpush3.bf16.msra.mxu1 %v6516_v54 }
 0xd47   :  { %6147 = vmatprep.subr.bf16.mxu1 %v6519_v57 }
 0xd4a   :  { %6148 = vmatpush3.bf16.msra.mxu1 %v6519_v57 }
 0xd4b   :  { %6149 = vmatprep.subr.bf16.mxu1 %v6522_v60 }
 0xd4e   :  { %6150 = vmatpush3.bf16.msra.mxu1 %v6522_v60 }
 0xd4f   :  { %6155 = vmatprep.subr.bf16.mxu1 %v6528_v63 }
 0xdf1   :  { %v6133_v1 = vpop.f32.mrf.mxu1 }
 0xdf2   :  { %v3950_v3 = vadd.f32 %v6133_v1, %v5314_v0 }
 0xdf3   :  { %v3941_v4 = vpop.f32.mrf.mxu1 }
 0xdf4   :  { %3958 = vst [vmem:[#allocation2 + $0x1a] sm:$0xff] %v3950_v3  ;;  %v3942_v5 = vadd.f32 %v5314_v0, %v3941_v4 }
 0xdf5   :  { %v6134_v6 = vpop.f32.mrf.mxu1 }
 0xdf6   :  { %3956 = vst [vmem:[#allocation2 + $0x2] sm:$0xff] %v3942_v5  ;;  %v3953_v7 = vadd.f32 %v6134_v6, %v5314_v0 }
 0xdf7   :  { %v3944_v8 = vpop.f32.mrf.mxu1 }
 0xdf8   :  { %3959 = vst [vmem:[#allocation2 + $0x22] sm:$0xff] %v3953_v7  ;;  %v3945_v9 = vadd.f32 %v5314_v0, %v3944_v8  ;;  %v3976_v10 = vpack.c.bf16 %v3953_v7, %v3950_v3 }
 0xdfa   :  { %3957 = vst [vmem:[#allocation2 + $0xa] sm:$0xff] %v3945_v9  ;;  %v3973_v11 = vpack.c.bf16 %v3945_v9, %v3942_v5 }
 0xdfb   :  { %v3962_v20 = vld [vmem:[#allocation2 + $0x19] sm:$0xff] }
 0xdfc   :  { %4209 = vmatprep.mubr.bf16.mxu0 %v3973_v11 }
 0xdfd   :  { %v3960_v12 = vld [vmem:[#allocation2 + $0x1] sm:$0xff] }
 0xdff   :  { %v3970_v13 = vld [vmem:[#allocation2 + $0x1b] sm:$0xff]  ;;  %v3971_v15 = vld [vmem:[#allocation2 + $0x23] sm:$0xff] }
 0xe00   :  { %v3977_v24 = vpack.c.bf16 %v3971_v15, %v3970_v13  ;;  %v3963_v17 = vld [vmem:[#allocation2 + $0x21] sm:$0xff] }
 0xe01   :  { %v3968_v16 = vld [vmem:[#allocation2 + $0x3] sm:$0xff]  ;;  %v3969_v18 = vld [vmem:[#allocation2 + $0xb] sm:$0xff]  ;;  %v3975_v30 = vpack.c.bf16 %v3963_v17, %v3962_v20 }
 0xe02   :  { %v3961_v19 = vld [vmem:[#allocation2 + $0x9] sm:$0xff]  ;;  %v3974_v21 = vpack.c.bf16 %v3969_v18, %v3968_v16 }
 0xe03   :  { %v3972_v2 = vpack.c.bf16 %v3961_v19, %v3960_v12  ;;  %v6549_v12 = vld [vmem:[#allocation29 + $0x38] sm:$0xff]   ;;  %v6552_v20 = vld [vmem:[#allocation29 + $0x30] sm:$0xff]  }
 0xe04   :  { %6151 = vmatprep.mubr.bf16.mxu1 %v3974_v21 }
 0xe05   :  { %4210 = vmatmul.mubr.bf16.vlgmr.msra.gmra.mxu0 %v3972_v2  ;;  %6152 = vmatmul.mubr.bf16.vlgmr.msra.gmra.mxu1 %v3977_v24  ;;  %v6550_v2 = vld [vmem:[#allocation29 + $0x70] sm:$0xff]  }
 0xe06   :  { %4217 = vmatprep.mubr.bf16.mxu0 %v3976_v10  ;;  %5814 = vmatpush3.bf16.msra.mxu0 %v6525_v22 }
 0xe07   :  { %6156 = vmatpush3.bf16.msra.mxu1 %v6528_v63  ;;  %5815 = vmatprep.subr.bf16.mxu0 %v6526_v25 }
 0xe08   :  { %6157 = vmatprep.subr.bf16.mxu1 %v6531_v33 }
 0xe0a   :  { %5816 = vmatpush3.bf16.msra.mxu0 %v6527_v27 }
 0xe0b   :  { %5817 = vmatprep.subr.bf16.mxu0 %v6529_v14  ;;  %6158 = vmatpush3.bf16.msra.mxu1 %v6531_v33  ;;  %v6554_v14 = vld [vmem:[#allocation29 + $0xb0] sm:$0xff]   ;;  %v6556_v33 = vld [vmem:[#allocation29 + $0x60] sm:$0xff]  }
 0xe0c   :  { %6159 = vmatprep.subr.bf16.mxu1 %v6534_v35 }
 0xe0d   :  { %4218 = vmatmul.mubr.bf16.gmra.mxu0 %v3975_v30  ;;  %v6553_v30 = vld [vmem:[#allocation29 + $0x68] sm:$0xff]  }
 0xe0e   :  { %5818 = vmatpush3.bf16.msra.mxu0 %v6530_v32  ;;  %v6555_v32 = vld [vmem:[#allocation29 + $0x28] sm:$0xff]  }
 0xe0f   :  { %5819 = vmatprep.subr.bf16.mxu0 %v6532_v34  ;;  %6160 = vmatpush3.bf16.msra.mxu1 %v6534_v35  ;;  %v6557_v34 = vld [vmem:[#allocation29 + $0xa8] sm:$0xff]   ;;  %v6559_v35 = vld [vmem:[#allocation29 + $0x58] sm:$0xff]  }
 0xe10   :  { %6161 = vmatprep.subr.bf16.mxu1 %v6537_v28 }
 0xe12   :  { %5820 = vmatpush3.bf16.msra.mxu0 %v6533_v23  ;;  %v6558_v23 = vld [vmem:[#allocation29 + $0x20] sm:$0xff]  }
 0xe13   :  { %5821 = vmatprep.subr.bf16.mxu0 %v6535_v36  ;;  %6162 = vmatpush3.bf16.msra.mxu1 %v6537_v28  ;;  %v6560_v36 = vld [vmem:[#allocation29 + $0xa0] sm:$0xff]   ;;  %v6562_v28 = vld [vmem:[#allocation29 + $0x50] sm:$0xff]  }
 0xe14   :  { %6163 = vmatprep.subr.bf16.mxu1 %v6540_v26 }
 0xe16   :  { %5822 = vmatpush3.bf16.msra.mxu0 %v6536_v37  ;;  %v6561_v37 = vld [vmem:[#allocation29 + $0x18] sm:$0xff]  }
 0xe17   :  { %5823 = vmatprep.subr.bf16.mxu0 %v6538_v29  ;;  %6164 = vmatpush3.bf16.msra.mxu1 %v6540_v26  ;;  %v6563_v29 = vld [vmem:[#allocation29 + $0x98] sm:$0xff]   ;;  %v6565_v26 = vld [vmem:[#allocation29 + $0x48] sm:$0xff]  }
 0xe18   :  { %6165 = vmatprep.subr.bf16.mxu1 %v6543_v41 }
 0xe1a   :  { %5824 = vmatpush3.bf16.msra.mxu0 %v6539_v40  ;;  %v6564_v40 = vld [vmem:[#allocation29 + $0x10] sm:$0xff]  }
 0xe1b   :  { %5825 = vmatprep.subr.bf16.mxu0 %v6541_v42  ;;  %6166 = vmatpush3.bf16.msra.mxu1 %v6543_v41  ;;  %v6566_v42 = vld [vmem:[#allocation29 + $0x90] sm:$0xff]   ;;  %v6568_v41 = vld [vmem:[#allocation29 + $0x40] sm:$0xff]  }
 0xe1c   :  { %6167 = vmatprep.subr.bf16.mxu1 %v6546_v45 }
 0xe1e   :  { %5826 = vmatpush3.bf16.msra.mxu0 %v6542_v43  ;;  %v6567_v43 = vld [vmem:[#allocation29 + $0x8] sm:$0xff]  }
 0xe1f   :  { %5827 = vmatprep.subr.bf16.mxu0 %v6544_v44  ;;  %6168 = vmatpush3.bf16.msra.mxu1 %v6546_v45  ;;  %v6569_v44 = vld [vmem:[#allocation29 + $0x88] sm:$0xff]   ;;  %v6571_v45 = vld [vmem:[#allocation29 + $0x80] sm:$0xff]  }
 0xe20   :  { %6169 = vmatprep.subr.bf16.mxu1 %v6547_v46 }
 0xe22   :  { %5828 = vmatpush3.bf16.msra.mxu0 %v6545_v31  ;;  %v6570_v31 = vld [vmem:[#allocation29] sm:$0xff]  }
 0xe23   :  { %6170 = vmatpush3.bf16.msra.mxu1 %v6547_v46  ;;  %5851 = vmatprep.subr.bf16.mxu0 %v6548_v47 }
 0xe24   :  { %6175 = vmatprep.subr.bf16.mxu1 %v6551_v38 }
 0xec5   :  { %v5791_v48 = vpop.f32.mrf.mxu0  ;;  %v6153_v39 = vpop.f32.mrf.mxu1 }
 0xec7   :  { %v5792_v49 = vpop.f32.mrf.mxu0  ;;  %v4260_v53 = vpop.f32.mrf.mxu1 }
 0xec8   :  { %v5793_v52 = vadd.f32 %v5792_v49, %v5791_v48  ;;  %v5348_v49 = vld [vmem:[%s7497_s2] ss:$0 sm:$0xff] }
 0xec9   :  { %v5794_v51 = vpop.f32.mrf.mxu0  ;;  %v6154_v55 = vpop.f32.mrf.mxu1 }
 0xeca   :  { %v4212_v54 = vadd.f32 %v5793_v52, %v5323_v50 }
 0xecb   :  { %v5795_v56 = vpop.f32.mrf.mxu0  ;;  %v4263_v61 = vpop.f32.mrf.mxu1 }
 0xecc   :  { %v4261_v57 = vadd.f32 %v4260_v53, %v4212_v54  ;;  %v5796_v58 = vadd.f32 %v5795_v56, %v5794_v51 }
 0xecd   :  { %v5797_v59 = vpop.f32.mrf.mxu0 }
 0xece   :  { %4275 = vst [vmem:[#allocation2 + $0x2] sm:$0xff] %v4261_v57  ;;  %v4215_v60 = vadd.f32 %v5796_v58, %v5323_v50 }
 0xecf   :  { %v5798_v62 = vpop.f32.mrf.mxu0 }
 0xed0   :  { %v4264_v63 = vadd.f32 %v4263_v61, %v4215_v60  ;;  %v5799_v0 = vadd.f32 %v5798_v62, %v5797_v59 }
 0xed1   :  { %v5800_v1 = vpop.f32.mrf.mxu0 }
 0xed2   :  { %4276 = vst [vmem:[#allocation2 + $0xa] sm:$0xff] %v4264_v63  ;;  %v4220_v3 = vadd.f32 %v5799_v0, %v5323_v50  ;;  %v4292_v4 = vpack.c.bf16 %v4264_v63, %v4261_v57 }
 0xed3   :  { %v5801_v5 = vpop.f32.mrf.mxu0 }
 0xed4   :  { %v4269_v6 = vadd.f32 %v6153_v39, %v4220_v3  ;;  %v5802_v7 = vadd.f32 %v5801_v5, %v5800_v1  ;;  %4528 = vmatprep.mubr.bf16.mxu0 %v4292_v4 }
 0xed5   :  { %v4279_v11 = vld [vmem:[#allocation2 + $0x1] sm:$0xff] }
 0xed6   :  { %4277 = vst [vmem:[#allocation2 + $0x1a] sm:$0xff] %v4269_v6  ;;  %v4223_v8 = vadd.f32 %v5802_v7, %v5323_v50 }
 0xed8   :  { %v4272_v9 = vadd.f32 %v6154_v55, %v4223_v8 }
 0xed9   :  { %v4287_v13 = vld [vmem:[#allocation2 + $0x3] sm:$0xff]  ;;  %v4288_v15 = vld [vmem:[#allocation2 + $0xb] sm:$0xff] }
 0xeda   :  { %v4280_v16 = vld [vmem:[#allocation2 + $0x9] sm:$0xff]  ;;  %4278 = vst [vmem:[#allocation2 + $0x22] sm:$0xff] %v4272_v9  ;;  %v4293_v18 = vpack.c.bf16 %v4288_v15, %v4287_v13  ;;  %v4295_v21 = vpack.c.bf16 %v4272_v9, %v4269_v6 }
 0xedb   :  { %v4291_v19 = vpack.c.bf16 %v4280_v16, %v4279_v11 }
 0xedc   :  { %6171 = vmatprep.mubr.bf16.mxu1 %v4293_v18 }
 0xedd   :  { %4529 = vmatmul.mubr.bf16.vlgmr.msra.gmra.mxu0 %v4291_v19  ;;  %v4281_v22 = vld [vmem:[#allocation2 + $0x19] sm:$0xff] }
 0xede   :  { %4536 = vmatprep.mubr.bf16.mxu0 %v4295_v21  ;;  %5852 = vmatpush3.bf16.msra.mxu0 %v6549_v12 }
 0xedf   :  { %5853 = vmatprep.subr.bf16.mxu0 %v6550_v2 }
 0xee1   :  { %v4289_v24 = vld [vmem:[#allocation2 + $0x1b] sm:$0xff]  ;;  %v4290_v10 = vld [vmem:[#allocation2 + $0x23] sm:$0xff] }
 0xee2   :  { %v4282_v25 = vld [vmem:[#allocation2 + $0x21] sm:$0xff]  ;;  %v4296_v27 = vpack.c.bf16 %v4290_v10, %v4289_v24  ;;  %5854 = vmatpush3.bf16.msra.mxu0 %v6552_v20 }
 0xee3   :  { %v4294_v17 = vpack.c.bf16 %v4282_v25, %v4281_v22  ;;  %5855 = vmatprep.subr.bf16.mxu0 %v6553_v30  ;;  %v5373_v25 = vld [vmem:[%s7246_s12] ss:$0 sm:$0xff] }
 0xee4   :  { %6172 = vmatmul.mubr.bf16.vlgmr.msra.gmra.mxu1 %v4296_v27 }
 0xee5   :  { %4537 = vmatmul.mubr.bf16.gmra.mxu0 %v4294_v17  ;;  %6176 = vmatpush3.bf16.msra.mxu1 %v6551_v38 }
 0xee6   :  { %6177 = vmatprep.subr.bf16.mxu1 %v6554_v14  ;;  %5856 = vmatpush3.bf16.msra.mxu0 %v6555_v32 }
 0xee7   :  { %5857 = vmatprep.subr.bf16.mxu0 %v6556_v33 }
 0xee9   :  { %6178 = vmatpush3.bf16.msra.mxu1 %v6554_v14 }
 0xeea   :  { %6179 = vmatprep.subr.bf16.mxu1 %v6557_v34  ;;  %5858 = vmatpush3.bf16.msra.mxu0 %v6558_v23 }
 0xeeb   :  { %5859 = vmatprep.subr.bf16.mxu0 %v6559_v35 }
 0xeed   :  { %6180 = vmatpush3.bf16.msra.mxu1 %v6557_v34 }
 0xeee   :  { %6181 = vmatprep.subr.bf16.mxu1 %v6560_v36  ;;  %5860 = vmatpush3.bf16.msra.mxu0 %v6561_v37 }
 0xeef   :  { %5861 = vmatprep.subr.bf16.mxu0 %v6562_v28 }
 0xef1   :  { %6182 = vmatpush3.bf16.msra.mxu1 %v6560_v36 }
 0xef2   :  { %6183 = vmatprep.subr.bf16.mxu1 %v6563_v29  ;;  %5862 = vmatpush3.bf16.msra.mxu0 %v6564_v40 }
 0xef3   :  { %5863 = vmatprep.subr.bf16.mxu0 %v6565_v26 }
 0xef5   :  { %6184 = vmatpush3.bf16.msra.mxu1 %v6563_v29 }
 0xef6   :  { %6185 = vmatprep.subr.bf16.mxu1 %v6566_v42  ;;  %5864 = vmatpush3.bf16.msra.mxu0 %v6567_v43 }
 0xef7   :  { %5865 = vmatprep.subr.bf16.mxu0 %v6568_v41 }
 0xef9   :  { %6186 = vmatpush3.bf16.msra.mxu1 %v6566_v42 }
 0xefa   :  { %6187 = vmatprep.subr.bf16.mxu1 %v6569_v44  ;;  %5866 = vmatpush3.bf16.msra.mxu0 %v6570_v31 }
 0xefd   :  { %6188 = vmatpush3.bf16.msra.mxu1 %v6569_v44 }
 0xefe   :  { %6189 = vmatprep.subr.bf16.mxu1 %v6571_v45 }
 0xf01   :  { %6190 = vmatpush3.bf16.msra.mxu1 %v6571_v45 }
 0xf9d   :  { %v5829_v46 = vpop.f32.mrf.mxu0 }
 0xf9f   :  { %v5830_v47 = vpop.f32.mrf.mxu0 }
 0xfa0   :  { %v5831_v48 = vadd.f32 %v5830_v47, %v5829_v46 }
 0xfa1   :  { %v5832_v38 = vpop.f32.mrf.mxu0 }
 0xfa2   :  { %v4531_v51 = vadd.f32 %v5831_v48, %v5348_v49 }
 0xfa3   :  { %v5833_v39 = vpop.f32.mrf.mxu0 }
 0xfa4   :  { %v6173_v50 = vpop.f32.mrf.mxu1  ;;  %v5834_v53 = vadd.f32 %v5833_v39, %v5832_v38 }
 0xfa5   :  { %v5835_v52 = vpop.f32.mrf.mxu0 }
 0xfa6   :  { %v4579_v54 = vpop.f32.mrf.mxu1  ;;  %v4534_v61 = vadd.f32 %v5834_v53, %v5348_v49 }
 0xfa7   :  { %v5836_v55 = vpop.f32.mrf.mxu0  ;;  %v4580_v56 = vadd.f32 %v4579_v54, %v4531_v51 }
 0xfa8   :  { %v5837_v57 = vadd.f32 %v5836_v55, %v5835_v52  ;;  %v6174_v58 = vpop.f32.mrf.mxu1 }
 0xfa9   :  { %v5838_v59 = vpop.f32.mrf.mxu0  ;;  %4594 = vst [vmem:[#allocation2 + $0x2] sm:$0xff] %v4580_v56 }
 0xfaa   :  { %v4539_v60 = vadd.f32 %v5837_v57, %v5348_v49  ;;  %v4582_v62 = vpop.f32.mrf.mxu1 }
 0xfab   :  { %v5839_v63 = vpop.f32.mrf.mxu0  ;;  %v4583_v1 = vadd.f32 %v4582_v62, %v4534_v61 }
 0xfac   :  { %v4588_v0 = vadd.f32 %v6173_v50, %v4539_v60  ;;  %v5840_v3 = vadd.f32 %v5839_v63, %v5838_v59 }
 0xfad   :  { %4595 = vst [vmem:[#allocation2 + $0xa] sm:$0xff] %v4583_v1  ;;  %v4611_v5 = vpack.c.bf16 %v4583_v1, %v4580_v56 }
 0xfae   :  { %4596 = vst [vmem:[#allocation2 + $0x1a] sm:$0xff] %v4588_v0  ;;  %v4542_v4 = vadd.f32 %v5840_v3, %v5348_v49 }
 0xfaf   :  { %4847 = vmatprep.mubr.bf16.mxu0 %v4611_v5 }
 0xfb0   :  { %v4591_v6 = vadd.f32 %v6174_v58, %v4542_v4  ;;  %v4598_v7 = vld [vmem:[#allocation2] sm:$0xff] }
 0xfb2   :  { %4597 = vst [vmem:[#allocation2 + $0x22] sm:$0xff] %v4591_v6  ;;  %v4614_v15 = vpack.c.bf16 %v4591_v6, %v4588_v0 }
 0xfb4   :  { %v4606_v8 = vld [vmem:[#allocation2 + $0x4] sm:$0xff]  ;;  %v4607_v9 = vld [vmem:[#allocation2 + $0xc] sm:$0xff] }
 0xfb5   :  { %v4599_v11 = vld [vmem:[#allocation2 + $0x8] sm:$0xff]  ;;  %v4612_v12 = vpack.c.bf16 %v4607_v9, %v4606_v8  ;;  %v4600_v2 = vld [vmem:[#allocation2 + $0x18] sm:$0xff] }
 0xfb6   :  { %v4610_v13 = vpack.c.bf16 %v4599_v11, %v4598_v7 }
 0xfb7   :  { %6191 = vmatprep.mubr.bf16.mxu1 %v4612_v12 }
 0xfb8   :  { %4848 = vmatmul.mubr.bf16.vlgmr.msra.gmra.mxu0 %v4610_v13 }
 0xfb9   :  { %4855 = vmatprep.mubr.bf16.mxu0 %v4614_v15  ;;  %v4608_v16 = vld [vmem:[#allocation2 + $0x1c] sm:$0xff]  ;;  %v4609_v18 = vld [vmem:[#allocation2 + $0x24] sm:$0xff] }
 0xfba   :  { %v4615_v19 = vpack.c.bf16 %v4609_v18, %v4608_v16  ;;  %v4601_v21 = vld [vmem:[#allocation2 + $0x20] sm:$0xff] }
 0xfbb   :  { %v4613_v22 = vpack.c.bf16 %v4601_v21, %v4600_v2 }
 0xfbc   :  { %6192 = vmatmul.mubr.bf16.vlgmr.msra.gmra.mxu1 %v4615_v19 }
 0xfc0   :  { %4856 = vmatmul.mubr.bf16.gmra.mxu0 %v4613_v22  ;;  %v5398_v22 = vld [vmem:[%s7251_s8] ss:$0 sm:$0xff]  ;;  %s7047_s8 = smov [#allocation30]  }
 0xfc1   :  { %s5000_s12 = sshll.u32 %s7047_s8, 4  ;;  %s5001_s12 = int_to_ptr.vmem [resolvable:$true] %s5000_s12 }
 0xfc2   :  { %p6949_p2 = scmp.lt.s32.totalorder %s5001_s12, %s5001_s12 }
0x1078   :  { %v5867_v24 = vpop.f32.mrf.mxu0 }
0x107a   :  { %v5868_v10 = vpop.f32.mrf.mxu0 }
0x107b   :  { %v5869_v27 = vadd.f32 %v5868_v10, %v5867_v24  ;;  %v5399_v10 = vld [vmem:[%s7256_s27] ss:$0 sm:$0xff]  ;;  %s6944_s27 = scalar_lea.vmem %s5001_s12, 512 }
0x107c   :  { %v5870_v17 = vpop.f32.mrf.mxu0  ;;  %v6193_v20 = vpop.f32.mrf.mxu1  ;;  %p6945_p1 = scmp.ne.s32.totalorder %s5001_s12, %s6944_s27  ;;  %p6950_p3 = scmp.lt.s32.totalorder %s6944_s27, %s6944_s27 }
0x107d   :  { %v4850_v30 = vadd.f32 %v5869_v27, %v5373_v25 }
0x107e   :  { %v5871_v14 = vpop.f32.mrf.mxu0  ;;  %v4898_v32 = vpop.f32.mrf.mxu1  ;;  %p6951_p4 = por %p6950_p3, %p6949_p2 }
0x107f   :  { %v5872_v33 = vadd.f32 %v5871_v14, %v5870_v17  ;;  %v4899_v34 = vadd.f32 %v4898_v32, %v4850_v30 }
0x1080   :  { %v5873_v23 = vpop.f32.mrf.mxu0  ;;  %v6194_v35 = vpop.f32.mrf.mxu1  ;;  %p6952_p5 = pnand %p6951_p4, %p6945_p1 }
0x1081   :  { %v7437_v36 = vmax.f32 %v4899_v34, 0.0  ;;  %v4853_v37 = vadd.f32 %v5872_v33, %v5373_v25 }
0x1082   :  { %v5874_v28 = vpop.f32.mrf.mxu0  ;;  %v4901_v29 = vpop.f32.mrf.mxu1 }
0x1083   :  { %v5875_v40 = vadd.f32 %v5874_v28, %v5873_v23  ;;  %v4902_v26 = vadd.f32 %v4901_v29, %v4853_v37  ;;  %4917 = vadd.xlane.f32.xlu0 %v7437_v36  ;;  %v4929_v44 = vmul.f32 %v7437_v36, %v7437_v36 }
0x1084   :  { %v5876_v42 = vpop.f32.mrf.mxu0 }
0x1085   :  { %v4858_v43 = vadd.f32 %v5875_v40, %v5373_v25  ;;  %v4914_v41 = vmax.f32 %v4902_v26, 0.0 }
0x1086   :  { %v5877_v31 = vpop.f32.mrf.mxu0 }
0x1087   :  { %v5878_v45 = vadd.f32 %v5877_v31, %v5876_v42  ;;  %4919 = vadd.xlane.f32.xlu1 %v4914_v41  ;;  %4933 = vadd.xlane.f32.xlu0 %v4929_v44  ;;  %v4907_v46 = vadd.f32 %v6193_v20, %v4858_v43  ;;  %v4930_v38 = vmul.f32 %v4914_v41, %v4914_v41 }
0x1089   :  { %v4861_v47 = vadd.f32 %v5878_v45, %v5373_v25  ;;  %v4915_v48 = vmax.f32 %v4907_v46, 0.0 }
0x108b   :  { %4935 = vadd.xlane.f32.xlu1 %v4930_v38  ;;  %4921 = vadd.xlane.f32.xlu0 %v4915_v48  ;;  %v4910_v39 = vadd.f32 %v6194_v35, %v4861_v47  ;;  %v4931_v50 = vmul.f32 %v4915_v48, %v4915_v48 }
0x108d   :  { %v4916_v49 = vmax.f32 %v4910_v39, 0.0 }
0x108f   :  { %4923 = vadd.xlane.f32.xlu1 %v4916_v49  ;;  %4937 = vadd.xlane.f32.xlu0 %v4931_v50  ;;  %v4932_v52 = vmul.f32 %v4916_v49, %v4916_v49 }
0x1093   :  { %4939 = vadd.xlane.f32.xlu1 %v4932_v52 }
0x110c   :  { %v4918_v53 = vpop.xlane.xlu0 %4917 }
0x110d   :  { %v4925_v51 = vmul.f32 0.03125, %v4918_v53 }
0x110f   :  { %v4945_v56 = vmul.f32 %v4925_v51, %v4925_v51  ;;  %v4953_v21 = vsub.f32 %v7437_v36, %v4925_v51 }
0x1110   :  { %v4920_v54 = vpop.xlane.xlu1 %4919  ;;  %v4934_v55 = vpop.xlane.xlu0 %4933 }
0x1111   :  { %v4926_v57 = vmul.f32 0.03125, %v4920_v54  ;;  %v4941_v58 = vmul.f32 0.03125, %v4934_v55 }
0x1113   :  { %v4949_v59 = vsub.f32 %v4941_v58, %v4945_v56  ;;  %v4946_v62 = vmul.f32 %v4926_v57, %v4926_v57  ;;  %v4954_v25 = vsub.f32 %v4914_v41, %v4926_v57 }
0x1114   :  { %v4936_v60 = vpop.xlane.xlu1 %4935  ;;  %v4922_v61 = vpop.xlane.xlu0 %4921 }
0x1115   :  { %v4957_v63 = vadd.f32 1e-05, %v4949_v59  ;;  %v4942_v0 = vmul.f32 0.03125, %v4936_v60  ;;  %v4927_v1 = vmul.f32 0.03125, %v4922_v61 }
0x1117   :  { %6596 = vrsqrt.f32 %v4957_v63  ;;  %v4950_v3 = vsub.f32 %v4942_v0, %v4946_v62  ;;  %v4947_v7 = vmul.f32 %v4927_v1, %v4927_v1  ;;  %v4955_v14 = vsub.f32 %v4915_v48, %v4927_v1 }
0x1118   :  { %v4924_v4 = vpop.xlane.xlu1 %4923  ;;  %v4938_v5 = vpop.xlane.xlu0 %4937 }
0x1119   :  { %v4958_v6 = vadd.f32 1e-05, %v4950_v3  ;;  %v4928_v8 = vmul.f32 0.03125, %v4924_v4  ;;  %v4943_v9 = vmul.f32 0.03125, %v4938_v5 }
0x111b   :  { %6598 = vrsqrt.f32 %v4958_v6  ;;  %v4951_v11 = vsub.f32 %v4943_v9, %v4947_v7  ;;  %v4948_v13 = vmul.f32 %v4928_v8, %v4928_v8  ;;  %v4956_v35 = vsub.f32 %v4916_v49, %v4928_v8 }
0x111c   :  { %v4940_v12 = vpop.xlane.xlu1 %4939 }
0x111d   :  { %v4959_v15 = vadd.f32 1e-05, %v4951_v11  ;;  %v4944_v16 = vmul.f32 0.03125, %v4940_v12 }
0x111f   :  { %6600 = vrsqrt.f32 %v4959_v15  ;;  %v4952_v18 = vsub.f32 %v4944_v16, %v4948_v13 }
0x1121   :  { %v4960_v19 = vadd.f32 1e-05, %v4952_v18 }
0x1123   :  { %6602 = vrsqrt.f32 %v4960_v19 }
0x1124   :  { %v6597_v2 = vpop.eup %6596 }
0x1125   :  { %v4965_v24 = vmul.f32 %v6597_v2, %v4953_v21 }
0x1127   :  { %v4976_v27 = vmul.f32 %v5398_v22, %v4965_v24 }
0x1128   :  { %v6599_v17 = vpop.eup %6598 }
0x1129   :  { %v4966_v20 = vmul.f32 %v6599_v17, %v4954_v25  ;;  %v4987_v30 = vadd.f32 %v5399_v10, %v4976_v27 }
0x112b   :  { %v4977_v32 = vmul.f32 %v5398_v22, %v4966_v20  ;;  %4991 = vst [vmem:[#allocation30] sm:$0xff] %v4987_v30 }
0x112c   :  { %v6601_v33 = vpop.eup %6600 }
0x112d   :  { %v4967_v34 = vmul.f32 %v6601_v33, %v4955_v14  ;;  %v4988_v23 = vadd.f32 %v5399_v10, %v4977_v32 }
0x112f   :  { %v4978_v37 = vmul.f32 %v5398_v22, %v4967_v34  ;;  %4992 = vst [vmem:[#allocation30 + $0x8] sm:$0xff] %v4988_v23 }
0x1130   :  { %v6603_v36 = vpop.eup %6602 }
0x1131   :  { %v4968_v28 = vmul.f32 %v6603_v36, %v4956_v35  ;;  %v4989_v29 = vadd.f32 %v5399_v10, %v4978_v37 }
0x1133   :  { %v4979_v40 = vmul.f32 %v5398_v22, %v4968_v28  ;;  %4993 = vst [vmem:[#allocation30 + $0x10] sm:$0xff] %v4989_v29 }
0x1135   :  { %v4990_v26 = vadd.f32 %v5399_v10, %v4979_v40 }
0x1137   :  { %4994 = vst [vmem:[#allocation30 + $0x18] sm:$0xff] %v4990_v26 }
0x1138   :  { %6955 = shalt.err (!%p6952_p5)
}
0x1139   :  { %5006 = dma.vmem_to_hbm [thread:$0]  %s5001_s12, 512, %s7261_s29, [#allocation5], %s7036_s21, %s7036_s21, %s7037_s1  }
0x113a   :  { %6982 = dma.done.wait [#allocation5], 512  }
0x113b   :  { %6983 = vsyncadd [#allocation5], 4294966784 }
0x113c   :  { %5010 = vsyncpa [#allocation4], 1 }
0x113d   :  { %5011 = vsyncpa [#allocation7], 1 }
0x113e   :  { %5012 = vsyncpa [#allocation10], 1 }
0x113f   :  { %5013 = vsyncpa [#allocation13], 1 }
0x1140   :  { %5014 = vsyncpa [#allocation16], 1 }
0x1141   :  { %5015 = vsyncpa [#allocation19], 1 }
0x1142   :  { %5016 = vsyncpa [#allocation22], 1 }
0x1143   :  { %5017 = vsyncpa [#allocation25], 1 }
0x1144   :  { %5018 = vsyncpa [#allocation28], 1 }
0x1145   :  { %5019 = vsyncpa [#allocation5], 1 }

</bundles_post_ra>
